<compile_context>
chip_gen: v7x
topology: tpu7x:2x2x1
jax: 0.10.0
libtpu: 0.0.40
codegen_flags: <defaults>
</compile_context>

<pallas_src>
import functools
import math

import jax
import jax.numpy as jnp
from jax.experimental import pallas as pl
from jax.experimental.pallas import tpu as pltpu

# Keep the pure-JAX reference (and one-time weight folding) at full f32-emulated precision; the
# kernel's dots carry an explicit precision argument.
jax.config.update("jax_default_matmul_precision", "highest")

# The PyTorch module implicitly requires num_convs_layers * ((T - K + 1) // K) == history_times.
CFG = dict(
    batch_size=2,
    history_times=8,      # T (== LSTM sequence length S)
    input_size=4,         # C_in
    con_output_size=8,    # C_out of each conv branch == LSTM input size
    kernel_size=3,        # conv kernel AND maxpool kernel/stride
    num_convs_layers=4,
    hidden_size=32,
    lstm_layers=1,
    dropout_rate=0.0,     # TODO(synk): dropout (train-mode only, rate 0 here) is not modeled
    use_bidirectional=False,
    output_size=3,
    num_fc_layers=2,
)

_VMEM = functools.partial(pl.BlockSpec, memory_space=pltpu.MemorySpace.VMEM)
_DN = (((2,), (0,)), ((), ()))   # contract last dim of (B, S, F) with first dim of (F, G)


# ----------------------------- fused Pallas kernel ----------------------------
def fused_forward_kernel(x_ref, conv_ref, proj_ref, whh_ref, m_ref, out_ref, state_ref,
                         *, K, H, O, NC, Cout, L, precision):
    B, T, Cin = x_ref.shape
    Tout = T - K + 1
    S = NC * L
    H4 = 4 * H
    NCC = NC * Cout
    OO2 = 2 * O * O
    dot = functools.partial(jnp.dot, precision=precision,
                            preferred_element_type=jnp.float32)

    x = x_ref[...]                                          # (B, T, Cin)

    # ---- all conv branches lane-packed: valid Conv1d + bias + ReLU -> (B, Tout, NC*Cout) ----
    acc = jnp.zeros((B, Tout, NCC), jnp.float32)
    for k in range(K):                                      # static, unrolled
        acc = acc + jax.lax.dot_general(
            x[:, k:k + Tout, :], conv_ref[k * Cin:(k + 1) * Cin, :],
            dimension_numbers=_DN, precision=precision,
            preferred_element_type=jnp.float32)
    acc = jnp.maximum(acc + conv_ref[K * Cin:K * Cin + 1, :], 0.0)

    # ---- MaxPool1d(K, K) per window + hoisted LSTM input projection (block-diag W_ih) ----
    wexp = proj_ref[0:NCC, :]                               # (NC*Cout, NC*4H)
    b_l = proj_ref[NCC:NCC + 1, :]                          # (1, NC*4H)  (b_ih+b_hh tiled/branch)
    zx = []
    for l in range(L):
        m = acc[:, l * K, :]
        for kk in range(1, K):
            m = jnp.maximum(m, acc[:, l * K + kk, :])       # (B, NC*Cout), all branches' pool l
        zx.append(dot(m, wexp) + b_l)                       # (B, NC*4H): x_t @ W_ih^T + b, all br

    # ---- single-layer LSTM, fully unrolled; folded post-LSTM heads accumulated on the fly ----
    whh = whh_ref[...]                                      # (H, 4H)
    h = jnp.zeros((B, H), jnp.float32)
    c = jnp.zeros((B, H), jnp.float32)
    y = jnp.zeros((B, OO2), jnp.float32) + m_ref[S * H:S * H + 1, :]    # folded output bias
    for t in range(S):
        br, l = divmod(t, L)                                # branch-major time order
        z = zx[l][:, br * H4:(br + 1) * H4] + dot(h, whh)   # (B, 4H)  gates i,f,g,o
        sg = jax.nn.sigmoid(z)                              # one EUP pass over all 128 lanes
        th = jnp.tanh(z)
        c = sg[:, H:2 * H] * c + sg[:, 0:H] * th[:, 2 * H:3 * H]
        h = sg[:, 3 * H:4 * H] * jnp.tanh(c)
        y = y + dot(h, m_ref[t * H:(t + 1) * H, :])         # folded linear_1 + both heads

    out_ref[...] = y                                        # (B, 2*O*O)
    state_ref[:, 0:H] = h                                   # h_n / c_n written exactly once
    state_ref[:, H:2 * H] = c


# ----------------------------- param preprocessing ----------------------------
def _fold_view_last2(w2, b2, S, O):
    """A[s] of shape (O, O*O) such that
         linear_last_2(y1.view(B, O, S)).reshape(B, O*O) == b2_tiled + sum_s y1[:, s, :] @ A[s]."""
    m = jnp.arange(S * O)                  # flat index of the viewed (O, S) tensor: m = o2*S + s2
    s2 = m % S
    o2 = m // S
    A = jnp.zeros((S * O, O, O), jnp.float32)
    A = A.at[m, o2, :].set(w2[:, s2].T)    # A[m, o2(m), j] = w2[j, s2(m)]
    return A.reshape(S, O, O * O), jnp.tile(b2, O).reshape(1, O * O)


def prepare_params(params, cfg):
    """One-time packing into 4 lane-dense 2-D buffers (all transposes/folds hoisted out)."""
    K, H, T = cfg["kernel_size"], cfg["hidden_size"], cfg["history_times"]
    O, NF, NC = cfg["output_size"], cfg["num_fc_layers"], cfg["num_convs_layers"]
    Cin, Cout = cfg["input_size"], cfg["con_output_size"]
    L = (T - K + 1) // K
    S = NC * L
    OO = O * O

    # Conv branches packed along lanes: rows [k*Cin + cin], cols [br*Cout + cout]; last row = bias.
    w_cols = [jnp.transpose(w, (2, 1, 0)).reshape(K * Cin, Cout) for (w, _) in params["convs"]]
    b_cols = [b for (_, b) in params["convs"]]
    conv_pack = jnp.concatenate(
        [jnp.concatenate(w_cols, axis=1), jnp.concatenate(b_cols)[None, :]], axis=0)

    # Block-diagonal expanded W_ih^T so the lane-packed pooled tile is projected for ALL branches
    # with one matmul; (b_ih + b_hh) tiled per branch; last row = bias.
    lp = params["lstm"]
    wih_t, whh_t = lp["w_ih"].T, lp["w_hh"].T
    lb = lp["b_ih"] + lp["b_hh"]
    wexp = jnp.zeros((NC * Cout, NC * 4 * H), jnp.float32)
    for br in range(NC):
        wexp = wexp.at[br * Cout:(br + 1) * Cout, br * 4 * H:(br + 1) * 4 * H].set(wih_t)
    proj_pack = jnp.concatenate([wexp, jnp.tile(lb, NC)[None, :]], axis=0)

    # Fold the entire post-LSTM linear chain (exact algebra, no nonlinearity after the LSTM):
    #   out_flat[b] = bias + sum_t h_t[b] @ M[t],   M[t]: (H, 2*O*O), both heads packed on lanes.
    w1, b1 = params["linear_1"]

    def head_fold(pm):
        Wl1 = pm["last1_w"]                                         # (O, NF*H)
        G = jnp.zeros((H, O), jnp.float32)
        for i, (wl, _) in enumerate(pm["linears"]):
            G = G + wl.T @ Wl1[:, i * H:(i + 1) * H].T
        bl_cat = jnp.concatenate([bv for (_, bv) in pm["linears"]])
        g = Wl1 @ bl_cat + pm["last1_b"]
        P = w1.T @ G                                                # y1[:, s, :] = h_s @ P + p
        p = b1 @ G + g
        A, b2f = _fold_view_last2(pm["last2_w"], pm["last2_b"], S, O)
        M = jnp.einsum("ho,soq->shq", P, A)                         # (S, H, O*O)
        return M, b2f[0] + p @ A.sum(axis=0)

    Mb, bb = head_fold(params["bicha"])
    Mj, bj = head_fold(params["jiaocha"])
    M = jnp.concatenate([Mb, Mj], axis=2).reshape(S * H, 2 * OO)    # rows indexed [t*H + h]
    m_pack = jnp.concatenate([M, jnp.concatenate([bb, bj])[None, :]], axis=0)   # (S*H+1, 2*O*O)

    return dict(conv_pack=conv_pack, proj_pack=proj_pack, whh_t=whh_t, m_pack=m_pack)


# ----------------------------- forward wrapper --------------------------------
def forward(prepped, x, cfg, precision):
    B, T, _ = x.shape
    K, H, O = cfg["kernel_size"], cfg["hidden_size"], cfg["output_size"]
    NC, Cout = cfg["num_convs_layers"], cfg["con_output_size"]
    L = (T - K + 1) // K
    S = NC * L
    # linear_last_2 requires in_features == history_times -> the folds rely on S == T.
    assert S == T, "num_convs_layers * ((T - K + 1) // K) must equal history_times"

    kernel = functools.partial(fused_forward_kernel, K=K, H=H, O=O, NC=NC, Cout=Cout, L=L,
                               precision=precision)
    out_flat, state = pl.pallas_call(
        kernel,
        out_shape=(jax.ShapeDtypeStruct((B, 2 * O * O), jnp.float32),
                   jax.ShapeDtypeStruct((B, 2 * H), jnp.float32)),
        in_specs=[_VMEM() for _ in range(5)],
        out_specs=(_VMEM(), _VMEM()),
    )(x, prepped["conv_pack"], prepped["proj_pack"], prepped["whh_t"], prepped["m_pack"])
    # (B, 2*O*O) -> (B, 2*O, O) contiguous reinterpretation == torch.cat([bicha, jiaocha], dim=1).
    out = out_flat.reshape(B, 2 * O, O)
    return out, (state[None, :, 0:H], state[None, :, H:2 * H])


# ----------------------------- params ----------------------------------------
def _uniform(key, shape, bound):
    return jax.random.uniform(key, shape, jnp.float32, -bound, bound)


def init_params(key, cfg):
    keys = iter(jax.random.split(key, 64))
    Cin, Cout, K = cfg["input_size"], cfg["con_output_size"], cfg["kernel_size"]
    H, T, O, NF = cfg["hidden_size"], cfg["history_times"], cfg["output_size"], cfg["num_fc_layers"]

    cb = 1.0 / math.sqrt(Cin * K)
    convs = [(_uniform(next(keys), (Cout, Cin, K), cb), _uniform(next(keys), (Cout,), cb))
             for _ in range(cfg["num_convs_layers"])]

    lb = 1.0 / math.sqrt(H)
    lstm_p = dict(w_ih=_uniform(next(keys), (4 * H, Cout), lb),
                  w_hh=_uniform(next(keys), (4 * H, H), lb),
                  b_ih=_uniform(next(keys), (4 * H,), lb),
                  b_hh=_uniform(next(keys), (4 * H,), lb))

    linear_1 = (_uniform(next(keys), (H, H), lb), _uniform(next(keys), (H,), lb))

    def make_multi():
        linears = [(_uniform(next(keys), (H, H), lb), _uniform(next(keys), (H,), lb))
                   for _ in range(NF)]
        b1 = 1.0 / math.sqrt(H * NF)
        b2 = 1.0 / math.sqrt(T)
        return dict(linears=linears,
                    last1_w=_uniform(next(keys), (O, H * NF), b1),
                    last1_b=_uniform(next(keys), (O,), b1),
                    last2_w=_uniform(next(keys), (O, T), b2),
                    last2_b=_uniform(next(keys), (O,), b2))

    return dict(convs=convs, lstm=lstm_p, linear_1=linear_1,
                bicha=make_multi(), jiaocha=make_multi())


# ----------------------------- pure-JAX reference -----------------------------
def ref_forward(params, x, cfg):
    K, H = cfg["kernel_size"], cfg["hidden_size"]
    B, T, _ = x.shape
    xs = jnp.transpose(x, (0, 2, 1))                   # (B, Cin, T)
    branches = []
    for (w, b) in params["convs"]:
        Tout = T - K + 1
        conv = sum(jnp.einsum("bct,oc->bot", xs[:, :, k:k + Tout], w[:, :, k])
                   for k in range(K)) + b[None, :, None]
        conv = jnp.maximum(conv, 0.0)
        L = Tout // K
        pooled = conv[:, :, :L * K].reshape(B, conv.shape[1], L, K).max(axis=3)
        branches.append(pooled)
    seq = jnp.transpose(jnp.concatenate(branches, axis=2), (0, 2, 1))

    wih, whh = params["lstm"]["w_ih"], params["lstm"]["w_hh"]
    bih, bhh = params["lstm"]["b_ih"], params["lstm"]["b_hh"]

    def step(carry, x_t):
        h, c = carry
        z = x_t @ wih.T + h @ whh.T + bih + bhh
        i = jax.nn.sigmoid(z[:, :H]); f = jax.nn.sigmoid(z[:, H:2 * H])
        g = jnp.tanh(z[:, 2 * H:3 * H]); o = jax.nn.sigmoid(z[:, 3 * H:])
        c = f * c + i * g
        h = o * jnp.tanh(c)
        return (h, c), h

    (hn, cn), ys = jax.lax.scan(step, (jnp.zeros((B, H)), jnp.zeros((B, H))),
                                jnp.transpose(seq, (1, 0, 2)))
    lstm_out = jnp.transpose(ys, (1, 0, 2))

    def lin(v, w, b):
        return v @ w.T + b

    l1 = lin(lstm_out, *params["linear_1"])

    def multi(pm, xin):
        outs = jnp.concatenate([lin(xin, w, b) for (w, b) in pm["linears"]], axis=2)
        y1 = lin(outs, pm["last1_w"], pm["last1_b"])
        y1 = y1.reshape(y1.shape[0], y1.shape[2], y1.shape[1])
        return lin(y1, pm["last2_w"], pm["last2_b"])

    return (jnp.concatenate([multi(params["bicha"], l1), multi(params["jiaocha"], l1)], axis=1),
            (hn[None], cn[None]))


# ----------------------------- main -------------------------------------------
if __name__ == "__main__":
    import numpy as np

    key = jax.random.PRNGKey(0)
    pkey, xkey = jax.random.split(key)
    params = init_params(pkey, CFG)
    x = jax.random.normal(
        xkey, (CFG["batch_size"], CFG["history_times"], CFG["input_size"]), dtype=jnp.float32)

    prepped = prepare_params(params, CFG)              # one-time packing (hoisted out of forward)

    def build(prec):
        return jax.jit(lambda pp, v: forward(pp, v, CFG, prec))

    try:
        # Precision.HIGH == bf16_3x passes on the MXU (f32 accumulate) — ~2x fewer vmatmuls.
        fwd = build(jax.lax.Precision.HIGH)
        out, (h_n, c_n) = jax.block_until_ready(fwd(prepped, x))
    except Exception:
        # Fall back to the known-good fp32-emulated path if this Mosaic build rejects HIGH.
        fwd = build(jax.lax.Precision.HIGHEST)
        out, (h_n, c_n) = jax.block_until_ready(fwd(prepped, x))

    assert out.shape == (CFG["batch_size"], 2 * CFG["output_size"], CFG["output_size"])
    ref_out, (ref_h, ref_c) = ref_forward(params, x, CFG)
    np.testing.assert_allclose(np.asarray(out), np.asarray(ref_out), atol=2e-3, rtol=2e-3)
    np.testing.assert_allclose(np.asarray(h_n), np.asarray(ref_h), atol=2e-3, rtol=2e-3)
    np.testing.assert_allclose(np.asarray(c_n), np.asarray(ref_c), atol=2e-3, rtol=2e-3)

    print("KERNEL_OK")
</pallas_src>

<mosaic_0001>
module attributes {stable_mosaic.version = 11 : i64} {
  func.func @fused_forward_kernel(%arg0: memref<2x8x4xf32, #tpu.memory_space<vmem>>, %arg1: memref<13x32xf32, #tpu.memory_space<vmem>>, %arg2: memref<33x512xf32, #tpu.memory_space<vmem>>, %arg3: memref<32x128xf32, #tpu.memory_space<vmem>>, %arg4: memref<257x18xf32, #tpu.memory_space<vmem>>, %arg5: memref<2x18xf32, #tpu.memory_space<vmem>>, %arg6: memref<2x64xf32, #tpu.memory_space<vmem>>) attributes {dimension_semantics = [], scalar_prefetch = 0 : i64, scratch_operands = 0 : i64, tpu.core_type = #tpu.core_type<tc>} {
    %c0 = arith.constant 0 : index
    %c0_0 = arith.constant 0 : index
    %c0_1 = arith.constant 0 : index
    %0 = vector.load %arg0[%c0, %c0_0, %c0_1] : memref<2x8x4xf32, #tpu.memory_space<vmem>>, vector<2x8x4xf32>
    %cst = arith.constant 0.000000e+00 : f32
    %1 = vector.broadcast %cst : f32 to vector<2x6x32xf32>
    %2 = vector.extract_strided_slice %0 {offsets = [0, 0, 0], sizes = [2, 6, 4], strides = [1, 1, 1]} : vector<2x8x4xf32> to vector<2x6x4xf32>
    %c0_2 = arith.constant 0 : index
    %c0_3 = arith.constant 0 : index
    %3 = vector.load %arg1[%c0_2, %c0_3] : memref<13x32xf32, #tpu.memory_space<vmem>>, vector<4x32xf32>
    %cst_4 = arith.constant dense<0.000000e+00> : vector<2x6x32xf32>
    %4 = tpu.matmul %2, %3, %cst_4 {dimension_numbers = #tpu.dot_dimension_numbers<[2], [0], [0, 1], [1], [0, 0, 0, 1, 1, 1], [], []>, precision = #tpu.contract_precision<fp32>} : vector<2x6x4xf32>, vector<4x32xf32>, vector<2x6x32xf32> -> vector<2x6x32xf32>
    %5 = arith.addf %1, %4 : vector<2x6x32xf32>
    %6 = vector.extract_strided_slice %0 {offsets = [0, 1, 0], sizes = [2, 6, 4], strides = [1, 1, 1]} : vector<2x8x4xf32> to vector<2x6x4xf32>
    %c4 = arith.constant 4 : index
    %c0_5 = arith.constant 0 : index
    %7 = vector.load %arg1[%c4, %c0_5] : memref<13x32xf32, #tpu.memory_space<vmem>>, vector<4x32xf32>
    %cst_6 = arith.constant dense<0.000000e+00> : vector<2x6x32xf32>
    %8 = tpu.matmul %6, %7, %cst_6 {dimension_numbers = #tpu.dot_dimension_numbers<[2], [0], [0, 1], [1], [0, 0, 0, 1, 1, 1], [], []>, precision = #tpu.contract_precision<fp32>} : vector<2x6x4xf32>, vector<4x32xf32>, vector<2x6x32xf32> -> vector<2x6x32xf32>
    %9 = arith.addf %5, %8 : vector<2x6x32xf32>
    %10 = vector.extract_strided_slice %0 {offsets = [0, 2, 0], sizes = [2, 6, 4], strides = [1, 1, 1]} : vector<2x8x4xf32> to vector<2x6x4xf32>
    %c8 = arith.constant 8 : index
    %c0_7 = arith.constant 0 : index
    %11 = vector.load %arg1[%c8, %c0_7] : memref<13x32xf32, #tpu.memory_space<vmem>>, vector<4x32xf32>
    %cst_8 = arith.constant dense<0.000000e+00> : vector<2x6x32xf32>
    %12 = tpu.matmul %10, %11, %cst_8 {dimension_numbers = #tpu.dot_dimension_numbers<[2], [0], [0, 1], [1], [0, 0, 0, 1, 1, 1], [], []>, precision = #tpu.contract_precision<fp32>} : vector<2x6x4xf32>, vector<4x32xf32>, vector<2x6x32xf32> -> vector<2x6x32xf32>
    %13 = arith.addf %9, %12 : vector<2x6x32xf32>
    %c12 = arith.constant 12 : index
    %c0_9 = arith.constant 0 : index
    %14 = vector.load %arg1[%c12, %c0_9] : memref<13x32xf32, #tpu.memory_space<vmem>>, vector<1x32xf32>
    %15 = vector.shape_cast %14 : vector<1x32xf32> to vector<1x1x32xf32>
    %16 = vector.broadcast %15 : vector<1x1x32xf32> to vector<2x6x32xf32>
    %17 = arith.addf %13, %16 : vector<2x6x32xf32>
    %cst_10 = arith.constant 0.000000e+00 : f32
    %18 = vector.broadcast %cst_10 : f32 to vector<2x6x32xf32>
    %19 = arith.maximumf %17, %18 : vector<2x6x32xf32>
    %c0_11 = arith.constant 0 : index
    %c0_12 = arith.constant 0 : index
    %20 = vector.load %arg2[%c0_11, %c0_12] : memref<33x512xf32, #tpu.memory_space<vmem>>, vector<32x512xf32>
    %c32 = arith.constant 32 : index
    %c0_13 = arith.constant 0 : index
    %21 = vector.load %arg2[%c32, %c0_13] : memref<33x512xf32, #tpu.memory_space<vmem>>, vector<1x512xf32>
    %22 = vector.extract_strided_slice %19 {offsets = [0, 0, 0], sizes = [2, 1, 32], strides = [1, 1, 1]} : vector<2x6x32xf32> to vector<2x1x32xf32>
    %23 = vector.shape_cast %22 : vector<2x1x32xf32> to vector<2x32xf32>
    %24 = vector.extract_strided_slice %19 {offsets = [0, 1, 0], sizes = [2, 1, 32], strides = [1, 1, 1]} : vector<2x6x32xf32> to vector<2x1x32xf32>
    %25 = vector.shape_cast %24 : vector<2x1x32xf32> to vector<2x32xf32>
    %26 = arith.maximumf %23, %25 : vector<2x32xf32>
    %27 = vector.extract_strided_slice %19 {offsets = [0, 2, 0], sizes = [2, 1, 32], strides = [1, 1, 1]} : vector<2x6x32xf32> to vector<2x1x32xf32>
    %28 = vector.shape_cast %27 : vector<2x1x32xf32> to vector<2x32xf32>
    %29 = arith.maximumf %26, %28 : vector<2x32xf32>
    %cst_14 = arith.constant dense<0.000000e+00> : vector<2x512xf32>
    %30 = tpu.matmul %29, %20, %cst_14 {dimension_numbers = #tpu.dot_dimension_numbers<[1], [0], [0], [1], [0, 0, 1, 1], [], []>, precision = #tpu.contract_precision<fp32>} : vector<2x32xf32>, vector<32x512xf32>, vector<2x512xf32> -> vector<2x512xf32>
    %31 = vector.broadcast %21 : vector<1x512xf32> to vector<2x512xf32>
    %32 = arith.addf %30, %31 : vector<2x512xf32>
    %33 = vector.extract_strided_slice %19 {offsets = [0, 3, 0], sizes = [2, 1, 32], strides = [1, 1, 1]} : vector<2x6x32xf32> to vector<2x1x32xf32>
    %34 = vector.shape_cast %33 : vector<2x1x32xf32> to vector<2x32xf32>
    %35 = vector.extract_strided_slice %19 {offsets = [0, 4, 0], sizes = [2, 1, 32], strides = [1, 1, 1]} : vector<2x6x32xf32> to vector<2x1x32xf32>
    %36 = vector.shape_cast %35 : vector<2x1x32xf32> to vector<2x32xf32>
    %37 = arith.maximumf %34, %36 : vector<2x32xf32>
    %38 = vector.extract_strided_slice %19 {offsets = [0, 5, 0], sizes = [2, 1, 32], strides = [1, 1, 1]} : vector<2x6x32xf32> to vector<2x1x32xf32>
    %39 = vector.shape_cast %38 : vector<2x1x32xf32> to vector<2x32xf32>
    %40 = arith.maximumf %37, %39 : vector<2x32xf32>
    %cst_15 = arith.constant dense<0.000000e+00> : vector<2x512xf32>
    %41 = tpu.matmul %40, %20, %cst_15 {dimension_numbers = #tpu.dot_dimension_numbers<[1], [0], [0], [1], [0, 0, 1, 1], [], []>, precision = #tpu.contract_precision<fp32>} : vector<2x32xf32>, vector<32x512xf32>, vector<2x512xf32> -> vector<2x512xf32>
    %42 = vector.broadcast %21 : vector<1x512xf32> to vector<2x512xf32>
    %43 = arith.addf %41, %42 : vector<2x512xf32>
    %c0_16 = arith.constant 0 : index
    %c0_17 = arith.constant 0 : index
    %44 = vector.load %arg3[%c0_16, %c0_17] : memref<32x128xf32, #tpu.memory_space<vmem>>, vector<32x128xf32>
    %cst_18 = arith.constant 0.000000e+00 : f32
    %45 = vector.broadcast %cst_18 : f32 to vector<2x32xf32>
    %cst_19 = arith.constant 0.000000e+00 : f32
    %46 = vector.broadcast %cst_19 : f32 to vector<2x32xf32>
    %cst_20 = arith.constant 0.000000e+00 : f32
    %47 = vector.broadcast %cst_20 : f32 to vector<2x18xf32>
    %c256 = arith.constant 256 : index
    %c0_21 = arith.constant 0 : index
    %48 = vector.load %arg4[%c256, %c0_21] : memref<257x18xf32, #tpu.memory_space<vmem>>, vector<1x18xf32>
    %49 = vector.broadcast %48 : vector<1x18xf32> to vector<2x18xf32>
    %50 = arith.addf %47, %49 : vector<2x18xf32>
    %51 = vector.extract_strided_slice %32 {offsets = [0, 0], sizes = [2, 128], strides = [1, 1]} : vector<2x512xf32> to vector<2x128xf32>
    %cst_22 = arith.constant dense<0.000000e+00> : vector<2x128xf32>
    %52 = tpu.matmul %45, %44, %cst_22 {dimension_numbers = #tpu.dot_dimension_numbers<[1], [0], [0], [1], [0, 0, 1, 1], [], []>, precision = #tpu.contract_precision<fp32>} : vector<2x32xf32>, vector<32x128xf32>, vector<2x128xf32> -> vector<2x128xf32>
    %53 = arith.addf %51, %52 : vector<2x128xf32>
    %54 = arith.negf %53 : vector<2x128xf32>
    %55 = math.exp %54 : vector<2x128xf32>
    %cst_23 = arith.constant 1.000000e+00 : f32
    %56 = vector.broadcast %cst_23 : f32 to vector<2x128xf32>
    %57 = arith.addf %56, %55 : vector<2x128xf32>
    %58 = arith.divf %56, %57 : vector<2x128xf32>
    %59 = math.tanh %53 : vector<2x128xf32>
    %60 = vector.extract_strided_slice %58 {offsets = [0, 32], sizes = [2, 32], strides = [1, 1]} : vector<2x128xf32> to vector<2x32xf32>
    %61 = arith.mulf %60, %46 : vector<2x32xf32>
    %62 = vector.extract_strided_slice %58 {offsets = [0, 0], sizes = [2, 32], strides = [1, 1]} : vector<2x128xf32> to vector<2x32xf32>
    %63 = vector.extract_strided_slice %59 {offsets = [0, 64], sizes = [2, 32], strides = [1, 1]} : vector<2x128xf32> to vector<2x32xf32>
    %64 = arith.mulf %62, %63 : vector<2x32xf32>
    %65 = arith.addf %61, %64 : vector<2x32xf32>
    %66 = vector.extract_strided_slice %58 {offsets = [0, 96], sizes = [2, 32], strides = [1, 1]} : vector<2x128xf32> to vector<2x32xf32>
    %67 = math.tanh %65 : vector<2x32xf32>
    %68 = arith.mulf %66, %67 : vector<2x32xf32>
    %c0_24 = arith.constant 0 : index
    %c0_25 = arith.constant 0 : index
    %69 = vector.load %arg4[%c0_24, %c0_25] : memref<257x18xf32, #tpu.memory_space<vmem>>, vector<32x18xf32>
    %cst_26 = arith.constant dense<0.000000e+00> : vector<2x18xf32>
    %70 = tpu.matmul %68, %69, %cst_26 {dimension_numbers = #tpu.dot_dimension_numbers<[1], [0], [0], [1], [0, 0, 1, 1], [], []>, precision = #tpu.contract_precision<fp32>} : vector<2x32xf32>, vector<32x18xf32>, vector<2x18xf32> -> vector<2x18xf32>
    %71 = arith.addf %50, %70 : vector<2x18xf32>
    %72 = vector.extract_strided_slice %43 {offsets = [0, 0], sizes = [2, 128], strides = [1, 1]} : vector<2x512xf32> to vector<2x128xf32>
    %cst_27 = arith.constant dense<0.000000e+00> : vector<2x128xf32>
    %73 = tpu.matmul %68, %44, %cst_27 {dimension_numbers = #tpu.dot_dimension_numbers<[1], [0], [0], [1], [0, 0, 1, 1], [], []>, precision = #tpu.contract_precision<fp32>} : vector<2x32xf32>, vector<32x128xf32>, vector<2x128xf32> -> vector<2x128xf32>
    %74 = arith.addf %72, %73 : vector<2x128xf32>
    %75 = arith.negf %74 : vector<2x128xf32>
    %76 = math.exp %75 : vector<2x128xf32>
    %cst_28 = arith.constant 1.000000e+00 : f32
    %77 = vector.broadcast %cst_28 : f32 to vector<2x128xf32>
    %78 = arith.addf %77, %76 : vector<2x128xf32>
    %79 = arith.divf %77, %78 : vector<2x128xf32>
    %80 = math.tanh %74 : vector<2x128xf32>
    %81 = vector.extract_strided_slice %79 {offsets = [0, 32], sizes = [2, 32], strides = [1, 1]} : vector<2x128xf32> to vector<2x32xf32>
    %82 = arith.mulf %81, %65 : vector<2x32xf32>
    %83 = vector.extract_strided_slice %79 {offsets = [0, 0], sizes = [2, 32], strides = [1, 1]} : vector<2x128xf32> to vector<2x32xf32>
    %84 = vector.extract_strided_slice %80 {offsets = [0, 64], sizes = [2, 32], strides = [1, 1]} : vector<2x128xf32> to vector<2x32xf32>
    %85 = arith.mulf %83, %84 : vector<2x32xf32>
    %86 = arith.addf %82, %85 : vector<2x32xf32>
    %87 = vector.extract_strided_slice %79 {offsets = [0, 96], sizes = [2, 32], strides = [1, 1]} : vector<2x128xf32> to vector<2x32xf32>
    %88 = math.tanh %86 : vector<2x32xf32>
    %89 = arith.mulf %87, %88 : vector<2x32xf32>
    %c32_29 = arith.constant 32 : index
    %c0_30 = arith.constant 0 : index
    %90 = vector.load %arg4[%c32_29, %c0_30] : memref<257x18xf32, #tpu.memory_space<vmem>>, vector<32x18xf32>
    %cst_31 = arith.constant dense<0.000000e+00> : vector<2x18xf32>
    %91 = tpu.matmul %89, %90, %cst_31 {dimension_numbers = #tpu.dot_dimension_numbers<[1], [0], [0], [1], [0, 0, 1, 1], [], []>, precision = #tpu.contract_precision<fp32>} : vector<2x32xf32>, vector<32x18xf32>, vector<2x18xf32> -> vector<2x18xf32>
    %92 = arith.addf %71, %91 : vector<2x18xf32>
    %93 = vector.extract_strided_slice %32 {offsets = [0, 128], sizes = [2, 128], strides = [1, 1]} : vector<2x512xf32> to vector<2x128xf32>
    %cst_32 = arith.constant dense<0.000000e+00> : vector<2x128xf32>
    %94 = tpu.matmul %89, %44, %cst_32 {dimension_numbers = #tpu.dot_dimension_numbers<[1], [0], [0], [1], [0, 0, 1, 1], [], []>, precision = #tpu.contract_precision<fp32>} : vector<2x32xf32>, vector<32x128xf32>, vector<2x128xf32> -> vector<2x128xf32>
    %95 = arith.addf %93, %94 : vector<2x128xf32>
    %96 = arith.negf %95 : vector<2x128xf32>
    %97 = math.exp %96 : vector<2x128xf32>
    %cst_33 = arith.constant 1.000000e+00 : f32
    %98 = vector.broadcast %cst_33 : f32 to vector<2x128xf32>
    %99 = arith.addf %98, %97 : vector<2x128xf32>
    %100 = arith.divf %98, %99 : vector<2x128xf32>
    %101 = math.tanh %95 : vector<2x128xf32>
    %102 = vector.extract_strided_slice %100 {offsets = [0, 32], sizes = [2, 32], strides = [1, 1]} : vector<2x128xf32> to vector<2x32xf32>
    %103 = arith.mulf %102, %86 : vector<2x32xf32>
    %104 = vector.extract_strided_slice %100 {offsets = [0, 0], sizes = [2, 32], strides = [1, 1]} : vector<2x128xf32> to vector<2x32xf32>
    %105 = vector.extract_strided_slice %101 {offsets = [0, 64], sizes = [2, 32], strides = [1, 1]} : vector<2x128xf32> to vector<2x32xf32>
    %106 = arith.mulf %104, %105 : vector<2x32xf32>
    %107 = arith.addf %103, %106 : vector<2x32xf32>
    %108 = vector.extract_strided_slice %100 {offsets = [0, 96], sizes = [2, 32], strides = [1, 1]} : vector<2x128xf32> to vector<2x32xf32>
    %109 = math.tanh %107 : vector<2x32xf32>
    %110 = arith.mulf %108, %109 : vector<2x32xf32>
    %c64 = arith.constant 64 : index
    %c0_34 = arith.constant 0 : index
    %111 = vector.load %arg4[%c64, %c0_34] : memref<257x18xf32, #tpu.memory_space<vmem>>, vector<32x18xf32>
    %cst_35 = arith.constant dense<0.000000e+00> : vector<2x18xf32>
    %112 = tpu.matmul %110, %111, %cst_35 {dimension_numbers = #tpu.dot_dimension_numbers<[1], [0], [0], [1], [0, 0, 1, 1], [], []>, precision = #tpu.contract_precision<fp32>} : vector<2x32xf32>, vector<32x18xf32>, vector<2x18xf32> -> vector<2x18xf32>
    %113 = arith.addf %92, %112 : vector<2x18xf32>
    %114 = vector.extract_strided_slice %43 {offsets = [0, 128], sizes = [2, 128], strides = [1, 1]} : vector<2x512xf32> to vector<2x128xf32>
    %cst_36 = arith.constant dense<0.000000e+00> : vector<2x128xf32>
    %115 = tpu.matmul %110, %44, %cst_36 {dimension_numbers = #tpu.dot_dimension_numbers<[1], [0], [0], [1], [0, 0, 1, 1], [], []>, precision = #tpu.contract_precision<fp32>} : vector<2x32xf32>, vector<32x128xf32>, vector<2x128xf32> -> vector<2x128xf32>
    %116 = arith.addf %114, %115 : vector<2x128xf32>
    %117 = arith.negf %116 : vector<2x128xf32>
    %118 = math.exp %117 : vector<2x128xf32>
    %cst_37 = arith.constant 1.000000e+00 : f32
    %119 = vector.broadcast %cst_37 : f32 to vector<2x128xf32>
    %120 = arith.addf %119, %118 : vector<2x128xf32>
    %121 = arith.divf %119, %120 : vector<2x128xf32>
    %122 = math.tanh %116 : vector<2x128xf32>
    %123 = vector.extract_strided_slice %121 {offsets = [0, 32], sizes = [2, 32], strides = [1, 1]} : vector<2x128xf32> to vector<2x32xf32>
    %124 = arith.mulf %123, %107 : vector<2x32xf32>
    %125 = vector.extract_strided_slice %121 {offsets = [0, 0], sizes = [2, 32], strides = [1, 1]} : vector<2x128xf32> to vector<2x32xf32>
    %126 = vector.extract_strided_slice %122 {offsets = [0, 64], sizes = [2, 32], strides = [1, 1]} : vector<2x128xf32> to vector<2x32xf32>
    %127 = arith.mulf %125, %126 : vector<2x32xf32>
    %128 = arith.addf %124, %127 : vector<2x32xf32>
    %129 = vector.extract_strided_slice %121 {offsets = [0, 96], sizes = [2, 32], strides = [1, 1]} : vector<2x128xf32> to vector<2x32xf32>
    %130 = math.tanh %128 : vector<2x32xf32>
    %131 = arith.mulf %129, %130 : vector<2x32xf32>
    %c96 = arith.constant 96 : index
    %c0_38 = arith.constant 0 : index
    %132 = vector.load %arg4[%c96, %c0_38] : memref<257x18xf32, #tpu.memory_space<vmem>>, vector<32x18xf32>
    %cst_39 = arith.constant dense<0.000000e+00> : vector<2x18xf32>
    %133 = tpu.matmul %131, %132, %cst_39 {dimension_numbers = #tpu.dot_dimension_numbers<[1], [0], [0], [1], [0, 0, 1, 1], [], []>, precision = #tpu.contract_precision<fp32>} : vector<2x32xf32>, vector<32x18xf32>, vector<2x18xf32> -> vector<2x18xf32>
    %134 = arith.addf %113, %133 : vector<2x18xf32>
    %135 = vector.extract_strided_slice %32 {offsets = [0, 256], sizes = [2, 128], strides = [1, 1]} : vector<2x512xf32> to vector<2x128xf32>
    %cst_40 = arith.constant dense<0.000000e+00> : vector<2x128xf32>
    %136 = tpu.matmul %131, %44, %cst_40 {dimension_numbers = #tpu.dot_dimension_numbers<[1], [0], [0], [1], [0, 0, 1, 1], [], []>, precision = #tpu.contract_precision<fp32>} : vector<2x32xf32>, vector<32x128xf32>, vector<2x128xf32> -> vector<2x128xf32>
    %137 = arith.addf %135, %136 : vector<2x128xf32>
    %138 = arith.negf %137 : vector<2x128xf32>
    %139 = math.exp %138 : vector<2x128xf32>
    %cst_41 = arith.constant 1.000000e+00 : f32
    %140 = vector.broadcast %cst_41 : f32 to vector<2x128xf32>
    %141 = arith.addf %140, %139 : vector<2x128xf32>
    %142 = arith.divf %140, %141 : vector<2x128xf32>
    %143 = math.tanh %137 : vector<2x128xf32>
    %144 = vector.extract_strided_slice %142 {offsets = [0, 32], sizes = [2, 32], strides = [1, 1]} : vector<2x128xf32> to vector<2x32xf32>
    %145 = arith.mulf %144, %128 : vector<2x32xf32>
    %146 = vector.extract_strided_slice %142 {offsets = [0, 0], sizes = [2, 32], strides = [1, 1]} : vector<2x128xf32> to vector<2x32xf32>
    %147 = vector.extract_strided_slice %143 {offsets = [0, 64], sizes = [2, 32], strides = [1, 1]} : vector<2x128xf32> to vector<2x32xf32>
    %148 = arith.mulf %146, %147 : vector<2x32xf32>
    %149 = arith.addf %145, %148 : vector<2x32xf32>
    %150 = vector.extract_strided_slice %142 {offsets = [0, 96], sizes = [2, 32], strides = [1, 1]} : vector<2x128xf32> to vector<2x32xf32>
    %151 = math.tanh %149 : vector<2x32xf32>
    %152 = arith.mulf %150, %151 : vector<2x32xf32>
    %c128 = arith.constant 128 : index
    %c0_42 = arith.constant 0 : index
    %153 = vector.load %arg4[%c128, %c0_42] : memref<257x18xf32, #tpu.memory_space<vmem>>, vector<32x18xf32>
    %cst_43 = arith.constant dense<0.000000e+00> : vector<2x18xf32>
    %154 = tpu.matmul %152, %153, %cst_43 {dimension_numbers = #tpu.dot_dimension_numbers<[1], [0], [0], [1], [0, 0, 1, 1], [], []>, precision = #tpu.contract_precision<fp32>} : vector<2x32xf32>, vector<32x18xf32>, vector<2x18xf32> -> vector<2x18xf32>
    %155 = arith.addf %134, %154 : vector<2x18xf32>
    %156 = vector.extract_strided_slice %43 {offsets = [0, 256], sizes = [2, 128], strides = [1, 1]} : vector<2x512xf32> to vector<2x128xf32>
    %cst_44 = arith.constant dense<0.000000e+00> : vector<2x128xf32>
    %157 = tpu.matmul %152, %44, %cst_44 {dimension_numbers = #tpu.dot_dimension_numbers<[1], [0], [0], [1], [0, 0, 1, 1], [], []>, precision = #tpu.contract_precision<fp32>} : vector<2x32xf32>, vector<32x128xf32>, vector<2x128xf32> -> vector<2x128xf32>
    %158 = arith.addf %156, %157 : vector<2x128xf32>
    %159 = arith.negf %158 : vector<2x128xf32>
    %160 = math.exp %159 : vector<2x128xf32>
    %cst_45 = arith.constant 1.000000e+00 : f32
    %161 = vector.broadcast %cst_45 : f32 to vector<2x128xf32>
    %162 = arith.addf %161, %160 : vector<2x128xf32>
    %163 = arith.divf %161, %162 : vector<2x128xf32>
    %164 = math.tanh %158 : vector<2x128xf32>
    %165 = vector.extract_strided_slice %163 {offsets = [0, 32], sizes = [2, 32], strides = [1, 1]} : vector<2x128xf32> to vector<2x32xf32>
    %166 = arith.mulf %165, %149 : vector<2x32xf32>
    %167 = vector.extract_strided_slice %163 {offsets = [0, 0], sizes = [2, 32], strides = [1, 1]} : vector<2x128xf32> to vector<2x32xf32>
    %168 = vector.extract_strided_slice %164 {offsets = [0, 64], sizes = [2, 32], strides = [1, 1]} : vector<2x128xf32> to vector<2x32xf32>
    %169 = arith.mulf %167, %168 : vector<2x32xf32>
    %170 = arith.addf %166, %169 : vector<2x32xf32>
    %171 = vector.extract_strided_slice %163 {offsets = [0, 96], sizes = [2, 32], strides = [1, 1]} : vector<2x128xf32> to vector<2x32xf32>
    %172 = math.tanh %170 : vector<2x32xf32>
    %173 = arith.mulf %171, %172 : vector<2x32xf32>
    %c160 = arith.constant 160 : index
    %c0_46 = arith.constant 0 : index
    %174 = vector.load %arg4[%c160, %c0_46] : memref<257x18xf32, #tpu.memory_space<vmem>>, vector<32x18xf32>
    %cst_47 = arith.constant dense<0.000000e+00> : vector<2x18xf32>
    %175 = tpu.matmul %173, %174, %cst_47 {dimension_numbers = #tpu.dot_dimension_numbers<[1], [0], [0], [1], [0, 0, 1, 1], [], []>, precision = #tpu.contract_precision<fp32>} : vector<2x32xf32>, vector<32x18xf32>, vector<2x18xf32> -> vector<2x18xf32>
    %176 = arith.addf %155, %175 : vector<2x18xf32>
    %177 = vector.extract_strided_slice %32 {offsets = [0, 384], sizes = [2, 128], strides = [1, 1]} : vector<2x512xf32> to vector<2x128xf32>
    %cst_48 = arith.constant dense<0.000000e+00> : vector<2x128xf32>
    %178 = tpu.matmul %173, %44, %cst_48 {dimension_numbers = #tpu.dot_dimension_numbers<[1], [0], [0], [1], [0, 0, 1, 1], [], []>, precision = #tpu.contract_precision<fp32>} : vector<2x32xf32>, vector<32x128xf32>, vector<2x128xf32> -> vector<2x128xf32>
    %179 = arith.addf %177, %178 : vector<2x128xf32>
    %180 = arith.negf %179 : vector<2x128xf32>
    %181 = math.exp %180 : vector<2x128xf32>
    %cst_49 = arith.constant 1.000000e+00 : f32
    %182 = vector.broadcast %cst_49 : f32 to vector<2x128xf32>
    %183 = arith.addf %182, %181 : vector<2x128xf32>
    %184 = arith.divf %182, %183 : vector<2x128xf32>
    %185 = math.tanh %179 : vector<2x128xf32>
    %186 = vector.extract_strided_slice %184 {offsets = [0, 32], sizes = [2, 32], strides = [1, 1]} : vector<2x128xf32> to vector<2x32xf32>
    %187 = arith.mulf %186, %170 : vector<2x32xf32>
    %188 = vector.extract_strided_slice %184 {offsets = [0, 0], sizes = [2, 32], strides = [1, 1]} : vector<2x128xf32> to vector<2x32xf32>
    %189 = vector.extract_strided_slice %185 {offsets = [0, 64], sizes = [2, 32], strides = [1, 1]} : vector<2x128xf32> to vector<2x32xf32>
    %190 = arith.mulf %188, %189 : vector<2x32xf32>
    %191 = arith.addf %187, %190 : vector<2x32xf32>
    %192 = vector.extract_strided_slice %184 {offsets = [0, 96], sizes = [2, 32], strides = [1, 1]} : vector<2x128xf32> to vector<2x32xf32>
    %193 = math.tanh %191 : vector<2x32xf32>
    %194 = arith.mulf %192, %193 : vector<2x32xf32>
    %c192 = arith.constant 192 : index
    %c0_50 = arith.constant 0 : index
    %195 = vector.load %arg4[%c192, %c0_50] : memref<257x18xf32, #tpu.memory_space<vmem>>, vector<32x18xf32>
    %cst_51 = arith.constant dense<0.000000e+00> : vector<2x18xf32>
    %196 = tpu.matmul %194, %195, %cst_51 {dimension_numbers = #tpu.dot_dimension_numbers<[1], [0], [0], [1], [0, 0, 1, 1], [], []>, precision = #tpu.contract_precision<fp32>} : vector<2x32xf32>, vector<32x18xf32>, vector<2x18xf32> -> vector<2x18xf32>
    %197 = arith.addf %176, %196 : vector<2x18xf32>
    %198 = vector.extract_strided_slice %43 {offsets = [0, 384], sizes = [2, 128], strides = [1, 1]} : vector<2x512xf32> to vector<2x128xf32>
    %cst_52 = arith.constant dense<0.000000e+00> : vector<2x128xf32>
    %199 = tpu.matmul %194, %44, %cst_52 {dimension_numbers = #tpu.dot_dimension_numbers<[1], [0], [0], [1], [0, 0, 1, 1], [], []>, precision = #tpu.contract_precision<fp32>} : vector<2x32xf32>, vector<32x128xf32>, vector<2x128xf32> -> vector<2x128xf32>
    %200 = arith.addf %198, %199 : vector<2x128xf32>
    %201 = arith.negf %200 : vector<2x128xf32>
    %202 = math.exp %201 : vector<2x128xf32>
    %cst_53 = arith.constant 1.000000e+00 : f32
    %203 = vector.broadcast %cst_53 : f32 to vector<2x128xf32>
    %204 = arith.addf %203, %202 : vector<2x128xf32>
    %205 = arith.divf %203, %204 : vector<2x128xf32>
    %206 = math.tanh %200 : vector<2x128xf32>
    %207 = vector.extract_strided_slice %205 {offsets = [0, 32], sizes = [2, 32], strides = [1, 1]} : vector<2x128xf32> to vector<2x32xf32>
    %208 = arith.mulf %207, %191 : vector<2x32xf32>
    %209 = vector.extract_strided_slice %205 {offsets = [0, 0], sizes = [2, 32], strides = [1, 1]} : vector<2x128xf32> to vector<2x32xf32>
    %210 = vector.extract_strided_slice %206 {offsets = [0, 64], sizes = [2, 32], strides = [1, 1]} : vector<2x128xf32> to vector<2x32xf32>
    %211 = arith.mulf %209, %210 : vector<2x32xf32>
    %212 = arith.addf %208, %211 : vector<2x32xf32>
    %213 = vector.extract_strided_slice %205 {offsets = [0, 96], sizes = [2, 32], strides = [1, 1]} : vector<2x128xf32> to vector<2x32xf32>
    %214 = math.tanh %212 : vector<2x32xf32>
    %215 = arith.mulf %213, %214 : vector<2x32xf32>
    %c224 = arith.constant 224 : index
    %c0_54 = arith.constant 0 : index
    %216 = vector.load %arg4[%c224, %c0_54] : memref<257x18xf32, #tpu.memory_space<vmem>>, vector<32x18xf32>
    %cst_55 = arith.constant dense<0.000000e+00> : vector<2x18xf32>
    %217 = tpu.matmul %215, %216, %cst_55 {dimension_numbers = #tpu.dot_dimension_numbers<[1], [0], [0], [1], [0, 0, 1, 1], [], []>, precision = #tpu.contract_precision<fp32>} : vector<2x32xf32>, vector<32x18xf32>, vector<2x18xf32> -> vector<2x18xf32>
    %218 = arith.addf %197, %217 : vector<2x18xf32>
    %c0_56 = arith.constant 0 : index
    %c0_57 = arith.constant 0 : index
    %219 = vector.load %arg5[%c0_56, %c0_57] : memref<2x18xf32, #tpu.memory_space<vmem>>, vector<2x18xf32>
    tpu.vector_store %arg5[%c0_56, %c0_57], %218 {strides = array<i32>} : memref<2x18xf32, #tpu.memory_space<vmem>>, vector<2x18xf32>,
    %c0_58 = arith.constant 0 : index
    %c0_59 = arith.constant 0 : index
    %220 = vector.load %arg6[%c0_58, %c0_59] : memref<2x64xf32, #tpu.memory_space<vmem>>, vector<2x32xf32>
    tpu.vector_store %arg6[%c0_58, %c0_59], %215 {strides = array<i32>} : memref<2x64xf32, #tpu.memory_space<vmem>>, vector<2x32xf32>,
    %c0_60 = arith.constant 0 : index
    %c32_61 = arith.constant 32 : index
    %221 = vector.load %arg6[%c0_60, %c32_61] : memref<2x64xf32, #tpu.memory_space<vmem>>, vector<2x32xf32>
    tpu.vector_store %arg6[%c0_60, %c32_61], %212 {strides = array<i32>} : memref<2x64xf32, #tpu.memory_space<vmem>>, vector<2x32xf32>,
    return
  }
}

</mosaic_0001>

<bundles_post_ra>
// kernel: _lambda_.1
= control target key start
LH: loop header
LB: loop body
LE: loop exit
PB: predicated region body
PF: predicated region fallthrough
CT: control target
= control target key end

     0   :  { %vm119_vm0 = vcmask 1043456   ;;  %v32_v0 = vlaneseq  ;;  %v14884_v3 = vmov 1983009808   ;;  %vm62_vm1 = vcmask 1040384   ;;  %s14889_s23 = smov 32   ;;  %s16385_s1 = inlined_call_operand.vmem [shape: f32[13,32], index: 1, kind: input, shape index: {}]   ;;  %s16386_s0 = inlined_call_operand.vmem [shape: f32[2,8,4], index: 0, kind: input, shape index: {}]   ;;  %s16387_s2 = inlined_call_operand.vmem [shape: f32[33,512], index: 2, kind: input, shape index: {}]   ;;  %s16388_s3 = inlined_call_operand.vmem [shape: f32[32,128], index: 3, kind: input, shape index: {}]   ;;  %s16389_s4 = inlined_call_operand.vmem [shape: f32[257,18], index: 4, kind: input, shape index: {}]   ;;  %s16390_s6 = inlined_call_operand.vmem [shape: f32[2,64], index: 6, kind: output, shape index: {1}]   ;;  %s16391_s5 = inlined_call_operand.vmem [shape: f32[2,18], index: 5, kind: output, shape index: {0}]  }
   0x1   :  { %v25_v1 = vld [vmem:[%s16385_s1 + $0x4] sm:$0xf]  ;;  %v1166_v2 = vld [vmem:[%s16385_s1 + $0x8] sm:$0xf]  ;;  %v30_v4 = vunpack.c.l.s4 %v14884_v3  ;;  %vm63_vm2 = vcmask 1042434   ;;  %vm65_vm4 = vcmask 1044484  }
   0x2   :  { %v121_v5 = vsel %vm119_vm0, %v25_v1, 0  ;;  %v14933_v6 = vsel %vm119_vm0, %v1166_v2, 0  ;;  %v22_v7 = vld [vmem:[%s16386_s0] sm:$0xff]  ;;  %v23_v8 = vld [vmem:[%s16386_s0 + $0x8] sm:$0xff]  ;;  %v14941_v9 = vshrl.u32 %v32_v0, 7  ;;  %vm64_vm3 = vmor %vm62_vm1, %vm63_vm2  ;;  %vm67_vm5 = vcmask 1046534  }
   0x3   :  { %v14943_v10 = vand.u32 4294901760, %v121_v5  ;;  %v14946_v11 = vand.u32 4294901760, %v14933_v6  ;;  %v28_v12 = vcombine.high %v22_v7, %v22_v7  ;;  %v31_v13 = vunpack.c.0.s8 %v30_v4  ;;  %vm66_vm6 = vmor %vm64_vm3, %vm65_vm4 }
   0x4   :  { %v45_v15 = vcombine.high %v23_v8, %v23_v8  ;;  %vm14985_vm7 = vmor %vm66_vm6, %vm67_vm5  ;;  %vm114_vm8 = vcmask 31744   ;;  %vm1825_vm9 = vcmask 1041409   ;;  %vm1827_vm10 = vcmask 261120  }
   0x5   :  { %v14949_v14 = vsub.f32 %v121_v5, %v14943_v10  ;;  %12643 = vmatprep.subr.mxu1 %v14943_v10  ;;  %v14953_v16 = vsub.s32 %v31_v13, %v14941_v9  ;;  %v1287_v3 = vsub.f32 %v14933_v6, %v14946_v11  ;;  %vm14887_vm11 = vmmov 0  }
   0x6   :  { %12644 = vmatpush3.msra.mxu1 %v14943_v10  ;;  %vm12081_vm12 = vcmask 254976   ;;  %vm12083_vm13 = vcmask 517376   ;;  %vm12078_vm14 = vcmask 140288  }
   0x7   :  { %v14957_v17 = vand.u32 4294901760, %v14949_v14  ;;  %12703 = vmatprep.subr.mxu1 %v14946_v11  ;;  %v14961_v18 = vrot.slane %v22_v7, %v14953_v16  ;;  %v14964_v19 = vrot.slane %v28_v12, %v14953_v16  ;;  %v14967_v20 = vrot.slane %v23_v8, %v14953_v16 }
   0x8   :  { %v14970_v21 = vrot.slane %v45_v15, %v14953_v16 }
   0x9   :  { %v213_v22 = vsub.f32 %v14949_v14, %v14957_v17  ;;  %v14976_v23 = vcombine.high %v14961_v18, %v14961_v18  ;;  %v44_v24 = vcombine.high %v14964_v19, %v14964_v19  ;;  %v14982_v25 = vcombine.high %v14967_v20, %v14967_v20 }
   0xa   :  { %v12093_v26 = vrot.slane %v14961_v18, 9  ;;  %v74_v29 = vrot.slane %v14964_v19, 7  ;;  %v12094_v30 = vrot.slane %v14967_v20, 9  ;;  %v61_v31 = vcombine.high %v14970_v21, %v14970_v21 }
   0xb   :  { %v214_v27 = vand.u32 4294901760, %v213_v22  ;;  %v71_v32 = vrot.slane %v14976_v23, 7  ;;  %v77_v33 = vrot.slane %v44_v24, 7  ;;  %v81_v34 = vrot.slane %v14982_v25, 7 }
   0xc   :  { %v84_v35 = vrot.slane %v14970_v21, 7  ;;  %v76_v36 = vrot.slane %v74_v29, 2  ;;  %v87_v37 = vrot.slane %v61_v31, 7  ;;  %v1167_v38 = vcombine.low %v14976_v23, %v14964_v19 }
   0xd   :  { %12648 = vmatprep.subr.mxu0 %v214_v27  ;;  %v12095_v39 = vcombine.high %v14964_v19, %v14967_v20  ;;  %v72_v40 = vsel %vm14985_vm7, %v12093_v26, %v71_v32  ;;  %v73_v41 = vrot.slane %v71_v32, 2  ;;  %v82_v42 = vsel %vm14985_vm7, %v12094_v30, %v81_v34 }
   0xe   :  { %12649 = vmatpush3.msra.mxu0 %v214_v27  ;;  %v83_v43 = vrot.slane %v81_v34, 2  ;;  %v78_v44 = vsel %vm14985_vm7, %v76_v36, %v77_v33  ;;  %v86_v45 = vrot.slane %v84_v35, 2  ;;  %v1175_v46 = vrot.slane %v1167_v38, %v14953_v16  ;;  %v24_v36 = vld [vmem:[%s16385_s1] sm:$0xf] }
   0xf   :  { %12653 = vmatprep.subr.mxu0 %v14949_v14  ;;  %v1182_v47 = vrot.slane %v12095_v39, %v14953_v16  ;;  %v75_v48 = vsel %vm14985_vm7, %v73_v41, %v74_v29  ;;  %v90_v49 = vcombine.low %v78_v44, %v82_v42  ;;  %v1184_v51 = vcombine.low %v14970_v21, %v61_v31 }
  0x10   :  { %v85_v50 = vsel %vm14985_vm7, %v83_v43, %v84_v35  ;;  %v89_v52 = vcombine.low %v72_v40, %v75_v48  ;;  %v88_v53 = vsel %vm14985_vm7, %v86_v45, %v87_v37  ;;  %v612_v15 = vcombine.low %v14961_v18, %v14976_v23 }
  0x11   :  { %v1183_v54 = vcombine.low %v1175_v46, %v1182_v47  ;;  %v104_v55 = vrot.slane %v90_v49, %v14953_v16  ;;  %v106_v56 = vcombine.low %v85_v50, %v88_v53  ;;  %v1191_v57 = vrot.slane %v1184_v51, %v14953_v16 }
  0x12   :  { %v97_v58 = vrot.slane %v89_v52, %v14953_v16  ;;  %v613_v22 = vcombine.low %v14964_v19, %v14967_v20  ;;  %v15048_v24 = vand.u32 4294901760, %v1287_v3  ;;  %v620_v19 = vrot.slane %v612_v15, %v14953_v16 }
  0x13   :  { %v1192_v59 = vsel %vm114_vm8, %v1183_v54, 0  ;;  %v113_v60 = vrot.slane %v106_v56, %v14953_v16  ;;  %v1194_v62 = vsel %vm114_vm8, %v1191_v57, 0  ;;  %v629_v38 = vcombine.low %v14982_v25, %v14970_v21  ;;  %v15114_v54 = vld [vmem:[%s16387_s2 + $0x38] sm:$0xff]  ;;  %v15121_v57 = vld [vmem:[%s16387_s2 + $0x10] sm:$0xff] }
  0x14   :  { %v15021_v61 = vand.u32 4294901760, %v1192_v59  ;;  %v105_v63 = vcombine.low %v97_v58, %v104_v55  ;;  %v15024_v0 = vand.u32 4294901760, %v1194_v62  ;;  %v627_v20 = vrot.slane %v613_v22, %v14953_v16  ;;  %v15126_v58 = vld [vmem:[%s16387_s2 + $0x30] sm:$0xff] }
  0x15   :  { %v117_v1 = vsel %vm114_vm8, %v113_v60, 0  ;;  %v1289_v30 = vsub.f32 %v1287_v3, %v15048_v24  ;;  %v642_v40 = vsel %vm119_vm0, %v24_v36, 0  ;;  %v636_v42 = vrot.slane %v629_v38, %v14953_v16 }
  0x16   :  { %v15028_v2 = vsub.f32 %v1192_v59, %v15021_v61  ;;  %v115_v4 = vsel %vm114_vm8, %v105_v63, 0  ;;  %v15033_v5 = vand.u32 4294901760, %v117_v1  ;;  %v15036_v7 = vsub.f32 %v1194_v62, %v15024_v0 }
  0x17   :  { %v15038_v8 = vand.u32 4294901760, %v115_v4  ;;  %v628_v34 = vcombine.low %v620_v19, %v627_v20  ;;  %v1290_v35 = vand.u32 4294901760, %v1289_v30  ;;  %v645_v43 = vand.u32 4294901760, %v642_v40 }
  0x18   :  { %v200_v12 = vsub.f32 %v117_v1, %v15033_v5  ;;  %v1267_v13 = vand.u32 4294901760, %v15028_v2  ;;  %v1277_v27 = vand.u32 4294901760, %v15036_v7  ;;  %v639_v25 = vsel %vm114_vm8, %v636_v42, 0  ;;  %v1775_v1 = vld [vmem:[%s16387_s2 + $0x58] sm:$0xff] }
  0x19   :  { %12650 = vmatprep.mubr.f32.mxu0 %v15038_v8  ;;  %v190_v6 = vsub.f32 %v115_v4, %v15038_v8  ;;  %v637_v39 = vsel %vm114_vm8, %v628_v34, 0  ;;  %v732_v44 = vsub.f32 %v642_v40, %v645_v43  ;;  %v720_v45 = vand.u32 4294901760, %v639_v25 }
  0x1a   :  { %12651 = vmatmul.mubr.f32.vlgmr.msra.gmra.mrb[0].mxu0 %v15033_v5  ;;  %v201_v26 = vand.u32 4294901760, %v200_v12  ;;  %v1268_v18 = vsub.f32 %v15028_v2, %v1267_v13  ;;  %v15074_v41 = vand.u32 4294901760, %v637_v39  ;;  %v2377_v56 = vand.u32 4294901760, %v15114_v54 }
  0x1b   :  { %12654 = vmatpush3.msra.mxu0 %v14949_v14  ;;  %v191_v28 = vand.u32 4294901760, %v190_v6  ;;  %12655 = vmatprep.mubr.f32.mxu0 %v190_v6  ;;  %v1278_v14 = vsub.f32 %v15036_v7, %v1277_v27  ;;  %v733_v47 = vand.u32 4294901760, %v732_v44  ;;  %v2375_v59 = vand.u32 4294901760, %v15121_v57 }
  0x1c   :  { %v202_v29 = vsub.f32 %v200_v12, %v201_v26  ;;  %12658 = vmatprep.subr.mxu0 %v14943_v10  ;;  %v1269_v33 = vand.u32 4294901760, %v1268_v18  ;;  %v711_v21 = vsub.f32 %v637_v39, %v15074_v41  ;;  %v2379_v60 = vand.u32 4294901760, %v15126_v58 }
  0x1d   :  { %v192_v23 = vsub.f32 %v190_v6, %v191_v28  ;;  %v1279_v37 = vand.u32 4294901760, %v1278_v14  ;;  %v734_v49 = vsub.f32 %v732_v44, %v733_v47  ;;  %v15138_v62 = vsub.f32 %v15114_v54, %v2377_v56  ;;  %v1777_v54 = vld [vmem:[%s16387_s2 + $0x68] sm:$0xff] }
  0x1e   :  { %v203_v31 = vand.u32 4294901760, %v202_v29  ;;  %v712_v46 = vand.u32 4294901760, %v711_v21  ;;  %v15143_v63 = vsub.f32 %v15121_v57, %v2375_v59 }
  0x1f   :  { %v193_v32 = vand.u32 4294901760, %v192_v23  ;;  %v735_v52 = vand.u32 4294901760, %v734_v49  ;;  %v16400_v4 = vand.u32 4294901760, %v15138_v62  ;;  %v1764_v49 = vld [vmem:[%s16387_s2] sm:$0xff] }
  0x20   :  { %v713_v48 = vsub.f32 %v711_v21, %v712_v46 }
  0x21   :  { %12645 = vmatprep.mubr.f32.mxu1 %v193_v32 }
  0x22   :  { %12646 = vmatmul.mubr.f32.vlgmr.msra.gmra.mrb[0].mxu1 %v203_v31  ;;  %12656 = vmatmul.mubr.f32.vlgmr.msra.gmra.mrb[0].mxu0 %v200_v12  ;;  %v714_v51 = vand.u32 4294901760, %v713_v48  ;;  %v16399_v12 = vand.u32 4294901760, %v15143_v63 }
  0x23   :  { %12659 = vmatpush3.msra.mxu0 %v14943_v10  ;;  %12704 = vmatpush3.msra.mxu1 %v14946_v11 }
  0x24   :  { %12705 = vmatprep.mubr.f32.mxu1 %v1269_v33  ;;  %12660 = vmatprep.mubr.f32.mxu0 %v191_v28  ;;  %v2466_v28 = vsub.f32 %v15143_v63, %v16399_v12 }
  0x25   :  { %12663 = vmatprep.subr.mxu0 %v14957_v17  ;;  %12708 = vmatprep.subr.mxu1 %v1290_v35 }
  0x26   :  { %12706 = vmatmul.mubr.f32.vlgmr.msra.gmra.mrb[2].mxu1 %v1279_v37  ;;  %v2467_v14 = vand.u32 4294901760, %v2466_v28 }
  0x27   :  { %12709 = vmatpush3.msra.mxu1 %v1290_v35  ;;  %12710 = vmatprep.mubr.f32.mxu1 %v15021_v61 }
  0x28   :  { %12713 = vmatprep.subr.mxu1 %v1287_v3 }
  0x2a   :  { %12661 = vmatmul.mubr.f32.vlgmr.msra.gmra.mrb[0].mxu0 %v201_v26 }
  0x2b   :  { %12664 = vmatpush3.msra.mxu0 %v14957_v17  ;;  %12665 = vmatprep.mubr.f32.mxu0 %v15038_v8  ;;  %v721_v17 = vsub.f32 %v639_v25, %v720_v45 }
  0x2c   :  { %12668 = vmatprep.subr.mxu0 %v14943_v10 }
  0x2d   :  { %v722_v50 = vand.u32 4294901760, %v721_v17 }
  0x2e   :  { %12711 = vmatmul.mubr.f32.vlgmr.msra.gmra.mrb[2].mxu1 %v15024_v0 }
  0x2f   :  { %12714 = vmatpush3.msra.mxu1 %v1287_v3  ;;  %12715 = vmatprep.mubr.f32.mxu1 %v15028_v2  ;;  %v1779_v2 = vld [vmem:[%s16387_s2 + $0x78] sm:$0xff] }
  0x30   :  { %12718 = vmatprep.subr.mxu1 %v14946_v11  ;;  %v2385_v15 = vand.u32 4294901760, %v1779_v2 }
  0x32   :  { %12666 = vmatmul.mubr.f32.vlgmr.msra.gmra.mrb[0].mxu0 %v15033_v5  ;;  %v15186_v18 = vsub.f32 %v1779_v2, %v2385_v15 }
  0x33   :  { %12669 = vmatpush3.msra.mxu0 %v14943_v10  ;;  %12670 = vmatprep.mubr.f32.mxu0 %v15038_v8  ;;  %v723_v10 = vsub.f32 %v721_v17, %v722_v50  ;;  %v15166_v8 = vld [vmem:[%s16387_s2 + $0x70] sm:$0xff] }
  0x34   :  { %12673 = vmatprep.subr.mxu0 %v645_v43  ;;  %v16396_v33 = vand.u32 4294901760, %v15186_v18 }
  0x35   :  { %v724_v53 = vand.u32 4294901760, %v723_v10 }
  0x36   :  { %12716 = vmatmul.mubr.f32.vlgmr.msra.gmra.mrb[2].mxu1 %v15036_v7  ;;  %v15161_v7 = vld [vmem:[%s16387_s2 + $0x50] sm:$0xff]  ;;  %v2496_v39 = vsub.f32 %v15186_v18, %v16396_v33 }
  0x37   :  { %12719 = vmatpush3.msra.mxu1 %v14946_v11  ;;  %12720 = vmatprep.mubr.f32.mxu1 %v1267_v13  ;;  %v2383_v22 = vand.u32 4294901760, %v15161_v7 }
  0x38   :  { %12723 = vmatprep.subr.mxu1 %v15048_v24 }
  0x39   :  { %v15191_v19 = vsub.f32 %v15161_v7, %v2383_v22  ;;  %v16406_v7 = vand.u32 4294901760, %v15143_v63 }
  0x3a   :  { %12671 = vmatmul.mubr.f32.vlgmr.msra.gmra.mrb[0].mxu0 %v15033_v5  ;;  %v2381_v5 = vand.u32 4294901760, %v1775_v1 }
  0x3b   :  { %12674 = vmatpush3.msra.mxu0 %v645_v43  ;;  %12675 = vmatprep.mubr.f32.mxu0 %v714_v51  ;;  %v16395_v36 = vand.u32 4294901760, %v15191_v19  ;;  %v1832_v51 = vand.u32 4294901760, %v1764_v49 }
  0x3c   :  { %12678 = vmatprep.subr.mxu0 %v735_v52  ;;  %v15177_v26 = vsub.f32 %v1775_v1, %v2381_v5  ;;  %v15250_v2 = vpack.c.bf16 %v2385_v15, %v2381_v5  ;;  %v1842_v15 = vand.u32 4294901760, %v1777_v54 }
  0x3e   :  { %12721 = vmatmul.mubr.f32.vlgmr.msra.gmra.mrb[2].mxu1 %v1277_v27  ;;  %v2387_v27 = vand.u32 4294901760, %v15166_v8  ;;  %v16397_v30 = vand.u32 4294901760, %v15177_v26 }
  0x3f   :  { %12724 = vmatpush3.msra.mxu1 %v15048_v24  ;;  %12725 = vmatprep.mubr.f32.mxu1 %v15021_v61  ;;  %v2472_v24 = vsub.f32 %v15138_v62, %v16400_v4 }
  0x40   :  { %12728 = vmatprep.subr.mxu1 %v14946_v11  ;;  %v15197_v31 = vsub.f32 %v15166_v8, %v2387_v27  ;;  %v2484_v35 = vsub.f32 %v15177_v26, %v16397_v30  ;;  %v15312_v57 = vpack.c.bf16 %v2387_v27, %v2383_v22 }
  0x41   :  { %v2473_v23 = vand.u32 4294901760, %v2472_v24  ;;  %v16392_v24 = vmov 0.0  }
  0x42   :  { %12676 = vmatmul.mubr.f32.vlgmr.msra.gmra.mrb[0].mxu0 %v724_v53  ;;  %v16394_v37 = vand.u32 4294901760, %v15197_v31  ;;  %v2485_v40 = vand.u32 4294901760, %v2484_v35 }
  0x43   :  { %12679 = vmatpush3.msra.mxu0 %v735_v52  ;;  %12680 = vmatprep.mubr.f32.mxu0 %v15074_v41 }
  0x44   :  { %12683 = vmatprep.subr.mxu0 %v732_v44  ;;  %v2502_v42 = vsub.f32 %v15197_v31, %v16394_v37 }
  0x46   :  { %12726 = vmatmul.mubr.f32.vlgmr.msra.gmra.mrb[2].mxu1 %v15024_v0  ;;  %v2503_v25 = vand.u32 4294901760, %v2502_v42  ;;  %v15288_v42 = vpack.c.bf16 %v15197_v31, %v15191_v19 }
  0x47   :  { %12729 = vmatpush3.msra.mxu1 %v14946_v11  ;;  %12730 = vmatprep.mubr.f32.mxu1 %v15021_v61  ;;  %v15109_v11 = vld [vmem:[%s16387_s2 + $0x18] sm:$0xff] }
  0x48   :  { %v2373_v55 = vand.u32 4294901760, %v15109_v11 }
  0x4a   :  { %12681 = vmatmul.mubr.f32.vlgmr.msra.gmra.mrb[0].mxu0 %v720_v45  ;;  %v15133_v61 = vsub.f32 %v15109_v11, %v2373_v55  ;;  %v15248_v1 = vpack.c.bf16 %v2377_v56, %v2373_v55  ;;  %v1773_v11 = vld [vmem:[%s16387_s2 + $0x48] sm:$0xff] }
  0x4b   :  { %12684 = vmatpush3.msra.mxu0 %v732_v44  ;;  %12685 = vmatprep.mubr.f32.mxu0 %v711_v21  ;;  %v1838_v5 = vand.u32 4294901760, %v1773_v11 }
  0x4c   :  { %12688 = vmatprep.subr.mxu0 %v645_v43  ;;  %v2459_v3 = vand.u32 4294901760, %v15133_v61  ;;  %v15242_v53 = vpack.c.bf16 %v15138_v62, %v15133_v61 }
  0x4e   :  { %12731 = vmatmul.mubr.f32.vlgmr.msra.gmra.mrb[2].mxu1 %v15024_v0  ;;  %v15148_v0 = vsub.f32 %v15126_v58, %v2379_v60  ;;  %v2460_v6 = vsub.f32 %v15133_v61, %v2459_v3 }
  0x4f   :  { %1902 = vmatprep.mubr.f32.mxu1 %v16392_v24 }
  0x50   :  { %v16398_v13 = vand.u32 4294901760, %v15148_v0  ;;  %v2461_v20 = vand.u32 4294901760, %v2460_v6  ;;  %v15258_v28 = vpack.c.bf16 %v15148_v0, %v15143_v63  ;;  %v16407_v8 = vand.u32 4294901760, %v15148_v0 }
  0x52   :  { %12686 = vmatmul.mubr.f32.vlgmr.msra.gmra.mrb[0].mxu0 %v721_v17  ;;  %v2478_v29 = vsub.f32 %v15148_v0, %v16398_v13  ;;  %v15200_v34 = vpack.c.bf16 %v2473_v23, %v2461_v20  ;;  %v1776_v20 = vld [vmem:[%s16387_s2 + $0x60] sm:$0xff]  ;;  %v1921_v23 = vsub.f32 %v1764_v49, %v1832_v51  ;;  %v15334_v22 = vpack.c.bf16 %v16407_v8, %v16406_v7 }
  0x53   :  { %12689 = vmatpush3.msra.mxu0 %v645_v43  ;;  %12690 = vmatprep.mubr.f32.mxu0 %v712_v46  ;;  %v1769_v46 = vld [vmem:[%s16387_s2 + $0x28] sm:$0xff] }
  0x54   :  { %12693 = vmatprep.subr.mxu0 %v733_v47  ;;  %v2479_v32 = vand.u32 4294901760, %v2478_v29  ;;  %v1834_v48 = vand.u32 4294901760, %v1769_v46  ;;  %v1772_v29 = vld [vmem:[%s16387_s2 + $0x40] sm:$0xff] }
  0x55   :  { %v1840_v35 = vand.u32 4294901760, %v1772_v29 }
  0x56   :  { %v15207_v38 = vpack.c.bf16 %v2479_v32, %v2467_v14  ;;  %v15268_v56 = vsub.f32 %v1769_v46, %v1834_v48  ;;  %v15280_v32 = vpack.c.bf16 %v15186_v18, %v15177_v26 }
  0x5a   :  { %12691 = vmatmul.mubr.f32.vlgmr.msra.gmra.mrb[0].mxu0 %v722_v50  ;;  %v1768_v50 = vld [vmem:[%s16387_s2 + $0x20] sm:$0xff] }
  0x5b   :  { %12694 = vmatpush3.msra.mxu0 %v733_v47  ;;  %12695 = vmatprep.mubr.f32.mxu0 %v15074_v41  ;;  %v1836_v52 = vand.u32 4294901760, %v1768_v50 }
  0x5c   :  { %12698 = vmatprep.subr.mxu0 %v645_v43 }
  0x5d   :  { %v15252_v6 = vpack.c.bf16 %v1836_v52, %v1832_v51  ;;  %v1933_v14 = vsub.f32 %v1768_v50, %v1836_v52  ;;  %v1951_v50 = vsub.f32 %v1777_v54, %v1842_v15  ;;  %v1945_v51 = vsub.f32 %v1772_v29, %v1840_v35 }
  0x5f   :  { %v1934_v46 = vand.u32 4294901760, %v1933_v14  ;;  %v1952_v13 = vand.u32 4294901760, %v1951_v50  ;;  %v1946_v12 = vand.u32 4294901760, %v1945_v51 }
  0x61   :  { %v1953_v29 = vsub.f32 %v1951_v50, %v1952_v13 }
  0x62   :  { %12696 = vmatmul.mubr.f32.vlgmr.msra.gmra.mrb[0].mxu0 %v720_v45 }
  0x63   :  { %12699 = vmatpush3.msra.mxu0 %v645_v43  ;;  %12700 = vmatprep.mubr.f32.mxu0 %v15074_v41  ;;  %v2490_v41 = vsub.f32 %v15191_v19, %v16395_v36  ;;  %v2497_v43 = vand.u32 4294901760, %v2496_v39  ;;  %v1844_v39 = vand.u32 4294901760, %v1776_v20 }
  0x64   :  { %13846 = vmatprep.subr.bf16.mxu0 %v15200_v34 }
  0x65   :  { %v2491_v21 = vand.u32 4294901760, %v2490_v41  ;;  %v15220_v44 = vpack.c.bf16 %v2497_v43, %v2485_v40  ;;  %v15284_v41 = vpack.c.bf16 %v1842_v15, %v1838_v5  ;;  %v1928_v43 = vand.u32 4294901760, %v15268_v56 }
  0x66   :  { %v1957_v36 = vsub.f32 %v1776_v20, %v1844_v39 }
  0x67   :  { %v15228_v47 = vpack.c.bf16 %v2503_v25, %v2491_v21  ;;  %v1922_v21 = vand.u32 4294901760, %v1921_v23  ;;  %v15291_v25 = vpack.c.bf16 %v1844_v39, %v1840_v35  ;;  %v1947_v35 = vsub.f32 %v1945_v51, %v1946_v12 }
  0x68   :  { %v1958_v54 = vand.u32 4294901760, %v1957_v36  ;;  %v15344_v61 = vpack.c.bf16 %v1957_v36, %v1945_v51 }
  0x69   :  { %v1923_v49 = vsub.f32 %v1921_v23, %v1922_v21 }
  0x6a   :  { %12701 = vmatmul.mubr.f32.vlgmr.msra.gmra.mrb[0].mxu0 %v720_v45  ;;  %v1765_v45 = vld [vmem:[%s16387_s2 + $0x8] sm:$0xff]  ;;  %v1959_v39 = vsub.f32 %v1957_v36, %v1958_v54 }
  0x6b   :  { %13848 = vmatpush1.bf16.msra.mxu0 %v15207_v38  ;;  %v1830_v17 = vand.u32 4294901760, %v1765_v45  ;;  %2561 = vmatprep.mubr.f32.mxu0 %v16392_v24  ;;  %v1935_v24 = vsub.f32 %v1933_v14, %v1934_v46  ;;  %v1924_v30 = vand.u32 4294901760, %v1923_v49 }
  0x6c   :  { %13850 = vmatprep.subr.bf16.mxu0 %v15220_v44  ;;  %v1960_v49 = vand.u32 4294901760, %v1959_v39 }
  0x6d   :  { %v15238_v10 = vpack.c.bf16 %v1834_v48, %v1830_v17  ;;  %v15266_v55 = vsub.f32 %v1765_v45, %v1830_v17  ;;  %v1939_v17 = vsub.f32 %v1773_v11, %v1838_v5  ;;  %v1929_v48 = vsub.f32 %v15268_v56, %v1928_v43 }
  0x6e   :  { %v1936_v4 = vand.u32 4294901760, %v1935_v24  ;;  %v15301_v11 = vpack.c.bf16 %v2379_v60, %v2375_v59  ;;  %v1948_v24 = vand.u32 4294901760, %v1947_v35 }
  0x6f   :  { %13852 = vmatpush1.bf16.msra.mxu0 %v15228_v47  ;;  %13790 = vmatprep.subr.bf16.mxu1 %v15238_v10  ;;  %v1916_v40 = vand.u32 4294901760, %v15266_v55  ;;  %v1940_v37 = vand.u32 4294901760, %v1939_v17  ;;  %v1930_v33 = vand.u32 4294901760, %v1929_v48  ;;  %v1954_v48 = vand.u32 4294901760, %v1953_v29 }
  0x70   :  { %13854 = vmatprep.subr.bf16.mxu0 %v15242_v53  ;;  %13792 = vmatpush1.bf16.msra.mxu1 %v15252_v6  ;;  %v15316_v59 = vpack.c.bf16 %v1960_v49, %v1948_v24  ;;  %v15320_v60 = vpack.c.bf16 %v15268_v56, %v15266_v55  ;;  %v15336_v27 = vpack.c.bf16 %v1951_v50, %v1939_v17 }
  0x71   :  { %v1917_v45 = vsub.f32 %v15266_v55, %v1916_v40  ;;  %13794 = vmatprep.subr.bf16.mxu1 %v15284_v41  ;;  %v1941_v5 = vsub.f32 %v1939_v17, %v1940_v37  ;;  %v16409_v55 = vand.u32 4294901760, %v15186_v18  ;;  %v15354_v17 = vpack.c.bf16 %v1934_v46, %v1922_v21 }
  0x72   :  { %v15356_v50 = vpack.c.bf16 %v1952_v13, %v1940_v37 }
  0x73   :  { %v1918_v52 = vand.u32 4294901760, %v1917_v45  ;;  %v15305_v45 = vpack.c.bf16 %v1936_v4, %v1924_v30  ;;  %v1942_v20 = vand.u32 4294901760, %v1941_v5  ;;  %v16405_v4 = vand.u32 4294901760, %v15138_v62 }
  0x74   :  { %13796 = vmatpush1.bf16.msra.mxu1 %v15291_v25  ;;  %v16410_v62 = vand.u32 4294901760, %v15191_v19  ;;  %v12096_v19 = vld [vmem:[%s16385_s1 + $0xc] ss:$0 sm:$0xff] }
  0x75   :  { %v15303_v15 = vpack.c.bf16 %v1930_v33, %v1918_v52  ;;  %v15314_v58 = vpack.c.bf16 %v1954_v48, %v1942_v20  ;;  %v15326_v30 = vpack.c.bf16 %v16405_v4, %v2459_v3  ;;  %v15328_v33 = vpack.c.bf16 %v1933_v14, %v1921_v23 }
  0x76   :  { %v16408_v52 = vand.u32 4294901760, %v15177_v26  ;;  %v16411_v3 = vand.u32 4294901760, %v15197_v31  ;;  %v15352_v14 = vpack.c.bf16 %v1928_v43, %v1916_v40  ;;  %v15358_v26 = vpack.c.bf16 %v1958_v54, %v1946_v12 }
  0x77   :  { %16404 = vst [vmem:[#allocation2_spill] sm:$0xff] %v15303_v15  ;;  %13798 = vmatprep.subr.bf16.mxu1 %v15303_v15  ;;  %v1740_v51 = vrot.slane %v12096_v19, %v14953_v16  ;;  %v1733_v43 = vcombine.high %v12096_v19, %v12096_v19 }
  0x78   :  { %v15342_v56 = vpack.c.bf16 %v16409_v55, %v16408_v52  ;;  %v15350_v23 = vpack.c.bf16 %v16411_v3, %v16410_v62 }
  0x79   :  { %v1748_v54 = vcombine.high %v1740_v51, %v1740_v51  ;;  %v1747_v49 = vrot.slane %v1733_v43, %v14953_v16 }
  0xf5   :  { %v12647_v63 = vpop.f32.mrb[0].mxu1 }
  0xf6   :  { %v195_v0 = vpop.f32.mrb[1].mxu1 }
 0x121   :  { %v12732_v18 = vpop.f32.mrb[2].mxu1 }
 0x122   :  { %v1678_v5 = vpop.f32.mrb[3].mxu1  ;;  %v1713_v29 = vrot.slane %v12732_v18, %v14953_v16 }
 0x123   :  { %v1690_v36 = vcombine.high %v1678_v5, %v1678_v5  ;;  %v1697_v13 = vrot.slane %v1678_v5, %v14953_v16 }
 0x124   :  { %v1714_v39 = vcombine.high %v1713_v29, %v1713_v29 }
 0x125   :  { %v1704_v12 = vrot.slane %v1690_v36, %v14953_v16  ;;  %v1705_v4 = vcombine.high %v1697_v13, %v1697_v13 }
 0x127   :  { %v1706_v55 = vcombine.high %v1704_v12, %v1704_v12 }
 0x13d   :  { %v12702_v31 = vpop.f32.mrb[0].mxu0 }
 0x13e   :  { %v14557_v40 = vadd.f32 %v12702_v31, %v12647_v63  ;;  %v1123_v21 = vpop.f32.mrb[1].mxu0 }
 0x13f   :  { %v14558_v37 = vadd.f32 %v1123_v21, %v195_v0 }
 0x140   :  { %v1158_v46 = vrot.slane %v14557_v40, %v14953_v16 }
 0x141   :  { %v1135_v35 = vcombine.high %v14558_v37, %v14558_v37  ;;  %v1142_v20 = vrot.slane %v14558_v37, %v14953_v16 }
 0x142   :  { %v1159_v48 = vcombine.high %v1158_v46, %v1158_v46  ;;  %v1725_v24 = vadd.f32 %v1713_v29, %v1158_v46 }
 0x143   :  { %v1149_v7 = vrot.slane %v1135_v35, %v14953_v16  ;;  %v1150_v8 = vcombine.high %v1142_v20, %v1142_v20  ;;  %v1721_v52 = vadd.f32 %v1697_v13, %v1142_v20 }
 0x144   :  { %v1726_v62 = vadd.f32 %v1714_v39, %v1159_v48  ;;  %v1756_v5 = vadd.f32 %v1748_v54, %v1725_v24  ;;  %v15372_v48 = vsub.s32 1, %v14941_v9 }
 0x145   :  { %v1151_v3 = vcombine.high %v1149_v7, %v1149_v7  ;;  %v1722_v63 = vadd.f32 %v1705_v4, %v1150_v8  ;;  %v1723_v0 = vadd.f32 %v1704_v12, %v1149_v7  ;;  %v1752_v18 = vadd.f32 %v1740_v51, %v1721_v52 }
 0x146   :  { %v1757_v19 = vadd.f32 %v1747_v49, %v1726_v62  ;;  %v1762_v15 = vmax.f32 %v1756_v5, 0.0  ;;  %v15375_v8 = vsub.s32 0, %v14941_v9 }
 0x147   :  { %v1724_v36 = vadd.f32 %v1706_v55, %v1151_v3  ;;  %v1753_v31 = vadd.f32 %v1748_v54, %v1722_v63  ;;  %v1754_v40 = vadd.f32 %v1747_v49, %v1723_v0  ;;  %v1758_v21 = vmax.f32 %v1752_v18, 0.0 }
 0x148   :  { %v1763_v29 = vmax.f32 %v1757_v19, 0.0 }
 0x149   :  { %v1755_v37 = vadd.f32 %v1740_v51, %v1724_v36  ;;  %v1760_v43 = vmax.f32 %v1754_v40, 0.0  ;;  %v12098_v46 = vrot.slane %v1758_v21, 9  ;;  %v1759_v35 = vmax.f32 %v1753_v31, 0.0 }
 0x14a   :  { %v2919_v16 = vrot.slane %v1763_v29, 7 }
 0x14b   :  { %v1761_v13 = vmax.f32 %v1755_v37, 0.0  ;;  %v1790_v20 = vmax.f32 %v1758_v21, %v12098_v46  ;;  %v2918_v39 = vrot.slane %v1760_v43, 7 }
 0x14c   :  { %v2923_v12 = vmax.f32 %v1762_v15, %v2919_v16 }
 0x14d   :  { %v12099_v24 = vrot.slane %v1761_v13, 9  ;;  %v1792_v4 = vmax.f32 %v1790_v20, %v1759_v35  ;;  %v2922_v7 = vmax.f32 %v1759_v35, %v2918_v39 }
 0x14e   :  { %v2925_v54 = vmax.f32 %v2923_v12, %v1763_v29 }
 0x14f   :  { %v1791_v49 = vmax.f32 %v1761_v13, %v12099_v24  ;;  %v2924_v51 = vmax.f32 %v2922_v7, %v1760_v43  ;;  %v1820_v3 = vrot.slane %v1792_v4, %v15375_v8  ;;  %v12097_v4 = vld [vmem:[%s16387_s2 + $0x80] ss:$8 sm:$0xf]  ;;  %s14888_s2 = smov 64  }
 0x150   :  { %v2935_v52 = vrot.slane %v2925_v54, %v15372_v48  ;;  %v1802_v7 = vrot.slane %v12097_v4, %v15372_v48 }
 0x151   :  { %v1793_v55 = vmax.f32 %v1791_v49, %v1762_v15  ;;  %v2931_v62 = vrot.slane %v2924_v51, %v15372_v48  ;;  %v16412_v15 = vmov 0.0   ;;  %v1805_v51 = vsub.s32 2, %v14941_v9 }
 0x153   :  { %v1824_v63 = vrot.slane %v1793_v55, %v15375_v8  ;;  %v2936_v0 = vsel %vm1825_vm9, %v2935_v52, %v2931_v62  ;;  %v1809_v55 = vsub.s32 3, %v14941_v9  ;;  %v1806_v62 = vrot.slane %v12097_v4, %v1805_v51 }
 0x154   :  { %v2937_v29 = vsel %vm1827_vm10, %v2936_v0, 0 }
 0x155   :  { %v1826_v18 = vsel %vm1825_vm9, %v1824_v63, %v1820_v3  ;;  %v15416_v37 = vand.u32 4294901760, %v2937_v29  ;;  %v1810_v3 = vrot.slane %v12097_v4, %v1809_v55 }
 0x156   :  { %v1828_v5 = vsel %vm1827_vm10, %v1826_v18, 0 }
 0x157   :  { %v15382_v19 = vand.u32 4294901760, %v1828_v5  ;;  %v15424_v43 = vsub.f32 %v2937_v29, %v15416_v37  ;;  %v1798_v29 = vrot.slane %v12097_v4, %v15375_v8 }
 0x159   :  { %2563 = vmatmul.mubr.f32.vlgmr.msra.gmra.mrb[2].mxu0 %v15382_v19  ;;  %v1904_v36 = vsub.f32 %v1828_v5, %v15382_v19  ;;  %v15433_v46 = vand.u32 4294901760, %v15424_v43 }
 0x15a   :  { %13856 = vmatpush1.bf16.msra.mxu0 %v15258_v28  ;;  %2649 = vmatprep.mubr.f32.mxu0 %v16412_v15 }
 0x15b   :  { %13858 = vmatprep.subr.bf16.mxu0 %v15280_v32  ;;  %v1905_v31 = vand.u32 4294901760, %v1904_v36  ;;  %v3015_v16 = vsub.f32 %v15424_v43, %v15433_v46 }
 0x15d   :  { %v1906_v40 = vsub.f32 %v1904_v36, %v1905_v31  ;;  %v3016_v35 = vand.u32 4294901760, %v3015_v16 }
 0x15e   :  { %13860 = vmatpush1.bf16.msra.mxu0 %v15288_v42 }
 0x15f   :  { %13862 = vmatprep.subr.bf16.mxu0 %v15248_v1  ;;  %v15391_v21 = vand.u32 4294901760, %v1906_v40 }
 0x161   :  { %1908 = vmatmul.mubr.f32.vlgmr.msra.gmra.mrb[4].mxu1 %v15391_v21  ;;  %2652 = vmatmul.mubr.f32.vlgmr.msra.gmra.mrb[2].mxu0 %v1904_v36 }
 0x162   :  { %13800 = vmatpush1.bf16.msra.mxu1 %v15305_v45  ;;  %13864 = vmatpush1.bf16.msra.mxu0 %v15301_v11 }
 0x163   :  { %13802 = vmatprep.subr.bf16.mxu1 %v15314_v58  ;;  %13866 = vmatprep.subr.bf16.mxu0 %v15250_v2 }
 0x164   :  { %2018 = vmatprep.mubr.f32.mxu1 %v16412_v15  ;;  %2730 = vmatprep.mubr.f32.mxu0 %v16412_v15 }
 0x166   :  { %13804 = vmatpush1.bf16.msra.mxu1 %v15316_v59  ;;  %13868 = vmatpush1.bf16.msra.mxu0 %v15312_v57 }
 0x167   :  { %13806 = vmatprep.subr.bf16.mxu1 %v15320_v60  ;;  %13870 = vmatprep.subr.bf16.mxu0 %v15326_v30 }
 0x169   :  { %2020 = vmatmul.mubr.f32.vlgmr.msra.gmra.mrb[4].mxu1 %v15382_v19  ;;  %2734 = vmatmul.mubr.f32.vlgmr.msra.gmra.mrb[2].mxu0 %v1905_v31 }
 0x16a   :  { %13808 = vmatpush1.bf16.msra.mxu1 %v15328_v33  ;;  %13872 = vmatpush1.bf16.msra.mxu0 %v15334_v22 }
 0x16b   :  { %13810 = vmatprep.subr.bf16.mxu1 %v15336_v27  ;;  %13874 = vmatprep.subr.bf16.mxu0 %v15342_v56 }
 0x16c   :  { %2106 = vmatprep.mubr.f32.mxu1 %v16412_v15  ;;  %2828 = vmatprep.mubr.f32.mxu0 %v16412_v15 }
 0x16e   :  { %13812 = vmatpush1.bf16.msra.mxu1 %v15344_v61  ;;  %13876 = vmatpush1.bf16.msra.mxu0 %v15350_v23 }
 0x16f   :  { %13814 = vmatprep.subr.bf16.mxu1 %v15238_v10  ;;  %13878 = vmatprep.subr.bf16.mxu0 %v15248_v1 }
 0x171   :  { %2109 = vmatmul.mubr.f32.vlgmr.msra.gmra.mrb[4].mxu1 %v1904_v36  ;;  %2830 = vmatmul.mubr.f32.vlgmr.msra.gmra.mrb[2].mxu0 %v15382_v19 }
 0x172   :  { %13816 = vmatpush1.bf16.msra.mxu1 %v15252_v6  ;;  %13880 = vmatpush1.bf16.msra.mxu0 %v15301_v11 }
 0x173   :  { %13818 = vmatprep.subr.bf16.mxu1 %v15284_v41  ;;  %13882 = vmatprep.subr.bf16.mxu0 %v15250_v2 }
 0x174   :  { %2187 = vmatprep.mubr.f32.mxu1 %v16412_v15  ;;  %2908 = vmatprep.mubr.f32.mxu0 %v16412_v15 }
 0x176   :  { %13820 = vmatpush1.bf16.msra.mxu1 %v15291_v25  ;;  %13884 = vmatpush1.bf16.msra.mxu0 %v15312_v57 }
 0x177   :  { %13822 = vmatprep.subr.bf16.mxu1 %v15352_v14  ;;  %13934 = vmatprep.subr.bf16.mxu0 %v15248_v1 }
 0x179   :  { %2191 = vmatmul.mubr.f32.vlgmr.msra.gmra.mrb[4].mxu1 %v1905_v31  ;;  %2910 = vmatmul.mubr.f32.vlgmr.msra.gmra.mrb[2].mxu0 %v15382_v19 }
 0x17a   :  { %13824 = vmatpush1.bf16.msra.mxu1 %v15354_v17  ;;  %13936 = vmatpush1.bf16.msra.mxu0 %v15301_v11 }
 0x17b   :  { %13826 = vmatprep.subr.bf16.mxu1 %v15356_v50  ;;  %13938 = vmatprep.subr.bf16.mxu0 %v15250_v2 }
 0x17c   :  { %3554 = vmatprep.mubr.f32.mxu0 %v16412_v15  ;;  %2285 = vmatprep.mubr.f32.mxu1 %v16412_v15 }
 0x17e   :  { %13828 = vmatpush1.bf16.msra.mxu1 %v15358_v26  ;;  %13940 = vmatpush1.bf16.msra.mxu0 %v15312_v57 }
 0x17f   :  { %13830 = vmatprep.subr.bf16.mxu1 %v15238_v10  ;;  %13942 = vmatprep.subr.bf16.mxu0 %v15200_v34  ;;  %v16413_v34 = vld [vmem:[#allocation2_spill] sm:$0xff] }
 0x181   :  { %3560 = vmatmul.mubr.f32.vlgmr.msra.gmra.mrb[4].mxu0 %v3016_v35  ;;  %2287 = vmatmul.mubr.f32.vlgmr.msra.gmra.mrb[4].mxu1 %v15382_v19 }
 0x182   :  { %13832 = vmatpush1.bf16.msra.mxu1 %v15252_v6  ;;  %13944 = vmatpush1.bf16.msra.mxu0 %v15207_v38  ;;  %v14886_v38 = vmov 0.0|0.0  }
 0x183   :  { %13834 = vmatprep.subr.bf16.mxu1 %v15284_v41  ;;  %13946 = vmatprep.subr.bf16.mxu0 %v15220_v44  ;;  %v4025_v44 = vld [vmem:[%s16388_s3] sm:$0xff] }
 0x184   :  { %3670 = vmatprep.mubr.f32.mxu0 %v16412_v15  ;;  %2365 = vmatprep.mubr.f32.mxu1 %v16412_v15 }
 0x186   :  { %13836 = vmatpush1.bf16.msra.mxu1 %v15291_v25  ;;  %13948 = vmatpush1.bf16.msra.mxu0 %v15228_v47  ;;  %v4026_v47 = vld [vmem:[%s16388_s3 + $0x8] sm:$0xff] }
 0x187   :  { %13838 = vmatprep.subr.bf16.mxu1 %v15248_v1  ;;  %13950 = vmatprep.subr.bf16.mxu0 %v15242_v53  ;;  %v4039_v53 = vand.u32 4294901760, %v4025_v44 }
 0x189   :  { %3672 = vmatmul.mubr.f32.vlgmr.msra.gmra.mrb[4].mxu0 %v15416_v37  ;;  %2367 = vmatmul.mubr.f32.vlgmr.msra.gmra.mrb[4].mxu1 %v15382_v19 }
 0x18a   :  { %13840 = vmatpush1.bf16.msra.mxu1 %v15301_v11  ;;  %13952 = vmatpush1.bf16.msra.mxu0 %v15258_v28  ;;  %v4028_v28 = vld [vmem:[%s16388_s3 + $0x18] sm:$0xff] }
 0x18b   :  { %13842 = vmatprep.subr.bf16.mxu1 %v15250_v2  ;;  %13954 = vmatprep.subr.bf16.mxu0 %v15280_v32 }
 0x18c   :  { %2445 = vmatprep.mubr.f32.mxu1 %v16412_v15  ;;  %3758 = vmatprep.mubr.f32.mxu0 %v16412_v15 }
 0x18e   :  { %13844 = vmatpush1.bf16.msra.mxu1 %v15312_v57  ;;  %13956 = vmatpush1.bf16.msra.mxu0 %v15288_v42  ;;  %v4048_v42 = vand.u32 4294901760, %v4028_v28 }
 0x18f   :  { %13886 = vmatprep.subr.bf16.mxu1 %v15238_v10  ;;  %13958 = vmatprep.subr.bf16.mxu0 %v15248_v1 }
 0x191   :  { %2451 = vmatmul.mubr.f32.vlgmr.msra.gmra.mrb[6].mxu1 %v15391_v21  ;;  %3761 = vmatmul.mubr.f32.vlgmr.msra.gmra.mrb[4].mxu0 %v15424_v43 }
 0x192   :  { %13888 = vmatpush1.bf16.msra.mxu1 %v15252_v6  ;;  %13960 = vmatpush1.bf16.msra.mxu0 %v15301_v11 }
 0x193   :  { %13890 = vmatprep.subr.bf16.mxu1 %v15284_v41  ;;  %13962 = vmatprep.subr.bf16.mxu0 %v15250_v2 }
 0x194   :  { %3011 = vmatprep.mubr.f32.mxu1 %v16412_v15  ;;  %3839 = vmatprep.mubr.f32.mxu0 %v16412_v15 }
 0x196   :  { %13892 = vmatpush1.bf16.msra.mxu1 %v15291_v25  ;;  %13964 = vmatpush1.bf16.msra.mxu0 %v15312_v57 }
 0x197   :  { %13894 = vmatprep.subr.bf16.mxu1 %v16413_v34  ;;  %13966 = vmatprep.subr.bf16.mxu0 %v15326_v30 }
 0x199   :  { %3017 = vmatmul.mubr.f32.vlgmr.msra.gmra.mrb[8].mxu1 %v3016_v35  ;;  %3843 = vmatmul.mubr.f32.vlgmr.msra.gmra.mrb[4].mxu0 %v15433_v46 }
 0x19a   :  { %13896 = vmatpush1.bf16.msra.mxu1 %v15305_v45  ;;  %13968 = vmatpush1.bf16.msra.mxu0 %v15334_v22 }
 0x19b   :  { %13898 = vmatprep.subr.bf16.mxu1 %v15314_v58  ;;  %13970 = vmatprep.subr.bf16.mxu0 %v15342_v56 }
 0x19c   :  { %3127 = vmatprep.mubr.f32.mxu1 %v16412_v15  ;;  %3937 = vmatprep.mubr.f32.mxu0 %v16412_v15 }
 0x19e   :  { %13900 = vmatpush1.bf16.msra.mxu1 %v15316_v59  ;;  %13972 = vmatpush1.bf16.msra.mxu0 %v15350_v23 }
 0x19f   :  { %13902 = vmatprep.subr.bf16.mxu1 %v15320_v60  ;;  %13974 = vmatprep.subr.bf16.mxu0 %v15248_v1  ;;  %v4042_v1 = vand.u32 4294901760, %v4026_v47  ;;  %v4140_v60 = vsub.f32 %v4028_v28, %v4048_v42 }
 0x1a1   :  { %3129 = vmatmul.mubr.f32.vlgmr.msra.gmra.mrb[8].mxu1 %v15416_v37  ;;  %3939 = vmatmul.mubr.f32.vlgmr.msra.gmra.mrb[4].mxu0 %v15416_v37  ;;  %v4126_v45 = vsub.f32 %v4026_v47, %v4042_v1  ;;  %v15537_v30 = vpack.c.bf16 %v4042_v1, %v4039_v53 }
 0x1a2   :  { %13904 = vmatpush1.bf16.msra.mxu1 %v15328_v33  ;;  %13976 = vmatpush1.bf16.msra.mxu0 %v15301_v11  ;;  %v4119_v11 = vsub.f32 %v4025_v44, %v4039_v53 }
 0x1a3   :  { %13906 = vmatprep.subr.bf16.mxu1 %v15336_v27  ;;  %13978 = vmatprep.subr.bf16.mxu0 %v15250_v2  ;;  %v4027_v2 = vld [vmem:[%s16388_s3 + $0x10] sm:$0xff]  ;;  %v4127_v58 = vand.u32 4294901760, %v4126_v45 }
 0x1a4   :  { %3215 = vmatprep.mubr.f32.mxu1 %v16412_v15  ;;  %4017 = vmatprep.mubr.f32.mxu0 %v16412_v15  ;;  %v4045_v32 = vand.u32 4294901760, %v4027_v2 }
 0x1a5   :  { %v4128_v22 = vsub.f32 %v4126_v45, %v4127_v58 }
 0x1a6   :  { %13908 = vmatpush1.bf16.msra.mxu1 %v15344_v61  ;;  %13980 = vmatpush1.bf16.msra.mxu0 %v15312_v57  ;;  %v4120_v57 = vand.u32 4294901760, %v4119_v11  ;;  %v4133_v59 = vsub.f32 %v4027_v2, %v4045_v32 }
 0x1a7   :  { %13910 = vmatprep.subr.bf16.mxu1 %v15238_v10  ;;  %14017 = vmatprep.subr.bf16.mxu0 %v14886_v38  ;;  %v4129_v56 = vand.u32 4294901760, %v4128_v22 }
 0x1a8   :  { %v4121_v33 = vsub.f32 %v4119_v11, %v4120_v57  ;;  %v4134_v27 = vand.u32 4294901760, %v4133_v59  ;;  %v15565_v13 = vpack.c.bf16 %v4140_v60, %v4133_v59  ;;  %v15578_v20 = vpack.c.bf16 %v4127_v58, %v4120_v57  ;;  %v4548_v58 = vld [vmem:[%s16389_s4] sm:$0xff] }
 0x1a9   :  { %3218 = vmatmul.mubr.f32.vlgmr.msra.gmra.mrb[8].mxu1 %v15424_v43  ;;  %4019 = vmatmul.mubr.f32.vlgmr.msra.gmra.mrb[4].mxu0 %v15416_v37 }
 0x1aa   :  { %13912 = vmatpush1.bf16.msra.mxu1 %v15252_v6  ;;  %3296 = vmatprep.mubr.f32.mxu1 %v16412_v15  ;;  %v4135_v61 = vsub.f32 %v4133_v59, %v4134_v27  ;;  %v4549_v59 = vld [vmem:[%s16389_s4 + $0x8] sm:$0xff] }
 0x1ab   :  { %13914 = vmatprep.subr.bf16.mxu1 %v15284_v41  ;;  %12807 = vmatprep.mubr.msk.f32.mxu0 %vm14887_vm11, %v16412_v15 }
 0x1ae   :  { %13916 = vmatpush1.bf16.msra.mxu1 %v15291_v25 }
 0x1af   :  { %13918 = vmatprep.subr.bf16.mxu1 %v15352_v14  ;;  %v4136_v14 = vand.u32 4294901760, %v4135_v61 }
 0x1b1   :  { %3300 = vmatmul.mubr.f32.vlgmr.msra.gmra.mrb[8].mxu1 %v15433_v46 }
 0x1b2   :  { %13920 = vmatpush1.bf16.msra.mxu1 %v15354_v17  ;;  %3394 = vmatprep.mubr.f32.mxu1 %v16412_v15 }
 0x1b3   :  { %13922 = vmatprep.subr.bf16.mxu1 %v15356_v50 }
 0x1b6   :  { %13924 = vmatpush1.bf16.msra.mxu1 %v15358_v26  ;;  %v15560_v26 = vpack.c.bf16 %v4126_v45, %v4119_v11 }
 0x1b7   :  { %13926 = vmatprep.subr.bf16.mxu1 %v15238_v10  ;;  %v4141_v10 = vand.u32 4294901760, %v4140_v60 }
 0x1b9   :  { %3396 = vmatmul.mubr.f32.vlgmr.msra.gmra.mrb[8].mxu1 %v15416_v37  ;;  %v4142_v23 = vsub.f32 %v4140_v60, %v4141_v10  ;;  %v15583_v39 = vpack.c.bf16 %v4141_v10, %v4134_v27  ;;  %v4558_v60 = vand.u32 4294901760, %v4548_v58 }
 0x1ba   :  { %13928 = vmatpush1.bf16.msra.mxu1 %v15252_v6  ;;  %3474 = vmatprep.mubr.f32.mxu1 %v16412_v15  ;;  %v15542_v6 = vpack.c.bf16 %v4048_v42, %v4045_v32 }
 0x1bb   :  { %13930 = vmatprep.subr.bf16.mxu1 %v15284_v41  ;;  %v4122_v41 = vand.u32 4294901760, %v4121_v33  ;;  %v4143_v17 = vand.u32 4294901760, %v4142_v23  ;;  %v4561_v33 = vand.u32 4294901760, %v4549_v59  ;;  %v4638_v27 = vsub.f32 %v4548_v58, %v4558_v60 }
 0x1bd   :  { %v15554_v50 = vpack.c.bf16 %v4143_v17, %v4136_v14  ;;  %v15637_v22 = vpack.c.bf16 %v4561_v33, %v4558_v60  ;;  %v4645_v10 = vsub.f32 %v4549_v59, %v4561_v33  ;;  %v4639_v14 = vand.u32 4294901760, %v4638_v27 }
 0x1be   :  { %13932 = vmatpush1.bf16.msra.mxu1 %v15291_v25  ;;  %v15549_v25 = vpack.c.bf16 %v4129_v56, %v4122_v41  ;;  %v4550_v41 = vld [vmem:[%s16389_s4 + $0x10] sm:$0xff]  ;;  %v4551_v56 = vld [vmem:[%s16389_s4 + $0x18] sm:$0xff] }
 0x1bf   :  { %13981 = vmatprep.subr.bf16.mxu1 %v14886_v38  ;;  %14019 = vmatpush3.bf16.msra.mxu0 %v15637_v22  ;;  %v4564_v61 = vand.u32 4294901760, %v4550_v41  ;;  %v4567_v23 = vand.u32 4294901760, %v4551_v56  ;;  %v4646_v17 = vand.u32 4294901760, %v4645_v10 }
 0x1c0   :  { %14020 = vmatprep.subr.bf16.mxu0 %v14886_v38 }
 0x1c1   :  { %3476 = vmatmul.mubr.f32.vlgmr.msra.gmra.mrb[8].mxu1 %v15416_v37  ;;  %v4659_v4 = vsub.f32 %v4551_v56, %v4567_v23  ;;  %v5553_v56 = vld [vmem:[%s16389_s4 + $0x20] sm:$0xff] }
 0x1c2   :  { %13983 = vmatpush3.bf16.msra.mxu1 %v15537_v30  ;;  %12741 = vmatprep.mubr.msk.f32.mxu1 %vm14887_vm11, %v16412_v15 }
 0x1c3   :  { %13984 = vmatprep.subr.bf16.mxu1 %v14886_v38  ;;  %v4660_v55 = vand.u32 4294901760, %v4659_v4 }
 0x1c6   :  { %13986 = vmatpush3.bf16.msra.mxu1 %v15542_v6 }
 0x1c7   :  { %13987 = vmatprep.subr.bf16.mxu1 %v14886_v38 }
 0x1c9   :  { %12742 = vmatmul.mubr.f32.vlgmr.msra.gmra.mrb[10].mxu1 %v16412_v15 }
 0x1ca   :  { %13989 = vmatpush3.bf16.msra.mxu1 %v15549_v25  ;;  %12752 = vmatprep.mubr.msk.f32.mxu1 %vm14887_vm11, %v16412_v15 }
 0x1cb   :  { %13990 = vmatprep.subr.bf16.mxu1 %v14886_v38 }
 0x1ce   :  { %13992 = vmatpush3.bf16.msra.mxu1 %v15554_v50 }
 0x1cf   :  { %13993 = vmatprep.subr.bf16.mxu1 %v14886_v38 }
 0x1d1   :  { %12753 = vmatmul.mubr.f32.vlgmr.msra.gmra.mrb[10].mxu1 %v16412_v15 }
 0x1d2   :  { %13995 = vmatpush3.bf16.msra.mxu1 %v15560_v26  ;;  %12763 = vmatprep.mubr.msk.f32.mxu1 %vm14887_vm11, %v16412_v15 }
 0x1d3   :  { %13996 = vmatprep.subr.bf16.mxu1 %v14886_v38 }
 0x1d6   :  { %13998 = vmatpush3.bf16.msra.mxu1 %v15565_v13 }
 0x1d7   :  { %13999 = vmatprep.subr.bf16.mxu1 %v14886_v38 }
 0x1d9   :  { %12764 = vmatmul.mubr.f32.vlgmr.msra.gmra.mrb[10].mxu1 %v16412_v15 }
 0x1da   :  { %14001 = vmatpush3.bf16.msra.mxu1 %v15537_v30  ;;  %12774 = vmatprep.mubr.msk.f32.mxu1 %vm14887_vm11, %v16412_v15 }
 0x1db   :  { %14002 = vmatprep.subr.bf16.mxu1 %v14886_v38 }
 0x1de   :  { %14004 = vmatpush3.bf16.msra.mxu1 %v15542_v6 }
 0x1df   :  { %14005 = vmatprep.subr.bf16.mxu1 %v14886_v38 }
 0x1e1   :  { %12775 = vmatmul.mubr.f32.vlgmr.msra.gmra.mrb[10].mxu1 %v16412_v15 }
 0x1e2   :  { %14007 = vmatpush3.bf16.msra.mxu1 %v15578_v20  ;;  %12785 = vmatprep.mubr.msk.f32.mxu1 %vm14887_vm11, %v16412_v15 }
 0x1e3   :  { %14008 = vmatprep.subr.bf16.mxu1 %v14886_v38 }
 0x1e6   :  { %14010 = vmatpush3.bf16.msra.mxu1 %v15583_v39 }
 0x1e7   :  { %14011 = vmatprep.subr.bf16.mxu1 %v14886_v38 }
 0x1e9   :  { %12786 = vmatmul.mubr.f32.vlgmr.msra.gmra.mrb[10].mxu1 %v16412_v15 }
 0x1ea   :  { %14013 = vmatpush3.bf16.msra.mxu1 %v15537_v30  ;;  %12796 = vmatprep.mubr.msk.f32.mxu1 %vm14887_vm11, %v16412_v15 }
 0x1eb   :  { %14014 = vmatprep.subr.bf16.mxu1 %v14886_v38 }
 0x1ee   :  { %14016 = vmatpush3.bf16.msra.mxu1 %v15542_v6 }
 0x1ef   :  { %14053 = vmatprep.subr.bf16.mxu1 %v14886_v38 }
 0x1f1   :  { %12797 = vmatmul.mubr.f32.vlgmr.msra.gmra.mrb[10].mxu1 %v16412_v15 }
 0x1f2   :  { %14055 = vmatpush3.bf16.msra.mxu1 %v15537_v30  ;;  %12873 = vmatprep.mubr.msk.f32.mxu1 %vm14887_vm11, %v16412_v15 }
 0x1f3   :  { %14056 = vmatprep.subr.bf16.mxu1 %v14886_v38 }
 0x1f6   :  { %14058 = vmatpush3.bf16.msra.mxu1 %v15542_v6 }
 0x1f7   :  { %14059 = vmatprep.subr.bf16.mxu1 %v14886_v38 }
 0x24c   :  { %v2911_v12 = vpop.f32.mrb[2].mxu0 }
 0x24d   :  { %v2913_v24 = vpop.f32.mrb[3].mxu0 }
 0x25c   :  { %v2368_v54 = vpop.f32.mrb[4].mxu1 }
 0x25d   :  { %v2370_v49 = vpop.f32.mrb[5].mxu1  ;;  %v14559_v16 = vadd.f32 %v2368_v54, %v1798_v29  ;;  %v4647_v54 = vsub.f32 %v4645_v10, %v4646_v17 }
 0x25e   :  { %v15609_v52 = vadd.f32 %v2370_v49, %v1802_v7 }
 0x264   :  { %v2452_v63 = vpop.f32.mrb[6].mxu1 }
 0x265   :  { %v2453_v0 = vadd.f32 %v2452_v63, %v1806_v62  ;;  %v2454_v18 = vpop.f32.mrb[7].mxu1 }
 0x266   :  { %v2455_v5 = vadd.f32 %v2454_v18, %v1810_v3 }
 0x267   :  { %v15612_v19 = vadd.f32 %v2911_v12, %v2453_v0  ;;  %v15647_v12 = vpack.c.bf16 %v4567_v23, %v4564_v61  ;;  %v4661_v0 = vsub.f32 %v4659_v4, %v4660_v55  ;;  %v5563_v23 = vand.u32 4294901760, %v5553_v56 }
 0x268   :  { %v15614_v36 = vadd.f32 %v2913_v24, %v2455_v5  ;;  %v4652_v24 = vsub.f32 %v4550_v41, %v4564_v61  ;;  %v5554_v61 = vld [vmem:[%s16389_s4 + $0x28] sm:$0xff] }
 0x269   :  { %14022 = vmatpush3.bf16.msra.mxu0 %v15647_v12 }
 0x26a   :  { %v4653_v51 = vand.u32 4294901760, %v4652_v24  ;;  %14023 = vmatprep.subr.bf16.mxu0 %v14886_v38 }
 0x26c   :  { %v4654_v63 = vsub.f32 %v4652_v24, %v4653_v51 }
 0x27c   :  { %v4020_v31 = vpop.f32.mrb[4].mxu0 }
 0x27d   :  { %v15616_v48 = vadd.f32 %v4020_v31, %v1806_v62  ;;  %v4022_v40 = vpop.f32.mrb[5].mxu0  ;;  %v4648_v62 = vand.u32 4294901760, %v4647_v54  ;;  %v4655_v31 = vand.u32 4294901760, %v4654_v63 }
 0x27e   :  { %v15618_v21 = vadd.f32 %v4022_v40, %v1810_v3  ;;  %v4662_v40 = vand.u32 4294901760, %v4661_v0 }
 0x294   :  { %v3477_v37 = vpop.f32.mrb[8].mxu1 }
 0x295   :  { %v15621_v9 = vadd.f32 %v3477_v37, %v1798_v29  ;;  %v3479_v43 = vpop.f32.mrb[9].mxu1  ;;  %v14027_v29 = vpack.c.bf16 %v4662_v40, %v4655_v31  ;;  %v14030_v37 = vpack.c.bf16 %v4645_v10, %v4638_v27 }
 0x296   :  { %v15623_v46 = vadd.f32 %v3479_v43, %v1802_v7  ;;  %v4640_v7 = vsub.f32 %v4638_v27, %v4639_v14  ;;  %v14033_v43 = vpack.c.bf16 %v4659_v4, %v4652_v24  ;;  %v5555_v24 = vld [vmem:[%s16389_s4 + $0x30] sm:$0xff]  ;;  %v5556_v4 = vld [vmem:[%s16389_s4 + $0x38] sm:$0xff] }
 0x297   :  { %v5572_v54 = vand.u32 4294901760, %v5556_v4 }
 0x298   :  { %v4641_v49 = vand.u32 4294901760, %v4640_v7  ;;  %v5569_v7 = vand.u32 4294901760, %v5555_v24 }
 0x29a   :  { %v14024_v5 = vpack.c.bf16 %v4648_v62, %v4641_v49  ;;  %v5657_v62 = vsub.f32 %v5555_v24, %v5569_v7  ;;  %v6558_v24 = vld [vmem:[%s16389_s4 + $0x40] sm:$0xff] }
 0x2c4   :  { %v4519_v35 = vpop.f32.mrb[10].mxu1 }
 0x2c5   :  { %v4523_v34 = vadd.f32 %v14559_v16, %v4519_v35  ;;  %v12798_v44 = vpop.f32.mrb[11].mxu1  ;;  %v14042_v16 = vpack.c.bf16 %v4646_v17, %v4639_v14  ;;  %v14045_v35 = vpack.c.bf16 %v4660_v55, %v4653_v51  ;;  %v5566_v14 = vand.u32 4294901760, %v5554_v61 }
 0x2c6   :  { %v15748_v55 = vpack.c.bf16 %v5572_v54, %v5569_v7  ;;  %v6568_v7 = vand.u32 4294901760, %v6558_v24 }
 0x2c7   :  { %14820 = vtanh.f32 %v4523_v34  ;;  %v12101_v53 = vmul.f32 -1.442695, %v4523_v34  ;;  %v15738_v17 = vpack.c.bf16 %v5566_v14, %v5563_v23 }
 0x2c9   :  { %14822 = vpow2.f32 %v12101_v53 }
 0x2d1   :  { %v14821_v47 = vpop.eup %14820 }
 0x2d2   :  { %4533 = vrot.lane.b32.xlu0 %v14821_v47, %s14888_s2 }
 0x2d3   :  { %v14823_v1 = vpop.eup %14822 }
 0x2d4   :  { %v4527_v2 = vadd.f32 1.0, %v14823_v1 }
 0x2d6   :  { %14824 = vrcp.f32 %v4527_v2 }
 0x2e0   :  { %v14825_v8 = vpop.eup %14824 }
 0x2e1   :  { %v4531_v42 = vmul.f32 0.0, %v14825_v8 }
 0x344   :  { %v4534_v28 = vpop.permute.xlu0 %4533 }
 0x345   :  { %v4536_v32 = vmul.f32 %v14825_v8, %v4534_v28 }
 0x347   :  { %4538 = vrot.lane.b32.xlu0 %v4536_v32, %s14889_s23 }
 0x3b9   :  { %v4539_v11 = vpop.permute.xlu0 %4538 }
 0x3ba   :  { %v15627_v45 = vadd.f32 %v4539_v11, %v4531_v42 }
 0x3bc   :  { %14826 = vtanh.f32 %v15627_v45 }
 0x3c6   :  { %v14827_v57 = vpop.eup %14826 }
 0x3c7   :  { %4544 = vrot.lane.b32.xlu1 %v14827_v57, %s14888_s2 }
 0x439   :  { %v4545_v3 = vpop.permute.xlu1 %4544 }
 0x43a   :  { %v4547_v18 = vmul.f32 %v14825_v8, %v4545_v3  ;;  %v5664_v3 = vsub.f32 %v5556_v4, %v5572_v54  ;;  %v6559_v4 = vld [vmem:[%s16389_s4 + $0x48] sm:$0xff] }
 0x43b   :  { %v6571_v54 = vand.u32 4294901760, %v6559_v4 }
 0x43c   :  { %4553 = vrot.lane.b32.xlu1 %v4547_v18, %s14889_s23  ;;  %v5665_v31 = vand.u32 4294901760, %v5664_v3 }
 0x4ae   :  { %v4554_v34 = vpop.permute.xlu1 %4553 }
 0x4af   :  { %v4555_v44 = vsel %vm1827_vm10, %v4554_v34, 0 }
 0x4b0   :  { %v15653_v47 = vand.u32 4294901760, %v4555_v44 }
 0x4b2   :  { %v4627_v53 = vsub.f32 %v4555_v44, %v15653_v47 }
 0x4b4   :  { %v4628_v1 = vand.u32 4294901760, %v4627_v53 }
 0x4b6   :  { %v4629_v2 = vsub.f32 %v4627_v53, %v4628_v1 }
 0x4b8   :  { %v4630_v8 = vand.u32 4294901760, %v4629_v2 }
 0x4ba   :  { %12808 = vmatmul.mubr.f32.vlgmr.msra.gmra.mrb[6].mxu0 %v4630_v8  ;;  %12874 = vmatmul.mubr.f32.vlgmr.msra.gmra.mrb[12].mxu1 %v4630_v8 }
 0x4bb   :  { %14025 = vmatpush3.bf16.msra.mxu0 %v14024_v5  ;;  %14061 = vmatpush3.bf16.msra.mxu1 %v15549_v25  ;;  %v5658_v5 = vand.u32 4294901760, %v5657_v62 }
 0x4bc   :  { %14026 = vmatprep.subr.bf16.mxu0 %v14886_v38  ;;  %14062 = vmatprep.subr.bf16.mxu1 %v14886_v38 }
 0x4bd   :  { %12818 = vmatprep.mubr.msk.f32.mxu0 %vm14887_vm11, %v16412_v15  ;;  %12884 = vmatprep.mubr.msk.f32.mxu1 %vm14887_vm11, %v16412_v15  ;;  %v14117_v8 = vpack.c.bf16 %v5665_v31, %v5658_v5 }
 0x4bf   :  { %14028 = vmatpush3.bf16.msra.mxu0 %v14027_v29  ;;  %14064 = vmatpush3.bf16.msra.mxu1 %v15554_v50 }
 0x4c0   :  { %14029 = vmatprep.subr.bf16.mxu0 %v14886_v38  ;;  %14065 = vmatprep.subr.bf16.mxu1 %v14886_v38 }
 0x4c2   :  { %12819 = vmatmul.mubr.f32.vlgmr.msra.gmra.mrb[6].mxu0 %v15653_v47  ;;  %12885 = vmatmul.mubr.f32.vlgmr.msra.gmra.mrb[12].mxu1 %v15653_v47 }
 0x4c3   :  { %14031 = vmatpush3.bf16.msra.mxu0 %v14030_v37  ;;  %14067 = vmatpush3.bf16.msra.mxu1 %v15560_v26  ;;  %v5659_v37 = vsub.f32 %v5657_v62, %v5658_v5 }
 0x4c4   :  { %14032 = vmatprep.subr.bf16.mxu0 %v14886_v38  ;;  %14068 = vmatprep.subr.bf16.mxu1 %v14886_v38 }
 0x4c5   :  { %12829 = vmatprep.mubr.msk.f32.mxu0 %vm14887_vm11, %v16412_v15  ;;  %12895 = vmatprep.mubr.msk.f32.mxu1 %vm14887_vm11, %v16412_v15  ;;  %v5660_v34 = vand.u32 4294901760, %v5659_v37 }
 0x4c7   :  { %14034 = vmatpush3.bf16.msra.mxu0 %v14033_v43  ;;  %14070 = vmatpush3.bf16.msra.mxu1 %v15565_v13  ;;  %v5666_v43 = vsub.f32 %v5664_v3, %v5665_v31 }
 0x4c8   :  { %14035 = vmatprep.subr.bf16.mxu0 %v14886_v38  ;;  %14071 = vmatprep.subr.bf16.mxu1 %v14886_v38 }
 0x4c9   :  { %v5667_v44 = vand.u32 4294901760, %v5666_v43 }
 0x4ca   :  { %12830 = vmatmul.mubr.f32.vlgmr.msra.gmra.mrb[6].mxu0 %v4627_v53  ;;  %12896 = vmatmul.mubr.f32.vlgmr.msra.gmra.mrb[12].mxu1 %v4627_v53 }
 0x4cb   :  { %14037 = vmatpush3.bf16.msra.mxu0 %v15637_v22  ;;  %14073 = vmatpush3.bf16.msra.mxu1 %v15537_v30 }
 0x4cc   :  { %14038 = vmatprep.subr.bf16.mxu0 %v14886_v38  ;;  %14074 = vmatprep.subr.bf16.mxu1 %v14886_v38 }
 0x4cd   :  { %12840 = vmatprep.mubr.msk.f32.mxu0 %vm14887_vm11, %v16412_v15  ;;  %12906 = vmatprep.mubr.msk.f32.mxu1 %vm14887_vm11, %v16412_v15 }
 0x4cf   :  { %14040 = vmatpush3.bf16.msra.mxu0 %v15647_v12  ;;  %14076 = vmatpush3.bf16.msra.mxu1 %v15542_v6 }
 0x4d0   :  { %14041 = vmatprep.subr.bf16.mxu0 %v14886_v38  ;;  %14077 = vmatprep.subr.bf16.mxu1 %v14886_v38 }
 0x4d2   :  { %12841 = vmatmul.mubr.f32.vlgmr.msra.gmra.mrb[6].mxu0 %v4628_v1  ;;  %12907 = vmatmul.mubr.f32.vlgmr.msra.gmra.mrb[12].mxu1 %v4628_v1  ;;  %v14105_v1 = vpack.c.bf16 %v5664_v3, %v5657_v62  ;;  %v6561_v62 = vld [vmem:[%s16389_s4 + $0x58] sm:$0xff] }
 0x4d3   :  { %14043 = vmatpush3.bf16.msra.mxu0 %v14042_v16  ;;  %14079 = vmatpush3.bf16.msra.mxu1 %v15578_v20 }
 0x4d4   :  { %14044 = vmatprep.subr.bf16.mxu0 %v14886_v38  ;;  %14080 = vmatprep.subr.bf16.mxu1 %v14886_v38 }
 0x4d5   :  { %12851 = vmatprep.mubr.msk.f32.mxu0 %vm14887_vm11, %v16412_v15  ;;  %12917 = vmatprep.mubr.msk.f32.mxu1 %vm14887_vm11, %v16412_v15 }
 0x4d7   :  { %14046 = vmatpush3.bf16.msra.mxu0 %v14045_v35  ;;  %14082 = vmatpush3.bf16.msra.mxu1 %v15583_v39 }
 0x4d8   :  { %14047 = vmatprep.subr.bf16.mxu0 %v14886_v38  ;;  %14083 = vmatprep.subr.bf16.mxu1 %v14886_v38 }
 0x4da   :  { %12852 = vmatmul.mubr.f32.vlgmr.msra.gmra.mrb[6].mxu0 %v15653_v47  ;;  %12918 = vmatmul.mubr.f32.vlgmr.msra.gmra.mrb[12].mxu1 %v15653_v47 }
 0x4db   :  { %14049 = vmatpush3.bf16.msra.mxu0 %v15637_v22  ;;  %14085 = vmatpush3.bf16.msra.mxu1 %v15537_v30 }
 0x4dc   :  { %14050 = vmatprep.subr.bf16.mxu0 %v14886_v38  ;;  %14086 = vmatprep.subr.bf16.mxu1 %v14886_v38 }
 0x4dd   :  { %12862 = vmatprep.mubr.msk.f32.mxu0 %vm14887_vm11, %v16412_v15  ;;  %12928 = vmatprep.mubr.msk.f32.mxu1 %vm14887_vm11, %v16412_v15 }
 0x4df   :  { %14052 = vmatpush3.bf16.msra.mxu0 %v15647_v12  ;;  %14088 = vmatpush3.bf16.msra.mxu1 %v15542_v6  ;;  %v5650_v12 = vsub.f32 %v5554_v61, %v5566_v14 }
 0x4e0   :  { %14089 = vmatprep.subr.bf16.mxu0 %v14886_v38  ;;  %14125 = vmatprep.subr.bf16.mxu1 %v14886_v38 }
 0x4e1   :  { %v5651_v51 = vand.u32 4294901760, %v5650_v12 }
 0x4e2   :  { %12863 = vmatmul.mubr.f32.vlgmr.msra.gmra.mrb[6].mxu0 %v15653_v47  ;;  %12929 = vmatmul.mubr.f32.vlgmr.msra.gmra.mrb[12].mxu1 %v15653_v47  ;;  %v14099_v47 = vpack.c.bf16 %v5667_v44, %v5660_v34 }
 0x4e3   :  { %14127 = vmatpush3.bf16.msra.mxu1 %v15537_v30  ;;  %12939 = vmatprep.mubr.msk.f32.mxu0 %vm14887_vm11, %v16412_v15  ;;  %v5652_v0 = vsub.f32 %v5650_v12, %v5651_v51 }
 0x4e4   :  { %14128 = vmatprep.subr.bf16.mxu1 %v14886_v38  ;;  %13005 = vmatprep.mubr.msk.f32.mxu1 %vm14887_vm11, %v16412_v15 }
 0x4e5   :  { %14091 = vmatpush3.bf16.msra.mxu0 %v15738_v17  ;;  %v5653_v40 = vand.u32 4294901760, %v5652_v0 }
 0x4e6   :  { %14092 = vmatprep.subr.bf16.mxu0 %v14886_v38 }
 0x4e7   :  { %14130 = vmatpush3.bf16.msra.mxu1 %v15542_v6 }
 0x4e8   :  { %14131 = vmatprep.subr.bf16.mxu1 %v14886_v38 }
 0x4e9   :  { %14094 = vmatpush3.bf16.msra.mxu0 %v15748_v55 }
 0x4ea   :  { %14095 = vmatprep.subr.bf16.mxu0 %v14886_v38 }
 0x5b5   :  { %v5524_v28 = vpop.f32.mrb[12].mxu1 }
 0x5b6   :  { %v5528_v32 = vadd.f32 %v15621_v9, %v5524_v28  ;;  %v12930_v42 = vpop.f32.mrb[13].mxu1 }
 0x5b8   :  { %14828 = vtanh.f32 %v5528_v32  ;;  %v12102_v57 = vmul.f32 -1.442695, %v5528_v32 }
 0x5ba   :  { %14830 = vpow2.f32 %v12102_v57 }
 0x5c2   :  { %v14829_v11 = vpop.eup %14828 }
 0x5c3   :  { %5538 = vrot.lane.b32.xlu0 %v14829_v11, %s14888_s2 }
 0x5c4   :  { %v14831_v58 = vpop.eup %14830 }
 0x5c5   :  { %v5532_v59 = vadd.f32 1.0, %v14831_v58 }
 0x5c7   :  { %14832 = vrcp.f32 %v5532_v59 }
 0x5d1   :  { %v14833_v60 = vpop.eup %14832 }
 0x5d2   :  { %v5536_v27 = vmul.f32 %v14833_v60, %v15627_v45  ;;  %v5643_v45 = vsub.f32 %v5553_v56, %v5563_v23 }
 0x5d4   :  { %v5644_v49 = vand.u32 4294901760, %v5643_v45  ;;  %v14102_v53 = vpack.c.bf16 %v5650_v12, %v5643_v45 }
 0x5d6   :  { %v5645_v63 = vsub.f32 %v5643_v45, %v5644_v49  ;;  %v14114_v2 = vpack.c.bf16 %v5651_v51, %v5644_v49  ;;  %v15839_v49 = vpack.c.bf16 %v6571_v54, %v6568_v7  ;;  %v6655_v51 = vsub.f32 %v6559_v4, %v6571_v54 }
 0x5d8   :  { %v5646_v18 = vand.u32 4294901760, %v5645_v63  ;;  %v6577_v63 = vand.u32 4294901760, %v6561_v62 }
 0x5da   :  { %v14096_v35 = vpack.c.bf16 %v5653_v40, %v5646_v18  ;;  %v6656_v18 = vand.u32 4294901760, %v6655_v51  ;;  %v6669_v40 = vsub.f32 %v6561_v62, %v6577_v63 }
 0x5dc   :  { %v6657_v37 = vsub.f32 %v6655_v51, %v6656_v18 }
 0x5de   :  { %v6658_v34 = vand.u32 4294901760, %v6657_v37 }
 0x635   :  { %v5539_v33 = vpop.permute.xlu0 %5538 }
 0x636   :  { %v5541_v22 = vmul.f32 %v14833_v60, %v5539_v33 }
 0x638   :  { %5543 = vrot.lane.b32.xlu1 %v5541_v22, %s14889_s23 }
 0x6aa   :  { %v5544_v10 = vpop.permute.xlu1 %5543 }
 0x6ab   :  { %v15728_v41 = vadd.f32 %v5544_v10, %v5536_v27 }
 0x6ad   :  { %14834 = vtanh.f32 %v15728_v41 }
 0x6b7   :  { %v14835_v9 = vpop.eup %14834 }
 0x6b8   :  { %5549 = vrot.lane.b32.xlu0 %v14835_v9, %s14888_s2 }
 0x72a   :  { %v5550_v29 = vpop.permute.xlu0 %5549 }
 0x72b   :  { %v5552_v16 = vmul.f32 %v14833_v60, %v5550_v29 }
 0x72d   :  { %5558 = vrot.lane.b32.xlu1 %v5552_v16, %s14889_s23 }
 0x79f   :  { %v5559_v28 = vpop.permute.xlu1 %5558 }
 0x7a0   :  { %v5560_v32 = vsel %vm1827_vm10, %v5559_v28, 0 }
 0x7a1   :  { %v15754_v42 = vand.u32 4294901760, %v5560_v32 }
 0x7a3   :  { %v5632_v11 = vsub.f32 %v5560_v32, %v15754_v42 }
 0x7a5   :  { %v5633_v57 = vand.u32 4294901760, %v5632_v11 }
 0x7a7   :  { %v5634_v58 = vsub.f32 %v5632_v11, %v5633_v57 }
 0x7a9   :  { %v5635_v59 = vand.u32 4294901760, %v5634_v58 }
 0x7ab   :  { %12940 = vmatmul.mubr.f32.vlgmr.msra.gmra.mrb[6].mxu0 %v5635_v59  ;;  %13006 = vmatmul.mubr.f32.vlgmr.msra.gmra.mrb[14].mxu1 %v5635_v59 }
 0x7ac   :  { %14097 = vmatpush3.bf16.msra.mxu0 %v14096_v35  ;;  %14133 = vmatpush3.bf16.msra.mxu1 %v15549_v25  ;;  %v6670_v35 = vand.u32 4294901760, %v6669_v40 }
 0x7ad   :  { %14098 = vmatprep.subr.bf16.mxu0 %v14886_v38  ;;  %14134 = vmatprep.subr.bf16.mxu1 %v14886_v38 }
 0x7ae   :  { %12950 = vmatprep.mubr.msk.f32.mxu0 %vm14887_vm11, %v16412_v15  ;;  %13016 = vmatprep.mubr.msk.f32.mxu1 %vm14887_vm11, %v16412_v15 }
 0x7b0   :  { %14100 = vmatpush3.bf16.msra.mxu0 %v14099_v47  ;;  %14136 = vmatpush3.bf16.msra.mxu1 %v15554_v50 }
 0x7b1   :  { %14101 = vmatprep.subr.bf16.mxu0 %v14886_v38  ;;  %14137 = vmatprep.subr.bf16.mxu1 %v14886_v38 }
 0x7b3   :  { %12951 = vmatmul.mubr.f32.vlgmr.msra.gmra.mrb[6].mxu0 %v15754_v42  ;;  %13017 = vmatmul.mubr.f32.vlgmr.msra.gmra.mrb[14].mxu1 %v15754_v42 }
 0x7b4   :  { %14103 = vmatpush3.bf16.msra.mxu0 %v14102_v53  ;;  %14139 = vmatpush3.bf16.msra.mxu1 %v15560_v26  ;;  %v6671_v53 = vsub.f32 %v6669_v40, %v6670_v35 }
 0x7b5   :  { %14104 = vmatprep.subr.bf16.mxu0 %v14886_v38  ;;  %14140 = vmatprep.subr.bf16.mxu1 %v14886_v38 }
 0x7b6   :  { %12961 = vmatprep.mubr.msk.f32.mxu0 %vm14887_vm11, %v16412_v15  ;;  %13027 = vmatprep.mubr.msk.f32.mxu1 %vm14887_vm11, %v16412_v15  ;;  %v6672_v28 = vand.u32 4294901760, %v6671_v53 }
 0x7b8   :  { %14106 = vmatpush3.bf16.msra.mxu0 %v14105_v1  ;;  %14142 = vmatpush3.bf16.msra.mxu1 %v15565_v13 }
 0x7b9   :  { %14107 = vmatprep.subr.bf16.mxu0 %v14886_v38  ;;  %14143 = vmatprep.subr.bf16.mxu1 %v14886_v38 }
 0x7bb   :  { %12962 = vmatmul.mubr.f32.vlgmr.msra.gmra.mrb[6].mxu0 %v5632_v11  ;;  %13028 = vmatmul.mubr.f32.vlgmr.msra.gmra.mrb[14].mxu1 %v5632_v11 }
 0x7bc   :  { %14109 = vmatpush3.bf16.msra.mxu0 %v15738_v17  ;;  %14145 = vmatpush3.bf16.msra.mxu1 %v15537_v30 }
 0x7bd   :  { %14110 = vmatprep.subr.bf16.mxu0 %v14886_v38  ;;  %14146 = vmatprep.subr.bf16.mxu1 %v14886_v38 }
 0x7be   :  { %12972 = vmatprep.mubr.msk.f32.mxu0 %vm14887_vm11, %v16412_v15  ;;  %13038 = vmatprep.mubr.msk.f32.mxu1 %vm14887_vm11, %v16412_v15 }
 0x7c0   :  { %14112 = vmatpush3.bf16.msra.mxu0 %v15748_v55  ;;  %14148 = vmatpush3.bf16.msra.mxu1 %v15542_v6 }
 0x7c1   :  { %14113 = vmatprep.subr.bf16.mxu0 %v14886_v38  ;;  %14149 = vmatprep.subr.bf16.mxu1 %v14886_v38 }
 0x7c3   :  { %12973 = vmatmul.mubr.f32.vlgmr.msra.gmra.mrb[6].mxu0 %v5633_v57  ;;  %13039 = vmatmul.mubr.f32.vlgmr.msra.gmra.mrb[14].mxu1 %v5633_v57 }
 0x7c4   :  { %14115 = vmatpush3.bf16.msra.mxu0 %v14114_v2  ;;  %14151 = vmatpush3.bf16.msra.mxu1 %v15578_v20 }
 0x7c5   :  { %14116 = vmatprep.subr.bf16.mxu0 %v14886_v38  ;;  %14152 = vmatprep.subr.bf16.mxu1 %v14886_v38 }
 0x7c6   :  { %12983 = vmatprep.mubr.msk.f32.mxu0 %vm14887_vm11, %v16412_v15  ;;  %13049 = vmatprep.mubr.msk.f32.mxu1 %vm14887_vm11, %v16412_v15 }
 0x7c8   :  { %14118 = vmatpush3.bf16.msra.mxu0 %v14117_v8  ;;  %14154 = vmatpush3.bf16.msra.mxu1 %v15583_v39 }
 0x7c9   :  { %14119 = vmatprep.subr.bf16.mxu0 %v14886_v38  ;;  %14155 = vmatprep.subr.bf16.mxu1 %v14886_v38 }
 0x7cb   :  { %12984 = vmatmul.mubr.f32.vlgmr.msra.gmra.mrb[6].mxu0 %v15754_v42  ;;  %13050 = vmatmul.mubr.f32.vlgmr.msra.gmra.mrb[14].mxu1 %v15754_v42 }
 0x7cc   :  { %14121 = vmatpush3.bf16.msra.mxu0 %v15738_v17  ;;  %14157 = vmatpush3.bf16.msra.mxu1 %v15537_v30 }
 0x7cd   :  { %14122 = vmatprep.subr.bf16.mxu0 %v14886_v38  ;;  %14158 = vmatprep.subr.bf16.mxu1 %v14886_v38 }
 0x7ce   :  { %12994 = vmatprep.mubr.msk.f32.mxu0 %vm14887_vm11, %v16412_v15  ;;  %13060 = vmatprep.mubr.msk.f32.mxu1 %vm14887_vm11, %v16412_v15 }
 0x7d0   :  { %14124 = vmatpush3.bf16.msra.mxu0 %v15748_v55  ;;  %14160 = vmatpush3.bf16.msra.mxu1 %v15542_v6  ;;  %v6560_v55 = vld [vmem:[%s16389_s4 + $0x50] sm:$0xff] }
 0x7d1   :  { %14161 = vmatprep.subr.bf16.mxu0 %v14886_v38  ;;  %14197 = vmatprep.subr.bf16.mxu1 %v14886_v38  ;;  %v6574_v3 = vand.u32 4294901760, %v6560_v55 }
 0x7d3   :  { %12995 = vmatmul.mubr.f32.vlgmr.msra.gmra.mrb[6].mxu0 %v15754_v42  ;;  %13061 = vmatmul.mubr.f32.vlgmr.msra.gmra.mrb[14].mxu1 %v15754_v42  ;;  %v15849_v5 = vpack.c.bf16 %v6577_v63, %v6574_v3  ;;  %v6662_v31 = vsub.f32 %v6560_v55, %v6574_v3  ;;  %v7564_v55 = vld [vmem:[%s16389_s4 + $0x68] sm:$0xff] }
 0x7d4   :  { %14199 = vmatpush3.bf16.msra.mxu1 %v15537_v30  ;;  %13071 = vmatprep.mubr.msk.f32.mxu0 %vm14887_vm11, %v16412_v15  ;;  %v7576_v3 = vand.u32 4294901760, %v7564_v55 }
 0x7d5   :  { %14200 = vmatprep.subr.bf16.mxu1 %v14886_v38  ;;  %13137 = vmatprep.mubr.msk.f32.mxu1 %vm14887_vm11, %v16412_v15  ;;  %v6663_v16 = vand.u32 4294901760, %v6662_v31  ;;  %v14177_v11 = vpack.c.bf16 %v6669_v40, %v6662_v31 }
 0x7d6   :  { %14163 = vmatpush3.bf16.msra.mxu0 %v15839_v49 }
 0x7d7   :  { %14164 = vmatprep.subr.bf16.mxu0 %v14886_v38  ;;  %v6664_v47 = vsub.f32 %v6662_v31, %v6663_v16  ;;  %v14189_v58 = vpack.c.bf16 %v6670_v35, %v6663_v16 }
 0x7d8   :  { %14202 = vmatpush3.bf16.msra.mxu1 %v15542_v6 }
 0x7d9   :  { %14203 = vmatprep.subr.bf16.mxu1 %v14886_v38  ;;  %v6665_v8 = vand.u32 4294901760, %v6664_v47 }
 0x7da   :  { %14166 = vmatpush3.bf16.msra.mxu0 %v15849_v5 }
 0x7db   :  { %14167 = vmatprep.subr.bf16.mxu0 %v14886_v38  ;;  %v14171_v32 = vpack.c.bf16 %v6672_v28, %v6665_v8 }
 0x8a6   :  { %v6529_v60 = vpop.f32.mrb[14].mxu1 }
 0x8a7   :  { %v6533_v33 = vadd.f32 %v15609_v52, %v6529_v60  ;;  %v13062_v22 = vpop.f32.mrb[15].mxu1 }
 0x8a9   :  { %14836 = vtanh.f32 %v6533_v33  ;;  %v12103_v10 = vmul.f32 -1.442695, %v6533_v33 }
 0x8ab   :  { %14838 = vpow2.f32 %v12103_v10 }
 0x8b3   :  { %v14837_v27 = vpop.eup %14836 }
 0x8b4   :  { %6543 = vrot.lane.b32.xlu0 %v14837_v27, %s14888_s2 }
 0x8b5   :  { %v14839_v9 = vpop.eup %14838 }
 0x8b6   :  { %v6537_v56 = vadd.f32 1.0, %v14839_v9 }
 0x8b8   :  { %14840 = vrcp.f32 %v6537_v56 }
 0x8c2   :  { %v14841_v61 = vpop.eup %14840 }
 0x8c3   :  { %v6541_v17 = vmul.f32 %v14841_v61, %v15728_v41  ;;  %v6648_v41 = vsub.f32 %v6558_v24, %v6568_v7 }
 0x8c5   :  { %v6649_v0 = vand.u32 4294901760, %v6648_v41  ;;  %v14174_v42 = vpack.c.bf16 %v6655_v51, %v6648_v41  ;;  %v7563_v51 = vld [vmem:[%s16389_s4 + $0x60] sm:$0xff] }
 0x8c6   :  { %v7573_v62 = vand.u32 4294901760, %v7563_v51 }
 0x8c7   :  { %v6650_v29 = vsub.f32 %v6648_v41, %v6649_v0  ;;  %v14186_v57 = vpack.c.bf16 %v6656_v18, %v6649_v0  ;;  %v7660_v0 = vsub.f32 %v7564_v55, %v7576_v3  ;;  %v7565_v18 = vld [vmem:[%s16389_s4 + $0x70] sm:$0xff] }
 0x8c8   :  { %v15940_v63 = vpack.c.bf16 %v7576_v3, %v7573_v62  ;;  %v7579_v31 = vand.u32 4294901760, %v7565_v18 }
 0x8c9   :  { %v6651_v43 = vand.u32 4294901760, %v6650_v29  ;;  %v7661_v37 = vand.u32 4294901760, %v7660_v0 }
 0x8ca   :  { %v7667_v16 = vsub.f32 %v7565_v18, %v7579_v31 }
 0x8cb   :  { %v14168_v2 = vpack.c.bf16 %v6658_v34, %v6651_v43 }
 0x8cc   :  { %v7668_v53 = vand.u32 4294901760, %v7667_v16 }
 0x8ce   :  { %v7669_v28 = vsub.f32 %v7667_v16, %v7668_v53 }
 0x926   :  { %v6544_v23 = vpop.permute.xlu0 %6543 }
 0x927   :  { %v6546_v14 = vmul.f32 %v14841_v61, %v6544_v23 }
 0x929   :  { %6548 = vrot.lane.b32.xlu1 %v6546_v14, %s14889_s23 }
 0x99b   :  { %v6549_v45 = vpop.permute.xlu1 %6548 }
 0x99c   :  { %v15829_v12 = vadd.f32 %v6549_v45, %v6541_v17 }
 0x99e   :  { %14842 = vtanh.f32 %v15829_v12 }
 0x9a8   :  { %v14843_v52 = vpop.eup %14842 }
 0x9a9   :  { %6554 = vrot.lane.b32.xlu0 %v14843_v52, %s14888_s2 }
 0xa1b   :  { %v6555_v44 = vpop.permute.xlu0 %6554 }
 0xa1c   :  { %v6557_v1 = vmul.f32 %v14841_v61, %v6555_v44  ;;  %v7662_v44 = vsub.f32 %v7660_v0, %v7661_v37 }
 0xa1e   :  { %6563 = vrot.lane.b32.xlu1 %v6557_v1, %s14889_s23 }
 0xa90   :  { %v6564_v59 = vpop.permute.xlu1 %6563 }
 0xa91   :  { %v6565_v60 = vsel %vm1827_vm10, %v6564_v59, 0 }
 0xa92   :  { %v15855_v33 = vand.u32 4294901760, %v6565_v60 }
 0xa94   :  { %v6637_v22 = vsub.f32 %v6565_v60, %v15855_v33 }
 0xa96   :  { %v6638_v27 = vand.u32 4294901760, %v6637_v22 }
 0xa98   :  { %v6639_v10 = vsub.f32 %v6637_v22, %v6638_v27 }
 0xa9a   :  { %v6640_v9 = vand.u32 4294901760, %v6639_v10 }
 0xa9c   :  { %13072 = vmatmul.mubr.f32.vlgmr.msra.gmra.mrb[6].mxu0 %v6640_v9  ;;  %13138 = vmatmul.mubr.f32.vlgmr.msra.gmra.mrb[16].mxu1 %v6640_v9 }
 0xa9d   :  { %14169 = vmatpush3.bf16.msra.mxu0 %v14168_v2  ;;  %14205 = vmatpush3.bf16.msra.mxu1 %v15549_v25  ;;  %v7663_v2 = vand.u32 4294901760, %v7662_v44 }
 0xa9e   :  { %14170 = vmatprep.subr.bf16.mxu0 %v14886_v38  ;;  %14206 = vmatprep.subr.bf16.mxu1 %v14886_v38 }
 0xa9f   :  { %13082 = vmatprep.mubr.msk.f32.mxu0 %vm14887_vm11, %v16412_v15  ;;  %13148 = vmatprep.mubr.msk.f32.mxu1 %vm14887_vm11, %v16412_v15 }
 0xaa1   :  { %14172 = vmatpush3.bf16.msra.mxu0 %v14171_v32  ;;  %14208 = vmatpush3.bf16.msra.mxu1 %v15554_v50 }
 0xaa2   :  { %14173 = vmatprep.subr.bf16.mxu0 %v14886_v38  ;;  %14209 = vmatprep.subr.bf16.mxu1 %v14886_v38 }
 0xaa4   :  { %13083 = vmatmul.mubr.f32.vlgmr.msra.gmra.mrb[6].mxu0 %v15855_v33  ;;  %13149 = vmatmul.mubr.f32.vlgmr.msra.gmra.mrb[16].mxu1 %v15855_v33 }
 0xaa5   :  { %14175 = vmatpush3.bf16.msra.mxu0 %v14174_v42  ;;  %14211 = vmatpush3.bf16.msra.mxu1 %v15560_v26 }
 0xaa6   :  { %14176 = vmatprep.subr.bf16.mxu0 %v14886_v38  ;;  %14212 = vmatprep.subr.bf16.mxu1 %v14886_v38 }
 0xaa7   :  { %13093 = vmatprep.mubr.msk.f32.mxu0 %vm14887_vm11, %v16412_v15  ;;  %13159 = vmatprep.mubr.msk.f32.mxu1 %vm14887_vm11, %v16412_v15 }
 0xaa9   :  { %14178 = vmatpush3.bf16.msra.mxu0 %v14177_v11  ;;  %14214 = vmatpush3.bf16.msra.mxu1 %v15565_v13 }
 0xaaa   :  { %14179 = vmatprep.subr.bf16.mxu0 %v14886_v38  ;;  %14215 = vmatprep.subr.bf16.mxu1 %v14886_v38 }
 0xaac   :  { %13094 = vmatmul.mubr.f32.vlgmr.msra.gmra.mrb[6].mxu0 %v6637_v22  ;;  %13160 = vmatmul.mubr.f32.vlgmr.msra.gmra.mrb[16].mxu1 %v6637_v22 }
 0xaad   :  { %14181 = vmatpush3.bf16.msra.mxu0 %v15839_v49  ;;  %14217 = vmatpush3.bf16.msra.mxu1 %v15537_v30 }
 0xaae   :  { %14182 = vmatprep.subr.bf16.mxu0 %v14886_v38  ;;  %14218 = vmatprep.subr.bf16.mxu1 %v14886_v38 }
 0xaaf   :  { %13104 = vmatprep.mubr.msk.f32.mxu0 %vm14887_vm11, %v16412_v15  ;;  %13170 = vmatprep.mubr.msk.f32.mxu1 %vm14887_vm11, %v16412_v15 }
 0xab1   :  { %14184 = vmatpush3.bf16.msra.mxu0 %v15849_v5  ;;  %14220 = vmatpush3.bf16.msra.mxu1 %v15542_v6 }
 0xab2   :  { %14185 = vmatprep.subr.bf16.mxu0 %v14886_v38  ;;  %14221 = vmatprep.subr.bf16.mxu1 %v14886_v38 }
 0xab4   :  { %13105 = vmatmul.mubr.f32.vlgmr.msra.gmra.mrb[6].mxu0 %v6638_v27  ;;  %13171 = vmatmul.mubr.f32.vlgmr.msra.gmra.mrb[16].mxu1 %v6638_v27 }
 0xab5   :  { %14187 = vmatpush3.bf16.msra.mxu0 %v14186_v57  ;;  %14223 = vmatpush3.bf16.msra.mxu1 %v15578_v20  ;;  %v7670_v57 = vand.u32 4294901760, %v7669_v28 }
 0xab6   :  { %14188 = vmatprep.subr.bf16.mxu0 %v14886_v38  ;;  %14224 = vmatprep.subr.bf16.mxu1 %v14886_v38 }
 0xab7   :  { %13115 = vmatprep.mubr.msk.f32.mxu0 %vm14887_vm11, %v16412_v15  ;;  %13181 = vmatprep.mubr.msk.f32.mxu1 %vm14887_vm11, %v16412_v15 }
 0xab9   :  { %14190 = vmatpush3.bf16.msra.mxu0 %v14189_v58  ;;  %14226 = vmatpush3.bf16.msra.mxu1 %v15583_v39 }
 0xaba   :  { %14191 = vmatprep.subr.bf16.mxu0 %v14886_v38  ;;  %14227 = vmatprep.subr.bf16.mxu1 %v14886_v38 }
 0xabc   :  { %13116 = vmatmul.mubr.f32.vlgmr.msra.gmra.mrb[6].mxu0 %v15855_v33  ;;  %13182 = vmatmul.mubr.f32.vlgmr.msra.gmra.mrb[16].mxu1 %v15855_v33 }
 0xabd   :  { %14193 = vmatpush3.bf16.msra.mxu0 %v15839_v49  ;;  %14229 = vmatpush3.bf16.msra.mxu1 %v15537_v30 }
 0xabe   :  { %14194 = vmatprep.subr.bf16.mxu0 %v14886_v38  ;;  %14230 = vmatprep.subr.bf16.mxu1 %v14886_v38 }
 0xabf   :  { %13126 = vmatprep.mubr.msk.f32.mxu0 %vm14887_vm11, %v16412_v15  ;;  %13192 = vmatprep.mubr.msk.f32.mxu1 %vm14887_vm11, %v16412_v15 }
 0xac1   :  { %14196 = vmatpush3.bf16.msra.mxu0 %v15849_v5  ;;  %14232 = vmatpush3.bf16.msra.mxu1 %v15542_v6  ;;  %v7566_v5 = vld [vmem:[%s16389_s4 + $0x78] sm:$0xff] }
 0xac2   :  { %14233 = vmatprep.subr.bf16.mxu0 %v14886_v38  ;;  %14269 = vmatprep.subr.bf16.mxu1 %v14886_v38  ;;  %v7582_v40 = vand.u32 4294901760, %v7566_v5 }
 0xac4   :  { %13127 = vmatmul.mubr.f32.vlgmr.msra.gmra.mrb[6].mxu0 %v15855_v33  ;;  %13193 = vmatmul.mubr.f32.vlgmr.msra.gmra.mrb[16].mxu1 %v15855_v33  ;;  %v15950_v43 = vpack.c.bf16 %v7582_v40, %v7579_v31  ;;  %v7674_v35 = vsub.f32 %v7566_v5, %v7582_v40 }
 0xac5   :  { %14271 = vmatpush3.bf16.msra.mxu1 %v15537_v30  ;;  %13203 = vmatprep.mubr.msk.f32.mxu0 %vm14887_vm11, %v16412_v15 }
 0xac6   :  { %14272 = vmatprep.subr.bf16.mxu1 %v14886_v38  ;;  %13269 = vmatprep.mubr.msk.f32.mxu1 %vm14887_vm11, %v16412_v15  ;;  %v7675_v1 = vand.u32 4294901760, %v7674_v35  ;;  %v14249_v33 = vpack.c.bf16 %v7674_v35, %v7667_v16 }
 0xac7   :  { %14235 = vmatpush3.bf16.msra.mxu0 %v15940_v63 }
 0xac8   :  { %14236 = vmatprep.subr.bf16.mxu0 %v14886_v38  ;;  %v7676_v32 = vsub.f32 %v7674_v35, %v7675_v1  ;;  %v14261_v27 = vpack.c.bf16 %v7675_v1, %v7668_v53 }
 0xac9   :  { %14274 = vmatpush3.bf16.msra.mxu1 %v15542_v6 }
 0xaca   :  { %14275 = vmatprep.subr.bf16.mxu1 %v14886_v38  ;;  %v7677_v58 = vand.u32 4294901760, %v7676_v32 }
 0xacb   :  { %14238 = vmatpush3.bf16.msra.mxu0 %v15950_v43 }
 0xacc   :  { %14239 = vmatprep.subr.bf16.mxu0 %v14886_v38  ;;  %v14243_v59 = vpack.c.bf16 %v7677_v58, %v7670_v57 }
 0xb97   :  { %v7534_v56 = vpop.f32.mrb[16].mxu1 }
 0xb98   :  { %v7538_v61 = vadd.f32 %v15623_v46, %v7534_v56  ;;  %v13194_v23 = vpop.f32.mrb[17].mxu1 }
 0xb9a   :  { %14844 = vtanh.f32 %v7538_v61  ;;  %v12104_v17 = vmul.f32 -1.442695, %v7538_v61 }
 0xb9c   :  { %14846 = vpow2.f32 %v12104_v17 }
 0xba4   :  { %v14845_v14 = vpop.eup %14844 }
 0xba5   :  { %7548 = vrot.lane.b32.xlu0 %v14845_v14, %s14888_s2 }
 0xba6   :  { %v14847_v45 = vpop.eup %14846 }
 0xba7   :  { %v7542_v52 = vadd.f32 1.0, %v14847_v45 }
 0xba9   :  { %14848 = vrcp.f32 %v7542_v52 }
 0xbb3   :  { %v14849_v24 = vpop.eup %14848 }
 0xbb4   :  { %v7546_v54 = vmul.f32 %v14849_v24, %v15829_v12  ;;  %v7653_v12 = vsub.f32 %v7563_v51, %v7573_v62 }
 0xbb6   :  { %v7654_v29 = vand.u32 4294901760, %v7653_v12  ;;  %v14246_v60 = vpack.c.bf16 %v7660_v0, %v7653_v12  ;;  %v8569_v0 = vld [vmem:[%s16389_s4 + $0x88] sm:$0xff] }
 0xbb7   :  { %v8581_v5 = vand.u32 4294901760, %v8569_v0 }
 0xbb8   :  { %v7655_v34 = vsub.f32 %v7653_v12, %v7654_v29  ;;  %v14258_v22 = vpack.c.bf16 %v7661_v37, %v7654_v29  ;;  %v8568_v12 = vld [vmem:[%s16389_s4 + $0x80] sm:$0xff]  ;;  %v8570_v29 = vld [vmem:[%s16389_s4 + $0x90] sm:$0xff]  ;;  %v8571_v37 = vld [vmem:[%s16389_s4 + $0x98] sm:$0xff] }
 0xbb9   :  { %v8578_v18 = vand.u32 4294901760, %v8568_v12  ;;  %v8665_v40 = vsub.f32 %v8569_v0, %v8581_v5  ;;  %v8587_v16 = vand.u32 4294901760, %v8571_v37 }
 0xbba   :  { %v7656_v47 = vand.u32 4294901760, %v7655_v34 }
 0xbbb   :  { %v16041_v31 = vpack.c.bf16 %v8581_v5, %v8578_v18  ;;  %v8666_v34 = vand.u32 4294901760, %v8665_v40  ;;  %v8679_v53 = vsub.f32 %v8571_v37, %v8587_v16 }
 0xbbc   :  { %v14240_v11 = vpack.c.bf16 %v7663_v2, %v7656_v47 }
 0xbbd   :  { %v8667_v2 = vsub.f32 %v8665_v40, %v8666_v34  ;;  %v8680_v32 = vand.u32 4294901760, %v8679_v53 }
 0xbbf   :  { %v8681_v58 = vsub.f32 %v8679_v53, %v8680_v32 }
 0xc17   :  { %v7549_v4 = vpop.permute.xlu0 %7548 }
 0xc18   :  { %v7551_v7 = vmul.f32 %v14849_v24, %v7549_v4 }
 0xc1a   :  { %7553 = vrot.lane.b32.xlu1 %v7551_v7, %s14889_s23 }
 0xc8c   :  { %v7554_v49 = vpop.permute.xlu1 %7553 }
 0xc8d   :  { %v15930_v41 = vadd.f32 %v7554_v49, %v7546_v54 }
 0xc8f   :  { %14850 = vtanh.f32 %v15930_v41 }
 0xc99   :  { %v14851_v46 = vpop.eup %14850 }
 0xc9a   :  { %7559 = vrot.lane.b32.xlu0 %v14851_v46, %s14888_s2 }
 0xd0c   :  { %v7560_v8 = vpop.permute.xlu0 %7559 }
 0xd0d   :  { %v7562_v42 = vmul.f32 %v14849_v24, %v7560_v8 }
 0xd0f   :  { %7568 = vrot.lane.b32.xlu1 %v7562_v42, %s14889_s23  ;;  %v8668_v42 = vand.u32 4294901760, %v8667_v2 }
 0xd81   :  { %v7569_v10 = vpop.permute.xlu1 %7568 }
 0xd82   :  { %v7570_v9 = vsel %vm1827_vm10, %v7569_v10, 0 }
 0xd83   :  { %v15956_v56 = vand.u32 4294901760, %v7570_v9 }
 0xd85   :  { %v7642_v61 = vsub.f32 %v7570_v9, %v15956_v56 }
 0xd87   :  { %v7643_v23 = vand.u32 4294901760, %v7642_v61 }
 0xd89   :  { %v7644_v14 = vsub.f32 %v7642_v61, %v7643_v23 }
 0xd8b   :  { %v7645_v17 = vand.u32 4294901760, %v7644_v14 }
 0xd8d   :  { %13204 = vmatmul.mubr.f32.vlgmr.msra.gmra.mrb[6].mxu0 %v7645_v17  ;;  %13270 = vmatmul.mubr.f32.vlgmr.msra.gmra.mrb[18].mxu1 %v7645_v17 }
 0xd8e   :  { %14241 = vmatpush3.bf16.msra.mxu0 %v14240_v11  ;;  %14277 = vmatpush3.bf16.msra.mxu1 %v15549_v25 }
 0xd8f   :  { %14242 = vmatprep.subr.bf16.mxu0 %v14886_v38  ;;  %14278 = vmatprep.subr.bf16.mxu1 %v14886_v38 }
 0xd90   :  { %13214 = vmatprep.mubr.msk.f32.mxu0 %vm14887_vm11, %v16412_v15  ;;  %13280 = vmatprep.mubr.msk.f32.mxu1 %vm14887_vm11, %v16412_v15 }
 0xd92   :  { %14244 = vmatpush3.bf16.msra.mxu0 %v14243_v59  ;;  %14280 = vmatpush3.bf16.msra.mxu1 %v15554_v50 }
 0xd93   :  { %14245 = vmatprep.subr.bf16.mxu0 %v14886_v38  ;;  %14281 = vmatprep.subr.bf16.mxu1 %v14886_v38 }
 0xd95   :  { %13215 = vmatmul.mubr.f32.vlgmr.msra.gmra.mrb[6].mxu0 %v15956_v56  ;;  %13281 = vmatmul.mubr.f32.vlgmr.msra.gmra.mrb[18].mxu1 %v15956_v56 }
 0xd96   :  { %14247 = vmatpush3.bf16.msra.mxu0 %v14246_v60  ;;  %14283 = vmatpush3.bf16.msra.mxu1 %v15560_v26 }
 0xd97   :  { %14248 = vmatprep.subr.bf16.mxu0 %v14886_v38  ;;  %14284 = vmatprep.subr.bf16.mxu1 %v14886_v38 }
 0xd98   :  { %13225 = vmatprep.mubr.msk.f32.mxu0 %vm14887_vm11, %v16412_v15  ;;  %13291 = vmatprep.mubr.msk.f32.mxu1 %vm14887_vm11, %v16412_v15 }
 0xd9a   :  { %14250 = vmatpush3.bf16.msra.mxu0 %v14249_v33  ;;  %14286 = vmatpush3.bf16.msra.mxu1 %v15565_v13 }
 0xd9b   :  { %14251 = vmatprep.subr.bf16.mxu0 %v14886_v38  ;;  %14287 = vmatprep.subr.bf16.mxu1 %v14886_v38 }
 0xd9d   :  { %13226 = vmatmul.mubr.f32.vlgmr.msra.gmra.mrb[6].mxu0 %v7642_v61  ;;  %13292 = vmatmul.mubr.f32.vlgmr.msra.gmra.mrb[18].mxu1 %v7642_v61 }
 0xd9e   :  { %14253 = vmatpush3.bf16.msra.mxu0 %v15940_v63  ;;  %14289 = vmatpush3.bf16.msra.mxu1 %v15537_v30 }
 0xd9f   :  { %14254 = vmatprep.subr.bf16.mxu0 %v14886_v38  ;;  %14290 = vmatprep.subr.bf16.mxu1 %v14886_v38 }
 0xda0   :  { %13236 = vmatprep.mubr.msk.f32.mxu0 %vm14887_vm11, %v16412_v15  ;;  %13302 = vmatprep.mubr.msk.f32.mxu1 %vm14887_vm11, %v16412_v15 }
 0xda2   :  { %14256 = vmatpush3.bf16.msra.mxu0 %v15950_v43  ;;  %14292 = vmatpush3.bf16.msra.mxu1 %v15542_v6 }
 0xda3   :  { %14257 = vmatprep.subr.bf16.mxu0 %v14886_v38  ;;  %14293 = vmatprep.subr.bf16.mxu1 %v14886_v38 }
 0xda5   :  { %13237 = vmatmul.mubr.f32.vlgmr.msra.gmra.mrb[6].mxu0 %v7643_v23  ;;  %13303 = vmatmul.mubr.f32.vlgmr.msra.gmra.mrb[18].mxu1 %v7643_v23 }
 0xda6   :  { %14259 = vmatpush3.bf16.msra.mxu0 %v14258_v22  ;;  %14295 = vmatpush3.bf16.msra.mxu1 %v15578_v20  ;;  %v8682_v22 = vand.u32 4294901760, %v8681_v58 }
 0xda7   :  { %14260 = vmatprep.subr.bf16.mxu0 %v14886_v38  ;;  %14296 = vmatprep.subr.bf16.mxu1 %v14886_v38 }
 0xda8   :  { %13247 = vmatprep.mubr.msk.f32.mxu0 %vm14887_vm11, %v16412_v15  ;;  %13313 = vmatprep.mubr.msk.f32.mxu1 %vm14887_vm11, %v16412_v15 }
 0xdaa   :  { %14262 = vmatpush3.bf16.msra.mxu0 %v14261_v27  ;;  %14298 = vmatpush3.bf16.msra.mxu1 %v15583_v39 }
 0xdab   :  { %14263 = vmatprep.subr.bf16.mxu0 %v14886_v38  ;;  %14299 = vmatprep.subr.bf16.mxu1 %v14886_v38 }
 0xdad   :  { %13248 = vmatmul.mubr.f32.vlgmr.msra.gmra.mrb[6].mxu0 %v15956_v56  ;;  %13314 = vmatmul.mubr.f32.vlgmr.msra.gmra.mrb[18].mxu1 %v15956_v56 }
 0xdae   :  { %14265 = vmatpush3.bf16.msra.mxu0 %v15940_v63  ;;  %14301 = vmatpush3.bf16.msra.mxu1 %v15537_v30 }
 0xdaf   :  { %14266 = vmatprep.subr.bf16.mxu0 %v14886_v38  ;;  %14302 = vmatprep.subr.bf16.mxu1 %v14886_v38 }
 0xdb0   :  { %13258 = vmatprep.mubr.msk.f32.mxu0 %vm14887_vm11, %v16412_v15  ;;  %13324 = vmatprep.mubr.msk.f32.mxu1 %vm14887_vm11, %v16412_v15 }
 0xdb2   :  { %14268 = vmatpush3.bf16.msra.mxu0 %v15950_v43  ;;  %14304 = vmatpush3.bf16.msra.mxu1 %v15542_v6  ;;  %v8584_v43 = vand.u32 4294901760, %v8570_v29 }
 0xdb3   :  { %14305 = vmatprep.subr.bf16.mxu0 %v14886_v38  ;;  %14341 = vmatprep.subr.bf16.mxu1 %v14886_v38 }
 0xdb4   :  { %v16051_v44 = vpack.c.bf16 %v8587_v16, %v8584_v43  ;;  %v8672_v47 = vsub.f32 %v8570_v29, %v8584_v43  ;;  %v9575_v16 = vld [vmem:[%s16389_s4 + $0xb0] sm:$0xff] }
 0xdb5   :  { %13259 = vmatmul.mubr.f32.vlgmr.msra.gmra.mrb[6].mxu0 %v15956_v56  ;;  %13325 = vmatmul.mubr.f32.vlgmr.msra.gmra.mrb[18].mxu1 %v15956_v56 }
 0xdb6   :  { %14343 = vmatpush3.bf16.msra.mxu1 %v15537_v30  ;;  %13335 = vmatprep.mubr.msk.f32.mxu0 %vm14887_vm11, %v16412_v15  ;;  %v8673_v28 = vand.u32 4294901760, %v8672_v47  ;;  %v14321_v9 = vpack.c.bf16 %v8679_v53, %v8672_v47 }
 0xdb7   :  { %14344 = vmatprep.subr.bf16.mxu1 %v14886_v38  ;;  %13401 = vmatprep.mubr.msk.f32.mxu1 %vm14887_vm11, %v16412_v15 }
 0xdb8   :  { %14307 = vmatpush3.bf16.msra.mxu0 %v16041_v31  ;;  %v8674_v57 = vsub.f32 %v8672_v47, %v8673_v28  ;;  %v14333_v61 = vpack.c.bf16 %v8680_v32, %v8673_v28 }
 0xdb9   :  { %14308 = vmatprep.subr.bf16.mxu0 %v14886_v38 }
 0xdba   :  { %14346 = vmatpush3.bf16.msra.mxu1 %v15542_v6  ;;  %v8675_v33 = vand.u32 4294901760, %v8674_v57 }
 0xdbb   :  { %14347 = vmatprep.subr.bf16.mxu1 %v14886_v38 }
 0xdbc   :  { %14310 = vmatpush3.bf16.msra.mxu0 %v16051_v44  ;;  %v14315_v27 = vpack.c.bf16 %v8682_v22, %v8675_v33 }
 0xdbd   :  { %14311 = vmatprep.subr.bf16.mxu0 %v14886_v38 }
 0xe88   :  { %v8539_v45 = vpop.f32.mrb[18].mxu1 }
 0xe89   :  { %v8543_v52 = vadd.f32 %v15612_v19, %v8539_v45  ;;  %v13326_v24 = vpop.f32.mrb[19].mxu1 }
 0xe8b   :  { %14852 = vtanh.f32 %v8543_v52  ;;  %v12105_v7 = vmul.f32 -1.442695, %v8543_v52 }
 0xe8d   :  { %14854 = vpow2.f32 %v12105_v7 }
 0xe95   :  { %v14853_v4 = vpop.eup %14852 }
 0xe96   :  { %8553 = vrot.lane.b32.xlu0 %v14853_v4, %s14888_s2 }
 0xe97   :  { %v14855_v54 = vpop.eup %14854 }
 0xe98   :  { %v8547_v49 = vadd.f32 1.0, %v14855_v54 }
 0xe9a   :  { %14856 = vrcp.f32 %v8547_v49 }
 0xea4   :  { %v14857_v46 = vpop.eup %14856 }
 0xea5   :  { %v8551_v62 = vmul.f32 %v14857_v46, %v15930_v41  ;;  %v8658_v41 = vsub.f32 %v8568_v12, %v8578_v18 }
 0xea7   :  { %v8659_v35 = vand.u32 4294901760, %v8658_v41  ;;  %v14318_v10 = vpack.c.bf16 %v8665_v40, %v8658_v41 }
 0xea9   :  { %v8660_v1 = vsub.f32 %v8658_v41, %v8659_v35  ;;  %v14330_v56 = vpack.c.bf16 %v8666_v34, %v8659_v35  ;;  %v9574_v41 = vld [vmem:[%s16389_s4 + $0xa8] sm:$0xff]  ;;  %v9576_v35 = vld [vmem:[%s16389_s4 + $0xb8] sm:$0xff]  ;;  %v9589_v34 = vand.u32 4294901760, %v9575_v16 }
 0xeaa   :  { %v9586_v29 = vand.u32 4294901760, %v9574_v41 }
 0xeab   :  { %v8661_v8 = vand.u32 4294901760, %v8660_v1  ;;  %v9677_v2 = vsub.f32 %v9575_v16, %v9589_v34 }
 0xeac   :  { %v9670_v43 = vsub.f32 %v9574_v41, %v9586_v29 }
 0xead   :  { %v14312_v60 = vpack.c.bf16 %v8668_v42, %v8661_v8 }
 0xeae   :  { %v9671_v53 = vand.u32 4294901760, %v9670_v43 }
 0xeb0   :  { %v9672_v32 = vsub.f32 %v9670_v43, %v9671_v53 }
 0xeb2   :  { %v9673_v58 = vand.u32 4294901760, %v9672_v32 }
 0xf08   :  { %v8554_v51 = vpop.permute.xlu0 %8553 }
 0xf09   :  { %v8556_v55 = vmul.f32 %v14857_v46, %v8554_v51 }
 0xf0b   :  { %8558 = vrot.lane.b32.xlu1 %v8556_v55, %s14889_s23 }
 0xf7d   :  { %v8559_v3 = vpop.permute.xlu1 %8558 }
 0xf7e   :  { %v16031_v63 = vadd.f32 %v8559_v3, %v8551_v62 }
 0xf80   :  { %14858 = vtanh.f32 %v16031_v63 }
 0xf8a   :  { %v14859_v19 = vpop.eup %14858 }
 0xf8b   :  { %8564 = vrot.lane.b32.xlu0 %v14859_v19, %s14888_s2 }
 0xffd   :  { %v8565_v11 = vpop.permute.xlu0 %8564 }
 0xffe   :  { %v8567_v59 = vmul.f32 %v14857_v46, %v8565_v11  ;;  %v9678_v11 = vand.u32 4294901760, %v9677_v2 }
0x1000   :  { %8573 = vrot.lane.b32.xlu1 %v8567_v59, %s14889_s23 }
0x1072   :  { %v8574_v23 = vpop.permute.xlu1 %8573 }
0x1073   :  { %v8575_v14 = vsel %vm1827_vm10, %v8574_v23, 0 }
0x1074   :  { %v16057_v17 = vand.u32 4294901760, %v8575_v14 }
0x1076   :  { %v8647_v45 = vsub.f32 %v8575_v14, %v16057_v17 }
0x1078   :  { %v8648_v52 = vand.u32 4294901760, %v8647_v45 }
0x107a   :  { %v8649_v24 = vsub.f32 %v8647_v45, %v8648_v52 }
0x107c   :  { %v8650_v4 = vand.u32 4294901760, %v8649_v24 }
0x107e   :  { %13336 = vmatmul.mubr.f32.vlgmr.msra.gmra.mrb[6].mxu0 %v8650_v4  ;;  %13402 = vmatmul.mubr.f32.vlgmr.msra.gmra.mrb[20].mxu1 %v8650_v4 }
0x107f   :  { %14313 = vmatpush3.bf16.msra.mxu0 %v14312_v60  ;;  %14349 = vmatpush3.bf16.msra.mxu1 %v15549_v25  ;;  %v9679_v60 = vsub.f32 %v9677_v2, %v9678_v11 }
0x1080   :  { %14314 = vmatprep.subr.bf16.mxu0 %v14886_v38  ;;  %14350 = vmatprep.subr.bf16.mxu1 %v14886_v38 }
0x1081   :  { %13346 = vmatprep.mubr.msk.f32.mxu0 %vm14887_vm11, %v16412_v15  ;;  %13412 = vmatprep.mubr.msk.f32.mxu1 %vm14887_vm11, %v16412_v15 }
0x1083   :  { %14316 = vmatpush3.bf16.msra.mxu0 %v14315_v27  ;;  %14352 = vmatpush3.bf16.msra.mxu1 %v15554_v50 }
0x1084   :  { %14317 = vmatprep.subr.bf16.mxu0 %v14886_v38  ;;  %14353 = vmatprep.subr.bf16.mxu1 %v14886_v38 }
0x1086   :  { %13347 = vmatmul.mubr.f32.vlgmr.msra.gmra.mrb[6].mxu0 %v16057_v17  ;;  %13413 = vmatmul.mubr.f32.vlgmr.msra.gmra.mrb[20].mxu1 %v16057_v17 }
0x1087   :  { %14319 = vmatpush3.bf16.msra.mxu0 %v14318_v10  ;;  %14355 = vmatpush3.bf16.msra.mxu1 %v15560_v26  ;;  %v9680_v10 = vand.u32 4294901760, %v9679_v60 }
0x1088   :  { %14320 = vmatprep.subr.bf16.mxu0 %v14886_v38  ;;  %14356 = vmatprep.subr.bf16.mxu1 %v14886_v38 }
0x1089   :  { %13357 = vmatprep.mubr.msk.f32.mxu0 %vm14887_vm11, %v16412_v15  ;;  %13423 = vmatprep.mubr.msk.f32.mxu1 %vm14887_vm11, %v16412_v15 }
0x108b   :  { %14322 = vmatpush3.bf16.msra.mxu0 %v14321_v9  ;;  %14358 = vmatpush3.bf16.msra.mxu1 %v15565_v13 }
0x108c   :  { %14323 = vmatprep.subr.bf16.mxu0 %v14886_v38  ;;  %14359 = vmatprep.subr.bf16.mxu1 %v14886_v38 }
0x108e   :  { %13358 = vmatmul.mubr.f32.vlgmr.msra.gmra.mrb[6].mxu0 %v8647_v45  ;;  %13424 = vmatmul.mubr.f32.vlgmr.msra.gmra.mrb[20].mxu1 %v8647_v45 }
0x108f   :  { %14325 = vmatpush3.bf16.msra.mxu0 %v16041_v31  ;;  %14361 = vmatpush3.bf16.msra.mxu1 %v15537_v30 }
0x1090   :  { %14326 = vmatprep.subr.bf16.mxu0 %v14886_v38  ;;  %14362 = vmatprep.subr.bf16.mxu1 %v14886_v38 }
0x1091   :  { %13368 = vmatprep.mubr.msk.f32.mxu0 %vm14887_vm11, %v16412_v15  ;;  %13434 = vmatprep.mubr.msk.f32.mxu1 %vm14887_vm11, %v16412_v15 }
0x1093   :  { %14328 = vmatpush3.bf16.msra.mxu0 %v16051_v44  ;;  %14364 = vmatpush3.bf16.msra.mxu1 %v15542_v6 }
0x1094   :  { %14329 = vmatprep.subr.bf16.mxu0 %v14886_v38  ;;  %14365 = vmatprep.subr.bf16.mxu1 %v14886_v38 }
0x1096   :  { %13369 = vmatmul.mubr.f32.vlgmr.msra.gmra.mrb[6].mxu0 %v8648_v52  ;;  %13435 = vmatmul.mubr.f32.vlgmr.msra.gmra.mrb[20].mxu1 %v8648_v52 }
0x1097   :  { %14331 = vmatpush3.bf16.msra.mxu0 %v14330_v56  ;;  %14367 = vmatpush3.bf16.msra.mxu1 %v15578_v20 }
0x1098   :  { %14332 = vmatprep.subr.bf16.mxu0 %v14886_v38  ;;  %14368 = vmatprep.subr.bf16.mxu1 %v14886_v38 }
0x1099   :  { %13379 = vmatprep.mubr.msk.f32.mxu0 %vm14887_vm11, %v16412_v15  ;;  %13445 = vmatprep.mubr.msk.f32.mxu1 %vm14887_vm11, %v16412_v15 }
0x109b   :  { %14334 = vmatpush3.bf16.msra.mxu0 %v14333_v61  ;;  %14370 = vmatpush3.bf16.msra.mxu1 %v15583_v39 }
0x109c   :  { %14335 = vmatprep.subr.bf16.mxu0 %v14886_v38  ;;  %14371 = vmatprep.subr.bf16.mxu1 %v14886_v38 }
0x109e   :  { %13380 = vmatmul.mubr.f32.vlgmr.msra.gmra.mrb[6].mxu0 %v16057_v17  ;;  %13446 = vmatmul.mubr.f32.vlgmr.msra.gmra.mrb[20].mxu1 %v16057_v17 }
0x109f   :  { %14337 = vmatpush3.bf16.msra.mxu0 %v16041_v31  ;;  %14373 = vmatpush3.bf16.msra.mxu1 %v15537_v30  ;;  %v9573_v31 = vld [vmem:[%s16389_s4 + $0xa0] sm:$0xff] }
0x10a0   :  { %14338 = vmatprep.subr.bf16.mxu0 %v14886_v38  ;;  %14374 = vmatprep.subr.bf16.mxu1 %v14886_v38  ;;  %v9583_v40 = vand.u32 4294901760, %v9573_v31 }
0x10a1   :  { %13390 = vmatprep.mubr.msk.f32.mxu0 %vm14887_vm11, %v16412_v15  ;;  %13456 = vmatprep.mubr.msk.f32.mxu1 %vm14887_vm11, %v16412_v15 }
0x10a2   :  { %v16142_v37 = vpack.c.bf16 %v9586_v29, %v9583_v40  ;;  %v10578_v29 = vld [vmem:[%s16389_s4 + $0xc0] sm:$0xff] }
0x10a3   :  { %14340 = vmatpush3.bf16.msra.mxu0 %v16051_v44  ;;  %14376 = vmatpush3.bf16.msra.mxu1 %v15542_v6  ;;  %v9592_v44 = vand.u32 4294901760, %v9576_v35 }
0x10a4   :  { %14377 = vmatprep.subr.bf16.mxu0 %v14886_v38  ;;  %14413 = vmatprep.subr.bf16.mxu1 %v14886_v38 }
0x10a5   :  { %v16152_v1 = vpack.c.bf16 %v9592_v44, %v9589_v34  ;;  %v9684_v8 = vsub.f32 %v9576_v35, %v9592_v44  ;;  %v10580_v34 = vld [vmem:[%s16389_s4 + $0xd0] sm:$0xff]  ;;  %v10581_v44 = vld [vmem:[%s16389_s4 + $0xd8] sm:$0xff] }
0x10a6   :  { %13391 = vmatmul.mubr.f32.vlgmr.msra.gmra.mrb[6].mxu0 %v16057_v17  ;;  %13457 = vmatmul.mubr.f32.vlgmr.msra.gmra.mrb[20].mxu1 %v16057_v17 }
0x10a7   :  { %14415 = vmatpush3.bf16.msra.mxu1 %v15537_v30  ;;  %13467 = vmatprep.mubr.msk.f32.mxu0 %vm14887_vm11, %v16412_v15  ;;  %v9685_v57 = vand.u32 4294901760, %v9684_v8  ;;  %v14393_v23 = vpack.c.bf16 %v9684_v8, %v9677_v2 }
0x10a8   :  { %14416 = vmatprep.subr.bf16.mxu1 %v14886_v38  ;;  %13533 = vmatprep.mubr.msk.f32.mxu1 %vm14887_vm11, %v16412_v15 }
0x10a9   :  { %14379 = vmatpush3.bf16.msra.mxu0 %v16142_v37  ;;  %v9686_v33 = vsub.f32 %v9684_v8, %v9685_v57  ;;  %v14405_v17 = vpack.c.bf16 %v9685_v57, %v9678_v11 }
0x10aa   :  { %14380 = vmatprep.subr.bf16.mxu0 %v14886_v38 }
0x10ab   :  { %14418 = vmatpush3.bf16.msra.mxu1 %v15542_v6  ;;  %v9687_v9 = vand.u32 4294901760, %v9686_v33 }
0x10ac   :  { %14419 = vmatprep.subr.bf16.mxu1 %v14886_v38 }
0x10ad   :  { %14382 = vmatpush3.bf16.msra.mxu0 %v16152_v1  ;;  %v14387_v56 = vpack.c.bf16 %v9687_v9, %v9680_v10 }
0x10ae   :  { %14383 = vmatprep.subr.bf16.mxu0 %v14886_v38 }
0x1179   :  { %v9544_v7 = vpop.f32.mrb[20].mxu1 }
0x117a   :  { %v9548_v54 = vadd.f32 %v15616_v48, %v9544_v7  ;;  %v13458_v49 = vpop.f32.mrb[21].mxu1 }
0x117c   :  { %14860 = vtanh.f32 %v9548_v54  ;;  %v12106_v51 = vmul.f32 -1.442695, %v9548_v54 }
0x117e   :  { %14862 = vpow2.f32 %v12106_v51 }
0x1186   :  { %v14861_v46 = vpop.eup %14860 }
0x1187   :  { %9558 = vrot.lane.b32.xlu0 %v14861_v46, %s14888_s2 }
0x1188   :  { %v14863_v55 = vpop.eup %14862 }
0x1189   :  { %v9552_v62 = vadd.f32 1.0, %v14863_v55 }
0x118b   :  { %14864 = vrcp.f32 %v9552_v62 }
0x1195   :  { %v14865_v3 = vpop.eup %14864 }
0x1196   :  { %v9556_v0 = vmul.f32 %v14865_v3, %v16031_v63  ;;  %v9663_v63 = vsub.f32 %v9573_v31, %v9583_v40 }
0x1198   :  { %v9664_v47 = vand.u32 4294901760, %v9663_v63  ;;  %v14390_v61 = vpack.c.bf16 %v9670_v43, %v9663_v63 }
0x119a   :  { %v9665_v28 = vsub.f32 %v9663_v63, %v9664_v47  ;;  %v14402_v14 = vpack.c.bf16 %v9671_v53, %v9664_v47  ;;  %v10588_v63 = vand.u32 4294901760, %v10578_v29  ;;  %v10594_v47 = vand.u32 4294901760, %v10580_v34 }
0x119b   :  { %v10597_v53 = vand.u32 4294901760, %v10581_v44 }
0x119c   :  { %v9666_v42 = vand.u32 4294901760, %v9665_v28  ;;  %v10682_v28 = vsub.f32 %v10580_v34, %v10594_v47 }
0x119d   :  { %v16253_v8 = vpack.c.bf16 %v10597_v53, %v10594_v47  ;;  %v10689_v32 = vsub.f32 %v10581_v44, %v10597_v53 }
0x119e   :  { %v14384_v27 = vpack.c.bf16 %v9673_v58, %v9666_v42  ;;  %v10683_v58 = vand.u32 4294901760, %v10682_v28 }
0x11f9   :  { %v9559_v19 = vpop.permute.xlu0 %9558 }
0x11fa   :  { %v9561_v12 = vmul.f32 %v14865_v3, %v9559_v19 }
0x11fc   :  { %9563 = vrot.lane.b32.xlu1 %v9561_v12, %s14889_s23 }
0x126e   :  { %v9564_v18 = vpop.permute.xlu1 %9563 }
0x126f   :  { %v16132_v5 = vadd.f32 %v9564_v18, %v9556_v0 }
0x1271   :  { %14866 = vtanh.f32 %v16132_v5 }
0x127b   :  { %v14867_v48 = vpop.eup %14866 }
0x127c   :  { %9569 = vrot.lane.b32.xlu0 %v14867_v48, %s14888_s2 }
0x12ee   :  { %v9570_v59 = vpop.permute.xlu0 %9569 }
0x12ef   :  { %v9572_v22 = vmul.f32 %v14865_v3, %v9570_v59  ;;  %v10690_v59 = vand.u32 4294901760, %v10689_v32 }
0x12f1   :  { %9578 = vrot.lane.b32.xlu1 %v9572_v22, %s14889_s23  ;;  %v10684_v22 = vsub.f32 %v10682_v28, %v10683_v58 }
0x1363   :  { %v9579_v45 = vpop.permute.xlu1 %9578 }
0x1364   :  { %v9580_v52 = vsel %vm1827_vm10, %v9579_v45, 0 }
0x1365   :  { %v16158_v24 = vand.u32 4294901760, %v9580_v52 }
0x1367   :  { %v9652_v4 = vsub.f32 %v9580_v52, %v16158_v24  ;;  %v14477_v52 = vpack.c.bf16 %v10690_v59, %v10683_v58 }
0x1369   :  { %v9653_v7 = vand.u32 4294901760, %v9652_v4 }
0x136b   :  { %v9654_v54 = vsub.f32 %v9652_v4, %v9653_v7 }
0x136d   :  { %v9655_v49 = vand.u32 4294901760, %v9654_v54 }
0x136f   :  { %13468 = vmatmul.mubr.f32.vlgmr.msra.gmra.mrb[6].mxu0 %v9655_v49  ;;  %13534 = vmatmul.mubr.f32.vlgmr.msra.gmra.mrb[22].mxu1 %v9655_v49 }
0x1370   :  { %14385 = vmatpush3.bf16.msra.mxu0 %v14384_v27  ;;  %14421 = vmatpush3.bf16.msra.mxu1 %v15549_v25  ;;  %v10691_v27 = vsub.f32 %v10689_v32, %v10690_v59 }
0x1371   :  { %14386 = vmatprep.subr.bf16.mxu0 %v14886_v38  ;;  %14422 = vmatprep.subr.bf16.mxu1 %v14886_v38 }
0x1372   :  { %13478 = vmatprep.mubr.msk.f32.mxu0 %vm14887_vm11, %v16412_v15  ;;  %13544 = vmatprep.mubr.msk.f32.mxu1 %vm14887_vm11, %v16412_v15 }
0x1374   :  { %14388 = vmatpush3.bf16.msra.mxu0 %v14387_v56  ;;  %14424 = vmatpush3.bf16.msra.mxu1 %v15554_v50  ;;  %v10685_v56 = vand.u32 4294901760, %v10684_v22 }
0x1375   :  { %14389 = vmatprep.subr.bf16.mxu0 %v14886_v38  ;;  %14425 = vmatprep.subr.bf16.mxu1 %v14886_v38 }
0x1377   :  { %13479 = vmatmul.mubr.f32.vlgmr.msra.gmra.mrb[6].mxu0 %v16158_v24  ;;  %13545 = vmatmul.mubr.f32.vlgmr.msra.gmra.mrb[22].mxu1 %v16158_v24 }
0x1378   :  { %14391 = vmatpush3.bf16.msra.mxu0 %v14390_v61  ;;  %14427 = vmatpush3.bf16.msra.mxu1 %v15560_v26  ;;  %v10692_v61 = vand.u32 4294901760, %v10691_v27 }
0x1379   :  { %14392 = vmatprep.subr.bf16.mxu0 %v14886_v38  ;;  %14428 = vmatprep.subr.bf16.mxu1 %v14886_v38 }
0x137a   :  { %13489 = vmatprep.mubr.msk.f32.mxu0 %vm14887_vm11, %v16412_v15  ;;  %13555 = vmatprep.mubr.msk.f32.mxu1 %vm14887_vm11, %v16412_v15 }
0x137c   :  { %14394 = vmatpush3.bf16.msra.mxu0 %v14393_v23  ;;  %14430 = vmatpush3.bf16.msra.mxu1 %v15565_v13  ;;  %v14459_v23 = vpack.c.bf16 %v10692_v61, %v10685_v56 }
0x137d   :  { %14395 = vmatprep.subr.bf16.mxu0 %v14886_v38  ;;  %14431 = vmatprep.subr.bf16.mxu1 %v14886_v38 }
0x137f   :  { %13490 = vmatmul.mubr.f32.vlgmr.msra.gmra.mrb[6].mxu0 %v9652_v4  ;;  %13556 = vmatmul.mubr.f32.vlgmr.msra.gmra.mrb[22].mxu1 %v9652_v4 }
0x1380   :  { %14397 = vmatpush3.bf16.msra.mxu0 %v16142_v37  ;;  %14433 = vmatpush3.bf16.msra.mxu1 %v15537_v30 }
0x1381   :  { %14398 = vmatprep.subr.bf16.mxu0 %v14886_v38  ;;  %14434 = vmatprep.subr.bf16.mxu1 %v14886_v38 }
0x1382   :  { %13500 = vmatprep.mubr.msk.f32.mxu0 %vm14887_vm11, %v16412_v15  ;;  %13566 = vmatprep.mubr.msk.f32.mxu1 %vm14887_vm11, %v16412_v15 }
0x1384   :  { %14400 = vmatpush3.bf16.msra.mxu0 %v16152_v1  ;;  %14436 = vmatpush3.bf16.msra.mxu1 %v15542_v6 }
0x1385   :  { %14401 = vmatprep.subr.bf16.mxu0 %v14886_v38  ;;  %14437 = vmatprep.subr.bf16.mxu1 %v14886_v38 }
0x1387   :  { %13501 = vmatmul.mubr.f32.vlgmr.msra.gmra.mrb[6].mxu0 %v9653_v7  ;;  %13567 = vmatmul.mubr.f32.vlgmr.msra.gmra.mrb[22].mxu1 %v9653_v7 }
0x1388   :  { %14403 = vmatpush3.bf16.msra.mxu0 %v14402_v14  ;;  %14439 = vmatpush3.bf16.msra.mxu1 %v15578_v20 }
0x1389   :  { %14404 = vmatprep.subr.bf16.mxu0 %v14886_v38  ;;  %14440 = vmatprep.subr.bf16.mxu1 %v14886_v38 }
0x138a   :  { %13511 = vmatprep.mubr.msk.f32.mxu0 %vm14887_vm11, %v16412_v15  ;;  %13577 = vmatprep.mubr.msk.f32.mxu1 %vm14887_vm11, %v16412_v15 }
0x138c   :  { %14406 = vmatpush3.bf16.msra.mxu0 %v14405_v17  ;;  %14442 = vmatpush3.bf16.msra.mxu1 %v15583_v39  ;;  %v14465_v17 = vpack.c.bf16 %v10689_v32, %v10682_v28 }
0x138d   :  { %14407 = vmatprep.subr.bf16.mxu0 %v14886_v38  ;;  %14443 = vmatprep.subr.bf16.mxu1 %v14886_v38 }
0x138f   :  { %13512 = vmatmul.mubr.f32.vlgmr.msra.gmra.mrb[6].mxu0 %v16158_v24  ;;  %13578 = vmatmul.mubr.f32.vlgmr.msra.gmra.mrb[22].mxu1 %v16158_v24 }
0x1390   :  { %14409 = vmatpush3.bf16.msra.mxu0 %v16142_v37  ;;  %14445 = vmatpush3.bf16.msra.mxu1 %v15537_v30  ;;  %v10579_v37 = vld [vmem:[%s16389_s4 + $0xc8] sm:$0xff] }
0x1391   :  { %14410 = vmatprep.subr.bf16.mxu0 %v14886_v38  ;;  %14446 = vmatprep.subr.bf16.mxu1 %v14886_v38  ;;  %v10591_v43 = vand.u32 4294901760, %v10579_v37 }
0x1392   :  { %13522 = vmatprep.mubr.msk.f32.mxu0 %vm14887_vm11, %v16412_v15  ;;  %13588 = vmatprep.mubr.msk.f32.mxu1 %vm14887_vm11, %v16412_v15 }
0x1393   :  { %v16243_v16 = vpack.c.bf16 %v10591_v43, %v10588_v63  ;;  %v10675_v35 = vsub.f32 %v10579_v37, %v10591_v43  ;;  %v11586_v37 = vld [vmem:[%s16389_s4 + $0xf8] sm:$0xff] }
0x1394   :  { %14412 = vmatpush3.bf16.msra.mxu0 %v16152_v1  ;;  %14448 = vmatpush3.bf16.msra.mxu1 %v15542_v6  ;;  %v11602_v43 = vand.u32 4294901760, %v11586_v37 }
0x1395   :  { %14449 = vmatprep.subr.bf16.mxu0 %v14886_v38  ;;  %14485 = vmatprep.subr.bf16.mxu1 %v14886_v38  ;;  %v10676_v2 = vand.u32 4294901760, %v10675_v35 }
0x1396   :  { %v11694_v44 = vsub.f32 %v11586_v37, %v11602_v43 }
0x1397   :  { %13523 = vmatmul.mubr.f32.vlgmr.msra.gmra.mrb[6].mxu0 %v16158_v24  ;;  %13589 = vmatmul.mubr.f32.vlgmr.msra.gmra.mrb[22].mxu1 %v16158_v24  ;;  %v10677_v11 = vsub.f32 %v10675_v35, %v10676_v2 }
0x1398   :  { %14487 = vmatpush3.bf16.msra.mxu1 %v15537_v30  ;;  %13599 = vmatprep.mubr.msk.f32.mxu0 %vm14887_vm11, %v16412_v15 }
0x1399   :  { %14488 = vmatprep.subr.bf16.mxu1 %v14886_v38  ;;  %13665 = vmatprep.mubr.msk.f32.mxu1 %vm14887_vm11, %v16412_v15  ;;  %v10678_v60 = vand.u32 4294901760, %v10677_v11 }
0x139a   :  { %14451 = vmatpush3.bf16.msra.mxu0 %v16243_v16 }
0x139b   :  { %14452 = vmatprep.subr.bf16.mxu0 %v14886_v38 }
0x139c   :  { %14490 = vmatpush3.bf16.msra.mxu1 %v15542_v6 }
0x139d   :  { %14491 = vmatprep.subr.bf16.mxu1 %v14886_v38 }
0x139e   :  { %14454 = vmatpush3.bf16.msra.mxu0 %v16253_v8 }
0x139f   :  { %14455 = vmatprep.subr.bf16.mxu0 %v14886_v38 }
0x146a   :  { %v10549_v46 = vpop.f32.mrb[22].mxu1 }
0x146b   :  { %v10553_v51 = vadd.f32 %v15614_v36, %v10549_v46  ;;  %v13590_v55 = vpop.f32.mrb[23].mxu1 }
0x146d   :  { %14868 = vtanh.f32 %v10553_v51  ;;  %v12107_v3 = vmul.f32 -1.442695, %v10553_v51 }
0x146f   :  { %14870 = vpow2.f32 %v12107_v3 }
0x1477   :  { %v14869_v62 = vpop.eup %14868 }
0x1478   :  { %10563 = vrot.lane.b32.xlu0 %v14869_v62, %s14888_s2 }
0x1479   :  { %v14871_v19 = vpop.eup %14870 }
0x147a   :  { %v10557_v12 = vadd.f32 1.0, %v14871_v19 }
0x147c   :  { %14872 = vrcp.f32 %v10557_v12 }
0x1486   :  { %v14873_v0 = vpop.eup %14872 }
0x1487   :  { %v10561_v31 = vmul.f32 %v14873_v0, %v16132_v5  ;;  %v10668_v5 = vsub.f32 %v10578_v29, %v10588_v63  ;;  %v11585_v29 = vld [vmem:[%s16389_s4 + $0xf0] sm:$0xff] }
0x1488   :  { %v11599_v63 = vand.u32 4294901760, %v11585_v29 }
0x1489   :  { %v10669_v1 = vand.u32 4294901760, %v10668_v5  ;;  %v14462_v14 = vpack.c.bf16 %v10675_v35, %v10668_v5 }
0x148a   :  { %v16344_v35 = vpack.c.bf16 %v11602_v43, %v11599_v63  ;;  %v11687_v34 = vsub.f32 %v11585_v29, %v11599_v63 }
0x148b   :  { %v10670_v42 = vsub.f32 %v10668_v5, %v10669_v1  ;;  %v14474_v45 = vpack.c.bf16 %v10676_v2, %v10669_v1 }
0x148c   :  { %v11688_v2 = vand.u32 4294901760, %v11687_v34  ;;  %v14537_v27 = vpack.c.bf16 %v11694_v44, %v11687_v34 }
0x148d   :  { %v10671_v57 = vand.u32 4294901760, %v10670_v42 }
0x148e   :  { %v11689_v42 = vsub.f32 %v11687_v34, %v11688_v2 }
0x148f   :  { %v14456_v9 = vpack.c.bf16 %v10678_v60, %v10671_v57 }
0x1490   :  { %v11690_v59 = vand.u32 4294901760, %v11689_v42 }
0x14ea   :  { %v10564_v18 = vpop.permute.xlu0 %10563 }
0x14eb   :  { %v10566_v48 = vmul.f32 %v14873_v0, %v10564_v18  ;;  %v11584_v18 = vld [vmem:[%s16389_s4 + $0xe8] sm:$0xff] }
0x14ed   :  { %10568 = vrot.lane.b32.xlu1 %v10566_v48, %s14889_s23 }
0x155f   :  { %v10569_v41 = vpop.permute.xlu1 %10568 }
0x1560   :  { %v16233_v40 = vadd.f32 %v10569_v41, %v10561_v31  ;;  %v11596_v31 = vand.u32 4294901760, %v11584_v18 }
0x1562   :  { %14874 = vtanh.f32 %v16233_v40 }
0x156c   :  { %v14875_v36 = vpop.eup %14874 }
0x156d   :  { %10574 = vrot.lane.b32.xlu0 %v14875_v36, %s14888_s2 }
0x15df   :  { %v10575_v33 = vpop.permute.xlu0 %10574 }
0x15e0   :  { %v10577_v10 = vmul.f32 %v14873_v0, %v10575_v33  ;;  %v11583_v0 = vld [vmem:[%s16389_s4 + $0xe0] sm:$0xff] }
0x15e1   :  { %v11593_v48 = vand.u32 4294901760, %v11583_v0 }
0x15e2   :  { %10583 = vrot.lane.b32.xlu1 %v10577_v10, %s14889_s23 }
0x15e3   :  { %v16334_v41 = vpack.c.bf16 %v11596_v31, %v11593_v48  ;;  %v11673_v36 = vsub.f32 %v11583_v0, %v11593_v48 }
0x1654   :  { %v10584_v24 = vpop.permute.xlu1 %10583 }
0x1655   :  { %v10585_v4 = vsel %vm1827_vm10, %v10584_v24, 0  ;;  %v12100_v24 = vld [vmem:[%s16389_s4 + $0x100] ss:$0 sm:$0xff] }
0x1656   :  { %v16259_v7 = vand.u32 4294901760, %v10585_v4 }
0x1658   :  { %v10657_v54 = vsub.f32 %v10585_v4, %v16259_v7 }
0x165a   :  { %v10658_v49 = vand.u32 4294901760, %v10657_v54 }
0x165c   :  { %v10659_v46 = vsub.f32 %v10657_v54, %v10658_v49 }
0x165e   :  { %v10660_v51 = vand.u32 4294901760, %v10659_v46 }
0x1660   :  { %13600 = vmatmul.mubr.f32.vlgmr.msra.gmra.mrb[6].mxu0 %v10660_v51  ;;  %13666 = vmatmul.mubr.f32.vlgmr.msra.gmra.mrb[24].mxu1 %v10660_v51 }
0x1661   :  { %14457 = vmatpush3.bf16.msra.mxu0 %v14456_v9  ;;  %14493 = vmatpush3.bf16.msra.mxu1 %v15549_v25 }
0x1662   :  { %14458 = vmatprep.subr.bf16.mxu0 %v14886_v38  ;;  %14494 = vmatprep.subr.bf16.mxu1 %v14886_v38 }
0x1663   :  { %13610 = vmatprep.mubr.msk.f32.mxu0 %vm14887_vm11, %v16412_v15  ;;  %13676 = vmatprep.mubr.msk.f32.mxu1 %vm14887_vm11, %v16412_v15 }
0x1665   :  { %14460 = vmatpush3.bf16.msra.mxu0 %v14459_v23  ;;  %14496 = vmatpush3.bf16.msra.mxu1 %v15554_v50 }
0x1666   :  { %14461 = vmatprep.subr.bf16.mxu0 %v14886_v38  ;;  %14497 = vmatprep.subr.bf16.mxu1 %v14886_v38 }
0x1668   :  { %13611 = vmatmul.mubr.f32.vlgmr.msra.gmra.mrb[6].mxu0 %v16259_v7  ;;  %13677 = vmatmul.mubr.f32.vlgmr.msra.gmra.mrb[24].mxu1 %v16259_v7 }
0x1669   :  { %14463 = vmatpush3.bf16.msra.mxu0 %v14462_v14  ;;  %14499 = vmatpush3.bf16.msra.mxu1 %v15560_v26 }
0x166a   :  { %14464 = vmatprep.subr.bf16.mxu0 %v14886_v38  ;;  %14500 = vmatprep.subr.bf16.mxu1 %v14886_v38 }
0x166b   :  { %13621 = vmatprep.mubr.msk.f32.mxu0 %vm14887_vm11, %v16412_v15  ;;  %13687 = vmatprep.mubr.msk.f32.mxu1 %vm14887_vm11, %v16412_v15 }
0x166d   :  { %14466 = vmatpush3.bf16.msra.mxu0 %v14465_v17  ;;  %14502 = vmatpush3.bf16.msra.mxu1 %v15565_v13 }
0x166e   :  { %14467 = vmatprep.subr.bf16.mxu0 %v14886_v38  ;;  %14503 = vmatprep.subr.bf16.mxu1 %v14886_v38 }
0x1670   :  { %13622 = vmatmul.mubr.f32.vlgmr.msra.gmra.mrb[6].mxu0 %v10657_v54  ;;  %13688 = vmatmul.mubr.f32.vlgmr.msra.gmra.mrb[24].mxu1 %v10657_v54 }
0x1671   :  { %14469 = vmatpush3.bf16.msra.mxu0 %v16243_v16  ;;  %14505 = vmatpush3.bf16.msra.mxu1 %v15537_v30 }
0x1672   :  { %14470 = vmatprep.subr.bf16.mxu0 %v14886_v38  ;;  %14506 = vmatprep.subr.bf16.mxu1 %v14886_v38 }
0x1673   :  { %13632 = vmatprep.mubr.msk.f32.mxu0 %vm14887_vm11, %v16412_v15  ;;  %13698 = vmatprep.mubr.msk.f32.mxu1 %vm14887_vm11, %v16412_v15 }
0x1675   :  { %14472 = vmatpush3.bf16.msra.mxu0 %v16253_v8  ;;  %14508 = vmatpush3.bf16.msra.mxu1 %v15542_v6 }
0x1676   :  { %14473 = vmatprep.subr.bf16.mxu0 %v14886_v38  ;;  %14509 = vmatprep.subr.bf16.mxu1 %v14886_v38 }
0x1678   :  { %13633 = vmatmul.mubr.f32.vlgmr.msra.gmra.mrb[6].mxu0 %v10658_v49  ;;  %13699 = vmatmul.mubr.f32.vlgmr.msra.gmra.mrb[24].mxu1 %v10658_v49 }
0x1679   :  { %14475 = vmatpush3.bf16.msra.mxu0 %v14474_v45  ;;  %14511 = vmatpush3.bf16.msra.mxu1 %v15578_v20 }
0x167a   :  { %14476 = vmatprep.subr.bf16.mxu0 %v14886_v38  ;;  %14512 = vmatprep.subr.bf16.mxu1 %v14886_v38 }
0x167b   :  { %13643 = vmatprep.mubr.msk.f32.mxu0 %vm14887_vm11, %v16412_v15  ;;  %13709 = vmatprep.mubr.msk.f32.mxu1 %vm14887_vm11, %v16412_v15 }
0x167d   :  { %14478 = vmatpush3.bf16.msra.mxu0 %v14477_v52  ;;  %14514 = vmatpush3.bf16.msra.mxu1 %v15583_v39 }
0x167e   :  { %14479 = vmatprep.subr.bf16.mxu0 %v14886_v38  ;;  %14515 = vmatprep.subr.bf16.mxu1 %v14886_v38 }
0x1680   :  { %13644 = vmatmul.mubr.f32.vlgmr.msra.gmra.mrb[6].mxu0 %v16259_v7  ;;  %13710 = vmatmul.mubr.f32.vlgmr.msra.gmra.mrb[24].mxu1 %v16259_v7 }
0x1681   :  { %14481 = vmatpush3.bf16.msra.mxu0 %v16243_v16  ;;  %14517 = vmatpush3.bf16.msra.mxu1 %v15537_v30  ;;  %v11674_v16 = vand.u32 4294901760, %v11673_v36 }
0x1682   :  { %14482 = vmatprep.subr.bf16.mxu0 %v14886_v38  ;;  %14518 = vmatprep.subr.bf16.mxu1 %v14886_v38 }
0x1683   :  { %13654 = vmatprep.mubr.msk.f32.mxu0 %vm14887_vm11, %v16412_v15  ;;  %13720 = vmatprep.mubr.msk.f32.mxu1 %vm14887_vm11, %v16412_v15  ;;  %v11675_v47 = vsub.f32 %v11673_v36, %v11674_v16 }
0x1685   :  { %14484 = vmatpush3.bf16.msra.mxu0 %v16253_v8  ;;  %14520 = vmatpush3.bf16.msra.mxu1 %v15542_v6  ;;  %v11676_v1 = vand.u32 4294901760, %v11675_v47  ;;  %v11695_v8 = vand.u32 4294901760, %v11694_v44 }
0x1686   :  { %14521 = vmatprep.subr.bf16.mxu0 %v14886_v38 }
0x1687   :  { %v11696_v11 = vsub.f32 %v11694_v44, %v11695_v8  ;;  %v14549_v9 = vpack.c.bf16 %v11695_v8, %v11688_v2 }
0x1688   :  { %13655 = vmatmul.mubr.f32.vlgmr.msra.gmra.mrb[6].mxu0 %v16259_v7  ;;  %13721 = vmatmul.mubr.f32.vlgmr.msra.gmra.mrb[24].mxu1 %v16259_v7 }
0x1689   :  { %13731 = vmatprep.mubr.msk.f32.mxu0 %vm14887_vm11, %v16412_v15  ;;  %14523 = vmatpush3.bf16.msra.mxu0 %v16334_v41  ;;  %v11697_v60 = vand.u32 4294901760, %v11696_v11 }
0x168a   :  { %14524 = vmatprep.subr.bf16.mxu0 %v14886_v38 }
0x168b   :  { %v14531_v33 = vpack.c.bf16 %v11697_v60, %v11690_v59 }
0x168d   :  { %14526 = vmatpush3.bf16.msra.mxu0 %v16344_v35 }
0x168e   :  { %14527 = vmatprep.subr.bf16.mxu0 %v14886_v38 }
0x175b   :  { %v11554_v30 = vpop.f32.mrb[24].mxu1 }
0x175c   :  { %v11558_v25 = vadd.f32 %v15618_v21, %v11554_v30  ;;  %v13722_v50 = vpop.f32.mrb[25].mxu1 }
0x175e   :  { %14876 = vtanh.f32 %v11558_v25  ;;  %v12108_v13 = vmul.f32 -1.442695, %v11558_v25 }
0x1760   :  { %14878 = vpow2.f32 %v12108_v13 }
0x1768   :  { %v14877_v26 = vpop.eup %14876 }
0x1769   :  { %11568 = vrot.lane.b32.xlu0 %v14877_v26, %s14888_s2 }
0x176a   :  { %v14879_v6 = vpop.eup %14878 }
0x176b   :  { %v11562_v20 = vadd.f32 1.0, %v14879_v6 }
0x176d   :  { %14880 = vrcp.f32 %v11562_v20 }
0x1777   :  { %v14881_v39 = vpop.eup %14880 }
0x1778   :  { %v11566_v3 = vmul.f32 %v14881_v39, %v16233_v40  ;;  %v11680_v40 = vsub.f32 %v11584_v18, %v11596_v31 }
0x177a   :  { %v11681_v5 = vand.u32 4294901760, %v11680_v40  ;;  %v14534_v22 = vpack.c.bf16 %v11680_v40, %v11673_v36 }
0x177c   :  { %v11682_v53 = vsub.f32 %v11680_v40, %v11681_v5  ;;  %v14546_v10 = vpack.c.bf16 %v11681_v5, %v11674_v16 }
0x177e   :  { %v11683_v28 = vand.u32 4294901760, %v11682_v53 }
0x1780   :  { %v14528_v58 = vpack.c.bf16 %v11683_v28, %v11676_v1 }
0x17db   :  { %v11569_v55 = vpop.permute.xlu0 %11568 }
0x17dc   :  { %v11571_v62 = vmul.f32 %v14881_v39, %v11569_v55 }
0x17de   :  { %11573 = vrot.lane.b32.xlu1 %v11571_v62, %s14889_s23 }
0x1850   :  { %v11574_v19 = vpop.permute.xlu1 %11573 }
0x1851   :  { %v11576_v12 = vadd.f32 %v11574_v19, %v11566_v3 }
0x1853   :  { %14882 = vtanh.f32 %v11576_v12 }
0x185d   :  { %v14883_v21 = vpop.eup %14882 }
0x185e   :  { %11579 = vrot.lane.b32.xlu0 %v14883_v21, %s14888_s2 }
0x18d0   :  { %v11580_v32 = vpop.permute.xlu0 %11579 }
0x18d1   :  { %v11582_v57 = vmul.f32 %v14881_v39, %v11580_v32 }
0x18d3   :  { %11588 = vrot.lane.b32.xlu1 %v11582_v57, %s14889_s23 }
0x1945   :  { %v11589_v56 = vpop.permute.xlu1 %11588 }
0x1946   :  { %v11590_v61 = vsel %vm1827_vm10, %v11589_v56, 0  ;;  %12082 = vst.msk [vmem:[%s16390_s6] sm:$0x3] %vm12081_vm12, %v11589_v56 }
0x1947   :  { %v11661_v23 = vand.u32 4294901760, %v11590_v61  ;;  %12084 = vst.msk [vmem:[%s16390_s6] sm:$0x3] %vm12083_vm13, %v11576_v12 }
0x1949   :  { %v11662_v14 = vsub.f32 %v11590_v61, %v11661_v23 }
0x194b   :  { %v11663_v17 = vand.u32 4294901760, %v11662_v14 }
0x194d   :  { %v11664_v45 = vsub.f32 %v11662_v14, %v11663_v17 }
0x194f   :  { %v11665_v52 = vand.u32 4294901760, %v11664_v45 }
0x1951   :  { %13732 = vmatmul.mubr.f32.vlgmr.msra.gmra.mrb[6].mxu0 %v11665_v52 }
0x1952   :  { %14529 = vmatpush3.bf16.msra.mxu0 %v14528_v58  ;;  %13742 = vmatprep.mubr.msk.f32.mxu0 %vm14887_vm11, %v16412_v15 }
0x1953   :  { %14530 = vmatprep.subr.bf16.mxu0 %v14886_v38 }
0x1956   :  { %14532 = vmatpush3.bf16.msra.mxu0 %v14531_v33 }
0x1957   :  { %14533 = vmatprep.subr.bf16.mxu0 %v14886_v38 }
0x1959   :  { %13743 = vmatmul.mubr.f32.vlgmr.msra.gmra.mrb[6].mxu0 %v11661_v23 }
0x195a   :  { %14535 = vmatpush3.bf16.msra.mxu0 %v14534_v22  ;;  %13753 = vmatprep.mubr.msk.f32.mxu0 %vm14887_vm11, %v16412_v15 }
0x195b   :  { %14536 = vmatprep.subr.bf16.mxu0 %v14886_v38 }
0x195e   :  { %14538 = vmatpush3.bf16.msra.mxu0 %v14537_v27 }
0x195f   :  { %14539 = vmatprep.subr.bf16.mxu0 %v14886_v38 }
0x1961   :  { %13754 = vmatmul.mubr.f32.vlgmr.msra.gmra.mrb[6].mxu0 %v11662_v14 }
0x1962   :  { %14541 = vmatpush3.bf16.msra.mxu0 %v16334_v41  ;;  %13764 = vmatprep.mubr.msk.f32.mxu0 %vm14887_vm11, %v16412_v15 }
0x1963   :  { %14542 = vmatprep.subr.bf16.mxu0 %v14886_v38 }
0x1966   :  { %14544 = vmatpush3.bf16.msra.mxu0 %v16344_v35 }
0x1967   :  { %14545 = vmatprep.subr.bf16.mxu0 %v14886_v38 }
0x1969   :  { %13765 = vmatmul.mubr.f32.vlgmr.msra.gmra.mrb[6].mxu0 %v11663_v17 }
0x196a   :  { %14547 = vmatpush3.bf16.msra.mxu0 %v14546_v10  ;;  %13775 = vmatprep.mubr.msk.f32.mxu0 %vm14887_vm11, %v16412_v15 }
0x196b   :  { %14548 = vmatprep.subr.bf16.mxu0 %v14886_v38 }
0x196e   :  { %14550 = vmatpush3.bf16.msra.mxu0 %v14549_v9 }
0x196f   :  { %14551 = vmatprep.subr.bf16.mxu0 %v14886_v38 }
0x1971   :  { %13776 = vmatmul.mubr.f32.vlgmr.msra.gmra.mrb[6].mxu0 %v11661_v23 }
0x1972   :  { %14553 = vmatpush3.bf16.msra.mxu0 %v16334_v41  ;;  %13786 = vmatprep.mubr.msk.f32.mxu0 %vm14887_vm11, %v16412_v15 }
0x1973   :  { %14554 = vmatprep.subr.bf16.mxu0 %v14886_v38 }
0x1976   :  { %14556 = vmatpush3.bf16.msra.mxu0 %v16344_v35 }
0x1979   :  { %13787 = vmatmul.mubr.f32.vlgmr.msra.gmra.mrb[6].mxu0 %v11661_v23 }
0x1a4c   :  { %v12073_v4 = vpop.f32.mrb[6].mxu0 }
0x1a4d   :  { %v14569_v7 = vadd.f32 %v12100_v24, %v12073_v4  ;;  %v13788_v54 = vpop.f32.mrb[7].mxu0 }
0x1a4f   :  { %12079 = vst.msk [vmem:[%s16391_s5] sm:$0x3] %vm12078_vm14, %v14569_v7 }

</bundles_post_ra>
